<compile_context>
chip_gen: v5e
topology: v5e:2x2
jax: 0.10.0
libtpu: 0.0.40
codegen_flags: <defaults>
</compile_context>

<pallas_src>
import functools

import jax
import jax.numpy as jnp
from jax import lax
from jax.experimental import pallas as pl
from jax.experimental.pallas import tpu as pltpu

EPS = 1e-5
LANE = 128          # TPU lane width; channel axis is padded to a multiple of this


# ----------------------------------------------------------------------------- helpers
def _tile_conv3x3(slab, w, th, wdt, cp):
    """3x3 'SAME' conv on one spatial tile as a single MXU matmul.

    slab: (th+2, wdt+2, cp) spatially padded activation tile (zeros wherever the
          halo falls outside the image).
    w   : (9*cp, cp) weights, tap-major (ky, kx, cin) ordering.
    Returns (th*wdt, cp) float32.
    """
    taps = []
    for dy in range(3):
        rows = slab[dy:dy + th]                              # (th, wdt+2, cp)
        for dx in range(3):
            taps.append(rows[:, dx:dx + wdt, :].reshape(th * wdt, cp))
    patch = jnp.concatenate(taps, axis=-1)                   # (th*wdt, 9*cp)
    return jnp.dot(patch, w, preferred_element_type=jnp.float32)


def _stats(y, cp):
    """Per-channel [sum, sumsq] partials of a (rows, cp) f32 tile -> (1,1,2,cp)."""
    s = jnp.sum(y, axis=0, keepdims=True)                    # (1, cp)
    ss = jnp.sum(y * y, axis=0, keepdims=True)               # (1, cp)
    return jnp.concatenate([s, ss], axis=0).reshape(1, 1, 2, cp)


# ----------------------------------------------------------------------------- kernels
def _conv1_kernel(xp_ref, w_ref, yp_ref, st_ref, *, th):
    # xp_ref: (1, H+2, W+2, Cp) zero-padded input image (resident once per n)
    # w_ref : (9*Cp, Cp)
    # yp_ref: (1, H+2, W+2, Cp) spatially padded conv1 output (resident per n,
    #         revisited across the tile axis -> that grid axis is "arbitrary")
    # st_ref: (1, 1, 2, Cp)  per-tile [sum, sumsq]
    _, hp, wp, cp = yp_ref.shape
    wdt = wp - 2
    ti = pl.program_id(1)
    r0 = pl.multiple_of(ti * th, th)
    slab = xp_ref[0, pl.ds(r0, th + 2), :, :]                # (th+2, W+2, Cp)
    y = _tile_conv3x3(slab, w_ref[...], th, wdt, cp)         # (th*W, Cp) f32
    st_ref[...] = _stats(y, cp)

    @pl.when(ti == 0)
    def _():                                                  # zero the 1-px halo once / image
        yp_ref[...] = jnp.zeros_like(yp_ref)

    yp_ref[0, pl.ds(1 + r0, th), pl.ds(1, wdt), :] = (
        y.reshape(th, wdt, cp).astype(yp_ref.dtype))


def _bnrelu_conv2_kernel(yp_ref, w_ref, sc_ref, sh_ref, y_ref, st_ref):
    # yp_ref: (1, H+2, W+2, Cp) zero-padded raw conv1 output
    # sc/sh : (1, Cp) BN1 scale/shift (global batch statistics, precomputed)
    # y_ref : (1, TH, W, Cp) raw conv2 output tile
    _, th, wdt, cp = y_ref.shape
    himg = yp_ref.shape[1] - 2
    r0 = pl.multiple_of(pl.program_id(1) * th, th)
    slab = yp_ref[0, pl.ds(r0, th + 2), :, :]                # (th+2, W+2, Cp)

    # BN1 + relu on the haloed tile (halo rows from neighbouring tiles need it too)
    a = jnp.maximum(slab * sc_ref[...] + sh_ref[...], 0.0)
    # re-zero the spatial halo that lies *outside* the image (BN shifts the zeros)
    row = lax.broadcasted_iota(jnp.int32, (th + 2, wdt + 2, 1), 0) + r0
    col = lax.broadcasted_iota(jnp.int32, (th + 2, wdt + 2, 1), 1)
    inside = (row >= 1) & (row <= himg) & (col >= 1) & (col <= wdt)
    slab = jnp.where(inside, a, 0.0)

    y = _tile_conv3x3(slab, w_ref[...], th, wdt, cp)
    st_ref[...] = _stats(y, cp)
    y_ref[...] = y.reshape(1, th, wdt, cp).astype(y_ref.dtype)


def _bn_residual_relu_kernel(y_ref, x_ref, sc_ref, sh_ref, o_ref):
    out = y_ref[...] * sc_ref[...] + sh_ref[...] + x_ref[...]
    o_ref[...] = jnp.maximum(out, 0.0).astype(o_ref.dtype)


# ----------------------------------------------------------------------------- wrapper
def _round_up(x, m):
    return (x + m - 1) // m * m


def _pick_tile_h(h, w, target_rows=512):
    """Largest divisor of H such that TH*W is at most ~target_rows output rows."""
    cap = max(1, target_rows // max(w, 1))
    th = 1
    for cand in range(1, h + 1):
        if h % cand == 0 and cand <= cap:
            th = cand
    return th


def _bn_scale_shift(stats, gamma, beta, count):
    """stats: (N, nTH, 2, Cp) -> (1, Cp) scale/shift with bn(y) = y*scale + shift."""
    s = jnp.sum(stats[:, :, 0, :], axis=(0, 1))
    ss = jnp.sum(stats[:, :, 1, :], axis=(0, 1))
    mean = s / count
    var = jnp.maximum(ss / count - mean * mean, 0.0)         # biased batch variance
    scale = gamma * lax.rsqrt(var + EPS)
    shift = beta - mean * scale
    return scale.reshape(1, -1), shift.reshape(1, -1)


def basic_block(x_nchw, params):
    """Forward of torchvision BasicBlock (stride=1, downsample=None, train-mode BN).

    x_nchw: (N, C, H, W); params = (w1, g1, b1, w2, g2, b2), w*: (3,3,Cin,Cout) HWIO.
    """
    w1, g1, b1, w2, g2, b2 = params
    n, c, h, w = x_nchw.shape
    p = w1.shape[-1]
    assert c == p, "stride=1 / downsample=None requires inplanes == planes"
    # TODO(synk): stride=2 and the downsample branch are not implemented (the
    # module's defaults are stride=1, downsample=None).

    dt = x_nchw.dtype
    cp = _round_up(max(c, p), LANE)                          # lane-dense channels
    th = _pick_tile_h(h, w)
    nth = h // th
    grid = (n, nth)
    count = float(n * h * w)
    itemsz = x_nchw.dtype.itemsize

    # ---- layout prep: NCHW -> NHWC, pad channels to Cp, spatial zero pad = 1 ----
    x_nhwc = jnp.transpose(x_nchw, (0, 2, 3, 1))
    x_p = jnp.pad(x_nhwc, ((0, 0), (0, 0), (0, 0), (0, cp - c)))             # residual branch
    x_sp = jnp.pad(x_nhwc, ((0, 0), (1, 1), (1, 1), (0, cp - c)))            # conv1 input

    def pad_w(wk):
        ci, co = wk.shape[2], wk.shape[3]
        wk = jnp.pad(wk, ((0, 0), (0, 0), (0, cp - ci), (0, cp - co)))
        return wk.reshape(9 * cp, cp).astype(dt)             # (ky,kx,cin)-major K

    w1r, w2r = pad_w(w1), pad_w(w2)
    g1p = jnp.pad(jnp.ravel(g1), (0, cp - p)).astype(jnp.float32)
    b1p = jnp.pad(jnp.ravel(b1), (0, cp - p)).astype(jnp.float32)
    g2p = jnp.pad(jnp.ravel(g2), (0, cp - p)).astype(jnp.float32)
    b2p = jnp.pad(jnp.ravel(b2), (0, cp - p)).astype(jnp.float32)

    img_spec = pl.BlockSpec((1, h + 2, w + 2, cp), lambda ni, ti: (ni, 0, 0, 0))
    w_spec = pl.BlockSpec((9 * cp, cp), lambda ni, ti: (0, 0))
    vec_spec = pl.BlockSpec((1, cp), lambda ni, ti: (0, 0))
    tile_spec = pl.BlockSpec((1, th, w, cp), lambda ni, ti: (ni, ti, 0, 0))
    stat_spec = pl.BlockSpec((1, 1, 2, cp), lambda ni, ti: (ni, ti, 0, 0))

    act_bytes = n * h * w * cp * itemsz
    conv_flops = 2 * n * h * w * (9 * cp) * cp
    conv_cost = pl.CostEstimate(flops=conv_flops, transcendentals=0,
                                bytes_accessed=3 * act_bytes + 9 * cp * cp * itemsz)

    # ---- pass 1: conv1 (-> spatially padded layout) + per-tile BN1 statistics ---
    y1p, st1 = pl.pallas_call(
        functools.partial(_conv1_kernel, th=th),
        grid=grid,
        in_specs=[img_spec, w_spec],
        out_specs=(img_spec, stat_spec),
        out_shape=(jax.ShapeDtypeStruct((n, h + 2, w + 2, cp), dt),
                   jax.ShapeDtypeStruct((n, nth, 2, cp), jnp.float32)),
        compiler_params=pltpu.CompilerParams(
            dimension_semantics=("parallel", "arbitrary")),   # padded out revisited over ti
        cost_estimate=conv_cost,
    )(x_sp, w1r)

    sc1, sh1 = _bn_scale_shift(st1, g1p, b1p, count)

    # ---- pass 2: BN1-apply + relu + conv2 + per-tile BN2 statistics ------------
    y2, st2 = pl.pallas_call(
        _bnrelu_conv2_kernel,
        grid=grid,
        in_specs=[img_spec, w_spec, vec_spec, vec_spec],
        out_specs=(tile_spec, stat_spec),
        out_shape=(jax.ShapeDtypeStruct((n, h, w, cp), dt),
                   jax.ShapeDtypeStruct((n, nth, 2, cp), jnp.float32)),
        compiler_params=pltpu.CompilerParams(
            dimension_semantics=("parallel", "parallel")),
        cost_estimate=conv_cost,
    )(y1p, w2r, sc1, sh1)

    sc2, sh2 = _bn_scale_shift(st2, g2p, b2p, count)

    # ---- pass 3: BN2-apply + residual add + relu -------------------------------
    out_p = pl.pallas_call(
        _bn_residual_relu_kernel,
        grid=grid,
        in_specs=[tile_spec, tile_spec, vec_spec, vec_spec],
        out_specs=tile_spec,
        out_shape=jax.ShapeDtypeStruct((n, h, w, cp), dt),
        compiler_params=pltpu.CompilerParams(
            dimension_semantics=("parallel", "parallel")),
        cost_estimate=pl.CostEstimate(flops=4 * n * h * w * cp, transcendentals=0,
                                      bytes_accessed=3 * act_bytes),
    )(y2, x_p, sc2, sh2)

    out = out_p[..., :p]                                      # drop channel padding
    return jnp.transpose(out, (0, 3, 1, 2))                   # back to NCHW


# ----------------------------------------------------------------------------- reference
def basic_block_reference(x_nchw, params):
    """Pure-JAX reference (lax.conv) for correctness checking."""
    w1, g1, b1, w2, g2, b2 = params
    x = jnp.transpose(x_nchw, (0, 2, 3, 1))

    def conv(a, wk):
        return lax.conv_general_dilated(
            a, wk, (1, 1), 'SAME',
            dimension_numbers=('NHWC', 'HWIO', 'NHWC'))

    def bn(y, g, b):
        m = jnp.mean(y, axis=(0, 1, 2), keepdims=True)
        v = jnp.mean((y - m) ** 2, axis=(0, 1, 2), keepdims=True)
        return (y - m) * lax.rsqrt(v + EPS) * g.reshape(1, 1, 1, -1) + b.reshape(1, 1, 1, -1)

    y = jax.nn.relu(bn(conv(x, w1), g1, b1))
    y = bn(conv(y, w2), g2, b2)
    y = jax.nn.relu(y + x)
    return jnp.transpose(y, (0, 3, 1, 2))


if __name__ == "__main__":
    key = jax.random.PRNGKey(0)
    N, C, H, W = 2, 4, 16, 16          # inplanes == planes, stride=1, downsample=None
    planes = C

    k_x, k_w1, k_w2 = jax.random.split(key, 3)
    x = jax.random.normal(k_x, (N, C, H, W), jnp.float32)
    # deterministic synthetic conv weights (HWIO), kaiming-ish scale
    w1 = jax.random.normal(k_w1, (3, 3, C, planes), jnp.float32) * (2.0 / (9 * C)) ** 0.5
    w2 = jax.random.normal(k_w2, (3, 3, planes, planes), jnp.float32) * (2.0 / (9 * planes)) ** 0.5
    # BatchNorm2d defaults: weight=1, bias=0
    g1 = jnp.ones((planes,), jnp.float32)
    b1 = jnp.zeros((planes,), jnp.float32)
    g2 = jnp.ones((planes,), jnp.float32)
    b2 = jnp.zeros((planes,), jnp.float32)
    params = (w1, g1, b1, w2, g2, b2)

    out = jax.block_until_ready(jax.jit(basic_block)(x, params))
    ref = jax.block_until_ready(basic_block_reference(x, params))
    assert out.shape == (N, planes, H, W)
    max_err = float(jnp.max(jnp.abs(out - ref)))
    assert jnp.allclose(out, ref, rtol=1e-2, atol=1e-2), max_err
    print("KERNEL_OK")
</pallas_src>

<mosaic_0001>
module attributes {stable_mosaic.version = 11 : i64} {
  func.func @_conv1_kernel(%arg0: i32, %arg1: i32, %arg2: memref<1x18x18x128xf32, #tpu.memory_space<vmem>>, %arg3: memref<1152x128xf32, #tpu.memory_space<vmem>>, %arg4: memref<1x18x18x128xf32, #tpu.memory_space<vmem>>, %arg5: memref<1x1x2x128xf32, #tpu.memory_space<vmem>>) attributes {dimension_semantics = [#tpu.dimension_semantics<parallel>, #tpu.dimension_semantics<arbitrary>], iteration_bounds = array<i64: 2, 1>, scalar_prefetch = 0 : i64, scratch_operands = 0 : i64, tpu.core_type = #tpu.core_type<tc>, window_params = [{transform_indices = @transform_0, window_bounds = array<i64: 1, 18, 18, 128>}, {pipeline_mode = #tpu.pipeline_mode<synchronous>, transform_indices = @transform_1, window_bounds = array<i64: 1152, 128>}, {transform_indices = @transform_2, window_bounds = array<i64: 1, 18, 18, 128>}, {transform_indices = @transform_3, window_bounds = array<i64: 1, 1, 2, 128>}]} {
    %c16_i32 = arith.constant 16 : i32
    %0 = arith.muli %arg1, %c16_i32 : i32
    %1 = tpu.assume_multiple %0, 16 : i32
    %c0 = arith.constant 0 : index
    %2 = arith.index_cast %1 : i32 to index
    %c0_0 = arith.constant 0 : index
    %c0_1 = arith.constant 0 : index
    %3 = vector.load %arg2[%c0, %2, %c0_0, %c0_1] : memref<1x18x18x128xf32, #tpu.memory_space<vmem>>, vector<1x18x18x128xf32>
    %4 = vector.shape_cast %3 : vector<1x18x18x128xf32> to vector<18x18x128xf32>
    %c0_2 = arith.constant 0 : index
    %c0_3 = arith.constant 0 : index
    %5 = vector.load %arg3[%c0_2, %c0_3] : memref<1152x128xf32, #tpu.memory_space<vmem>>, vector<1152x128xf32>
    %6 = vector.extract_strided_slice %4 {offsets = [0, 0, 0], sizes = [16, 18, 128], strides = [1, 1, 1]} : vector<18x18x128xf32> to vector<16x18x128xf32>
    %7 = vector.extract_strided_slice %6 {offsets = [0, 0, 0], sizes = [16, 16, 128], strides = [1, 1, 1]} : vector<16x18x128xf32> to vector<16x16x128xf32>
    %8 = vector.shape_cast %7 : vector<16x16x128xf32> to vector<256x128xf32>
    %9 = vector.extract_strided_slice %6 {offsets = [0, 1, 0], sizes = [16, 16, 128], strides = [1, 1, 1]} : vector<16x18x128xf32> to vector<16x16x128xf32>
    %10 = vector.shape_cast %9 : vector<16x16x128xf32> to vector<256x128xf32>
    %11 = vector.extract_strided_slice %6 {offsets = [0, 2, 0], sizes = [16, 16, 128], strides = [1, 1, 1]} : vector<16x18x128xf32> to vector<16x16x128xf32>
    %12 = vector.shape_cast %11 : vector<16x16x128xf32> to vector<256x128xf32>
    %13 = vector.extract_strided_slice %4 {offsets = [1, 0, 0], sizes = [16, 18, 128], strides = [1, 1, 1]} : vector<18x18x128xf32> to vector<16x18x128xf32>
    %14 = vector.extract_strided_slice %13 {offsets = [0, 0, 0], sizes = [16, 16, 128], strides = [1, 1, 1]} : vector<16x18x128xf32> to vector<16x16x128xf32>
    %15 = vector.shape_cast %14 : vector<16x16x128xf32> to vector<256x128xf32>
    %16 = vector.extract_strided_slice %13 {offsets = [0, 1, 0], sizes = [16, 16, 128], strides = [1, 1, 1]} : vector<16x18x128xf32> to vector<16x16x128xf32>
    %17 = vector.shape_cast %16 : vector<16x16x128xf32> to vector<256x128xf32>
    %18 = vector.extract_strided_slice %13 {offsets = [0, 2, 0], sizes = [16, 16, 128], strides = [1, 1, 1]} : vector<16x18x128xf32> to vector<16x16x128xf32>
    %19 = vector.shape_cast %18 : vector<16x16x128xf32> to vector<256x128xf32>
    %20 = vector.extract_strided_slice %4 {offsets = [2, 0, 0], sizes = [16, 18, 128], strides = [1, 1, 1]} : vector<18x18x128xf32> to vector<16x18x128xf32>
    %21 = vector.extract_strided_slice %20 {offsets = [0, 0, 0], sizes = [16, 16, 128], strides = [1, 1, 1]} : vector<16x18x128xf32> to vector<16x16x128xf32>
    %22 = vector.shape_cast %21 : vector<16x16x128xf32> to vector<256x128xf32>
    %23 = vector.extract_strided_slice %20 {offsets = [0, 1, 0], sizes = [16, 16, 128], strides = [1, 1, 1]} : vector<16x18x128xf32> to vector<16x16x128xf32>
    %24 = vector.shape_cast %23 : vector<16x16x128xf32> to vector<256x128xf32>
    %25 = vector.extract_strided_slice %20 {offsets = [0, 2, 0], sizes = [16, 16, 128], strides = [1, 1, 1]} : vector<16x18x128xf32> to vector<16x16x128xf32>
    %26 = vector.shape_cast %25 : vector<16x16x128xf32> to vector<256x128xf32>
    %27 = tpu.concatenate %8, %10, %12, %15, %17, %19, %22, %24, %26 in 1 : vector<256x128xf32>, vector<256x128xf32>, vector<256x128xf32>, vector<256x128xf32>, vector<256x128xf32>, vector<256x128xf32>, vector<256x128xf32>, vector<256x128xf32>, vector<256x128xf32> -> vector<256x1152xf32>
    %cst = arith.constant dense<0.000000e+00> : vector<256x128xf32>
    %28 = tpu.matmul %27, %5, %cst {dimension_numbers = #tpu.dot_dimension_numbers<[1], [0], [0], [1], [0, 0, 1, 1], [], []>} : vector<256x1152xf32>, vector<1152x128xf32>, vector<256x128xf32> -> vector<256x128xf32>
    %cst_4 = arith.constant dense<0.000000e+00> : vector<128xf32>
    %29 = vector.multi_reduction <add>, %28, %cst_4 [0] : vector<256x128xf32> to vector<128xf32>
    %30 = vector.shape_cast %29 : vector<128xf32> to vector<1x128xf32>
    %31 = arith.mulf %28, %28 : vector<256x128xf32>
    %cst_5 = arith.constant dense<0.000000e+00> : vector<128xf32>
    %32 = vector.multi_reduction <add>, %31, %cst_5 [0] : vector<256x128xf32> to vector<128xf32>
    %33 = vector.shape_cast %32 : vector<128xf32> to vector<1x128xf32>
    %34 = tpu.concatenate %30, %33 in 0 : vector<1x128xf32>, vector<1x128xf32> -> vector<2x128xf32>
    %35 = vector.shape_cast %34 : vector<2x128xf32> to vector<1x1x2x128xf32>
    %c0_6 = arith.constant 0 : index
    %c0_7 = arith.constant 0 : index
    %c0_8 = arith.constant 0 : index
    %c0_9 = arith.constant 0 : index
    %36 = vector.load %arg5[%c0_6, %c0_7, %c0_8, %c0_9] : memref<1x1x2x128xf32, #tpu.memory_space<vmem>>, vector<1x1x2x128xf32>
    tpu.vector_store %arg5[%c0_6, %c0_7, %c0_8, %c0_9], %35 {strides = array<i32>} : memref<1x1x2x128xf32, #tpu.memory_space<vmem>>, vector<1x1x2x128xf32>,
    %c0_i32 = arith.constant 0 : i32
    %37 = arith.cmpi eq, %arg1, %c0_i32 : i32
    %38 = arith.extui %37 : i1 to i32
    %c0_i32_10 = arith.constant 0 : i32
    %39 = arith.cmpi ne, %38, %c0_i32_10 : i32
    scf.if %39 {
      %cst_13 = arith.constant 0.000000e+00 : f32
      %46 = vector.broadcast %cst_13 : f32 to vector<1x18x18x128xf32>
      %c0_14 = arith.constant 0 : index
      %c0_15 = arith.constant 0 : index
      %c0_16 = arith.constant 0 : index
      %c0_17 = arith.constant 0 : index
      %47 = vector.load %arg4[%c0_14, %c0_15, %c0_16, %c0_17] : memref<1x18x18x128xf32, #tpu.memory_space<vmem>>, vector<1x18x18x128xf32>
      tpu.vector_store %arg4[%c0_14, %c0_15, %c0_16, %c0_17], %46 {strides = array<i32>} : memref<1x18x18x128xf32, #tpu.memory_space<vmem>>, vector<1x18x18x128xf32>,
    } else {
    }
    %40 = vector.shape_cast %28 : vector<256x128xf32> to vector<16x16x128xf32>
    %c1_i32 = arith.constant 1 : i32
    %41 = arith.addi %c1_i32, %1 : i32
    %c0_11 = arith.constant 0 : index
    %42 = arith.index_cast %41 : i32 to index
    %c1 = arith.constant 1 : index
    %c0_12 = arith.constant 0 : index
    %43 = vector.load %arg4[%c0_11, %42, %c1, %c0_12] : memref<1x18x18x128xf32, #tpu.memory_space<vmem>>, vector<1x16x16x128xf32>
    %44 = vector.shape_cast %43 : vector<1x16x16x128xf32> to vector<16x16x128xf32>
    %45 = vector.shape_cast %40 : vector<16x16x128xf32> to vector<1x16x16x128xf32>
    tpu.vector_store %arg4[%c0_11, %42, %c1, %c0_12], %45 {strides = array<i32>} : memref<1x18x18x128xf32, #tpu.memory_space<vmem>>, vector<1x16x16x128xf32>,
    return
  }
  func.func @transform_0(%arg0: i32, %arg1: i32) -> (i32, i32, i32, i32) {
    %c0_i32 = arith.constant 0 : i32
    %c0_i32_0 = arith.constant 0 : i32
    %c0_i32_1 = arith.constant 0 : i32
    %c0_i32_2 = arith.constant 0 : i32
    return %arg0, %c0_i32, %c0_i32_0, %c0_i32_1 : i32, i32, i32, i32
  }
  func.func @transform_1(%arg0: i32, %arg1: i32) -> (i32, i32) {
    %c0_i32 = arith.constant 0 : i32
    %c0_i32_0 = arith.constant 0 : i32
    %c0_i32_1 = arith.constant 0 : i32
    return %c0_i32, %c0_i32_0 : i32, i32
  }
  func.func @transform_2(%arg0: i32, %arg1: i32) -> (i32, i32, i32, i32) {
    %c0_i32 = arith.constant 0 : i32
    %c0_i32_0 = arith.constant 0 : i32
    %c0_i32_1 = arith.constant 0 : i32
    %c0_i32_2 = arith.constant 0 : i32
    return %arg0, %c0_i32, %c0_i32_0, %c0_i32_1 : i32, i32, i32, i32
  }
  func.func @transform_3(%arg0: i32, %arg1: i32) -> (i32, i32, i32, i32) {
    %c0_i32 = arith.constant 0 : i32
    %c0_i32_0 = arith.constant 0 : i32
    %c0_i32_1 = arith.constant 0 : i32
    return %arg0, %arg1, %c0_i32, %c0_i32_0 : i32, i32, i32, i32
  }
}

module attributes {stable_mosaic.version = 11 : i64} {
  func.func @_bnrelu_conv2_kernel(%arg0: i32, %arg1: i32, %arg2: memref<1x18x18x128xf32, #tpu.memory_space<vmem>>, %arg3: memref<1152x128xf32, #tpu.memory_space<vmem>>, %arg4: memref<1x128xf32, #tpu.memory_space<vmem>>, %arg5: memref<1x128xf32, #tpu.memory_space<vmem>>, %arg6: memref<1x16x16x128xf32, #tpu.memory_space<vmem>>, %arg7: memref<1x1x2x128xf32, #tpu.memory_space<vmem>>) attributes {dimension_semantics = [#tpu.dimension_semantics<parallel>, #tpu.dimension_semantics<parallel>], iteration_bounds = array<i64: 2, 1>, scalar_prefetch = 0 : i64, scratch_operands = 0 : i64, tpu.core_type = #tpu.core_type<tc>, window_params = [{transform_indices = @transform_0, window_bounds = array<i64: 1, 18, 18, 128>}, {pipeline_mode = #tpu.pipeline_mode<synchronous>, transform_indices = @transform_1, window_bounds = array<i64: 1152, 128>}, {pipeline_mode = #tpu.pipeline_mode<synchronous>, transform_indices = @transform_2, window_bounds = array<i64: 1, 128>}, {pipeline_mode = #tpu.pipeline_mode<synchronous>, transform_indices = @transform_3, window_bounds = array<i64: 1, 128>}, {transform_indices = @transform_4, window_bounds = array<i64: 1, 16, 16, 128>}, {transform_indices = @transform_5, window_bounds = array<i64: 1, 1, 2, 128>}]} {
    %c16_i32 = arith.constant 16 : i32
    %0 = arith.muli %arg1, %c16_i32 : i32
    %1 = tpu.assume_multiple %0, 16 : i32
    %c0 = arith.constant 0 : index
    %2 = arith.index_cast %1 : i32 to index
    %c0_0 = arith.constant 0 : index
    %c0_1 = arith.constant 0 : index
    %3 = vector.load %arg2[%c0, %2, %c0_0, %c0_1] : memref<1x18x18x128xf32, #tpu.memory_space<vmem>>, vector<1x18x18x128xf32>
    %4 = vector.shape_cast %3 : vector<1x18x18x128xf32> to vector<18x18x128xf32>
    %c0_2 = arith.constant 0 : index
    %c0_3 = arith.constant 0 : index
    %5 = vector.load %arg4[%c0_2, %c0_3] : memref<1x128xf32, #tpu.memory_space<vmem>>, vector<1x128xf32>
    %6 = vector.shape_cast %5 : vector<1x128xf32> to vector<1x1x128xf32>
    %7 = vector.broadcast %6 : vector<1x1x128xf32> to vector<18x18x128xf32>
    %8 = arith.mulf %4, %7 : vector<18x18x128xf32>
    %c0_4 = arith.constant 0 : index
    %c0_5 = arith.constant 0 : index
    %9 = vector.load %arg5[%c0_4, %c0_5] : memref<1x128xf32, #tpu.memory_space<vmem>>, vector<1x128xf32>
    %10 = vector.shape_cast %9 : vector<1x128xf32> to vector<1x1x128xf32>
    %11 = vector.broadcast %10 : vector<1x1x128xf32> to vector<18x18x128xf32>
    %12 = arith.addf %8, %11 : vector<18x18x128xf32>
    %cst = arith.constant 0.000000e+00 : f32
    %13 = vector.broadcast %cst : f32 to vector<18x18x128xf32>
    %14 = arith.maximumf %12, %13 : vector<18x18x128xf32>
    %15 = tpu.iota {dimensions = array<i32: 0>} : vector<18x18x1xi32>
    %16 = vector.broadcast %1 : i32 to vector<18x18x1xi32>
    %17 = arith.addi %15, %16 : vector<18x18x1xi32>
    %18 = tpu.iota {dimensions = array<i32: 1>} : vector<18x18x1xi32>
    %c1_i32 = arith.constant 1 : i32
    %19 = vector.broadcast %c1_i32 : i32 to vector<18x18x1xi32>
    %20 = arith.cmpi sge, %17, %19 : vector<18x18x1xi32>
    %c16_i32_6 = arith.constant 16 : i32
    %21 = vector.broadcast %c16_i32_6 : i32 to vector<18x18x1xi32>
    %22 = arith.cmpi sle, %17, %21 : vector<18x18x1xi32>
    %23 = arith.andi %20, %22 : vector<18x18x1xi1>
    %c1_i32_7 = arith.constant 1 : i32
    %24 = vector.broadcast %c1_i32_7 : i32 to vector<18x18x1xi32>
    %25 = arith.cmpi sge, %18, %24 : vector<18x18x1xi32>
    %26 = arith.andi %23, %25 : vector<18x18x1xi1>
    %c16_i32_8 = arith.constant 16 : i32
    %27 = vector.broadcast %c16_i32_8 : i32 to vector<18x18x1xi32>
    %28 = arith.cmpi sle, %18, %27 : vector<18x18x1xi32>
    %29 = arith.andi %26, %28 : vector<18x18x1xi1>
    %cst_9 = arith.constant 0.000000e+00 : f32
    %30 = vector.shape_cast %29 : vector<18x18x1xi1> to vector<18x18x1xi1>
    %31 = vector.broadcast %30 : vector<18x18x1xi1> to vector<18x18x128xi1>
    %32 = vector.broadcast %cst_9 : f32 to vector<18x18x128xf32>
    %33 = arith.select %31, %14, %32 : vector<18x18x128xi1>, vector<18x18x128xf32>
    %c0_10 = arith.constant 0 : index
    %c0_11 = arith.constant 0 : index
    %34 = vector.load %arg3[%c0_10, %c0_11] : memref<1152x128xf32, #tpu.memory_space<vmem>>, vector<1152x128xf32>
    %35 = vector.extract_strided_slice %33 {offsets = [0, 0, 0], sizes = [16, 18, 128], strides = [1, 1, 1]} : vector<18x18x128xf32> to vector<16x18x128xf32>
    %36 = vector.extract_strided_slice %35 {offsets = [0, 0, 0], sizes = [16, 16, 128], strides = [1, 1, 1]} : vector<16x18x128xf32> to vector<16x16x128xf32>
    %37 = vector.shape_cast %36 : vector<16x16x128xf32> to vector<256x128xf32>
    %38 = vector.extract_strided_slice %35 {offsets = [0, 1, 0], sizes = [16, 16, 128], strides = [1, 1, 1]} : vector<16x18x128xf32> to vector<16x16x128xf32>
    %39 = vector.shape_cast %38 : vector<16x16x128xf32> to vector<256x128xf32>
    %40 = vector.extract_strided_slice %35 {offsets = [0, 2, 0], sizes = [16, 16, 128], strides = [1, 1, 1]} : vector<16x18x128xf32> to vector<16x16x128xf32>
    %41 = vector.shape_cast %40 : vector<16x16x128xf32> to vector<256x128xf32>
    %42 = vector.extract_strided_slice %33 {offsets = [1, 0, 0], sizes = [16, 18, 128], strides = [1, 1, 1]} : vector<18x18x128xf32> to vector<16x18x128xf32>
    %43 = vector.extract_strided_slice %42 {offsets = [0, 0, 0], sizes = [16, 16, 128], strides = [1, 1, 1]} : vector<16x18x128xf32> to vector<16x16x128xf32>
    %44 = vector.shape_cast %43 : vector<16x16x128xf32> to vector<256x128xf32>
    %45 = vector.extract_strided_slice %42 {offsets = [0, 1, 0], sizes = [16, 16, 128], strides = [1, 1, 1]} : vector<16x18x128xf32> to vector<16x16x128xf32>
    %46 = vector.shape_cast %45 : vector<16x16x128xf32> to vector<256x128xf32>
    %47 = vector.extract_strided_slice %42 {offsets = [0, 2, 0], sizes = [16, 16, 128], strides = [1, 1, 1]} : vector<16x18x128xf32> to vector<16x16x128xf32>
    %48 = vector.shape_cast %47 : vector<16x16x128xf32> to vector<256x128xf32>
    %49 = vector.extract_strided_slice %33 {offsets = [2, 0, 0], sizes = [16, 18, 128], strides = [1, 1, 1]} : vector<18x18x128xf32> to vector<16x18x128xf32>
    %50 = vector.extract_strided_slice %49 {offsets = [0, 0, 0], sizes = [16, 16, 128], strides = [1, 1, 1]} : vector<16x18x128xf32> to vector<16x16x128xf32>
    %51 = vector.shape_cast %50 : vector<16x16x128xf32> to vector<256x128xf32>
    %52 = vector.extract_strided_slice %49 {offsets = [0, 1, 0], sizes = [16, 16, 128], strides = [1, 1, 1]} : vector<16x18x128xf32> to vector<16x16x128xf32>
    %53 = vector.shape_cast %52 : vector<16x16x128xf32> to vector<256x128xf32>
    %54 = vector.extract_strided_slice %49 {offsets = [0, 2, 0], sizes = [16, 16, 128], strides = [1, 1, 1]} : vector<16x18x128xf32> to vector<16x16x128xf32>
    %55 = vector.shape_cast %54 : vector<16x16x128xf32> to vector<256x128xf32>
    %56 = tpu.concatenate %37, %39, %41, %44, %46, %48, %51, %53, %55 in 1 : vector<256x128xf32>, vector<256x128xf32>, vector<256x128xf32>, vector<256x128xf32>, vector<256x128xf32>, vector<256x128xf32>, vector<256x128xf32>, vector<256x128xf32>, vector<256x128xf32> -> vector<256x1152xf32>
    %cst_12 = arith.constant dense<0.000000e+00> : vector<256x128xf32>
    %57 = tpu.matmul %56, %34, %cst_12 {dimension_numbers = #tpu.dot_dimension_numbers<[1], [0], [0], [1], [0, 0, 1, 1], [], []>} : vector<256x1152xf32>, vector<1152x128xf32>, vector<256x128xf32> -> vector<256x128xf32>
    %cst_13 = arith.constant dense<0.000000e+00> : vector<128xf32>
    %58 = vector.multi_reduction <add>, %57, %cst_13 [0] : vector<256x128xf32> to vector<128xf32>
    %59 = vector.shape_cast %58 : vector<128xf32> to vector<1x128xf32>
    %60 = arith.mulf %57, %57 : vector<256x128xf32>
    %cst_14 = arith.constant dense<0.000000e+00> : vector<128xf32>
    %61 = vector.multi_reduction <add>, %60, %cst_14 [0] : vector<256x128xf32> to vector<128xf32>
    %62 = vector.shape_cast %61 : vector<128xf32> to vector<1x128xf32>
    %63 = tpu.concatenate %59, %62 in 0 : vector<1x128xf32>, vector<1x128xf32> -> vector<2x128xf32>
    %64 = vector.shape_cast %63 : vector<2x128xf32> to vector<1x1x2x128xf32>
    %c0_15 = arith.constant 0 : index
    %c0_16 = arith.constant 0 : index
    %c0_17 = arith.constant 0 : index
    %c0_18 = arith.constant 0 : index
    %65 = vector.load %arg7[%c0_15, %c0_16, %c0_17, %c0_18] : memref<1x1x2x128xf32, #tpu.memory_space<vmem>>, vector<1x1x2x128xf32>
    tpu.vector_store %arg7[%c0_15, %c0_16, %c0_17, %c0_18], %64 {strides = array<i32>} : memref<1x1x2x128xf32, #tpu.memory_space<vmem>>, vector<1x1x2x128xf32>,
    %66 = vector.shape_cast %57 : vector<256x128xf32> to vector<1x16x16x128xf32>
    %c0_19 = arith.constant 0 : index
    %c0_20 = arith.constant 0 : index
    %c0_21 = arith.constant 0 : index
    %c0_22 = arith.constant 0 : index
    %67 = vector.load %arg6[%c0_19, %c0_20, %c0_21, %c0_22] : memref<1x16x16x128xf32, #tpu.memory_space<vmem>>, vector<1x16x16x128xf32>
    tpu.vector_store %arg6[%c0_19, %c0_20, %c0_21, %c0_22], %66 {strides = array<i32>} : memref<1x16x16x128xf32, #tpu.memory_space<vmem>>, vector<1x16x16x128xf32>,
    return
  }
  func.func @transform_0(%arg0: i32, %arg1: i32) -> (i32, i32, i32, i32) {
    %c0_i32 = arith.constant 0 : i32
    %c0_i32_0 = arith.constant 0 : i32
    %c0_i32_1 = arith.constant 0 : i32
    %c0_i32_2 = arith.constant 0 : i32
    return %arg0, %c0_i32, %c0_i32_0, %c0_i32_1 : i32, i32, i32, i32
  }
  func.func @transform_1(%arg0: i32, %arg1: i32) -> (i32, i32) {
    %c0_i32 = arith.constant 0 : i32
    %c0_i32_0 = arith.constant 0 : i32
    %c0_i32_1 = arith.constant 0 : i32
    return %c0_i32, %c0_i32_0 : i32, i32
  }
  func.func @transform_2(%arg0: i32, %arg1: i32) -> (i32, i32) {
    %c0_i32 = arith.constant 0 : i32
    %c0_i32_0 = arith.constant 0 : i32
    %c0_i32_1 = arith.constant 0 : i32
    return %c0_i32, %c0_i32_0 : i32, i32
  }
  func.func @transform_3(%arg0: i32, %arg1: i32) -> (i32, i32) {
    %c0_i32 = arith.constant 0 : i32
    %c0_i32_0 = arith.constant 0 : i32
    %c0_i32_1 = arith.constant 0 : i32
    return %c0_i32, %c0_i32_0 : i32, i32
  }
  func.func @transform_4(%arg0: i32, %arg1: i32) -> (i32, i32, i32, i32) {
    %c0_i32 = arith.constant 0 : i32
    %c0_i32_0 = arith.constant 0 : i32
    %c0_i32_1 = arith.constant 0 : i32
    return %arg0, %arg1, %c0_i32, %c0_i32_0 : i32, i32, i32, i32
  }
  func.func @transform_5(%arg0: i32, %arg1: i32) -> (i32, i32, i32, i32) {
    %c0_i32 = arith.constant 0 : i32
    %c0_i32_0 = arith.constant 0 : i32
    %c0_i32_1 = arith.constant 0 : i32
    return %arg0, %arg1, %c0_i32, %c0_i32_0 : i32, i32, i32, i32
  }
}

module attributes {stable_mosaic.version = 11 : i64} {
  func.func @_bn_residual_relu_kernel(%arg0: i32, %arg1: i32, %arg2: memref<1x16x16x128xf32, #tpu.memory_space<vmem>>, %arg3: memref<1x16x16x128xf32, #tpu.memory_space<vmem>>, %arg4: memref<1x128xf32, #tpu.memory_space<vmem>>, %arg5: memref<1x128xf32, #tpu.memory_space<vmem>>, %arg6: memref<1x16x16x128xf32, #tpu.memory_space<vmem>>) attributes {dimension_semantics = [#tpu.dimension_semantics<parallel>, #tpu.dimension_semantics<parallel>], iteration_bounds = array<i64: 2, 1>, scalar_prefetch = 0 : i64, scratch_operands = 0 : i64, tpu.core_type = #tpu.core_type<tc>, window_params = [{transform_indices = @transform_0, window_bounds = array<i64: 1, 16, 16, 128>}, {transform_indices = @transform_1, window_bounds = array<i64: 1, 16, 16, 128>}, {pipeline_mode = #tpu.pipeline_mode<synchronous>, transform_indices = @transform_2, window_bounds = array<i64: 1, 128>}, {pipeline_mode = #tpu.pipeline_mode<synchronous>, transform_indices = @transform_3, window_bounds = array<i64: 1, 128>}, {transform_indices = @transform_4, window_bounds = array<i64: 1, 16, 16, 128>}]} {
    %c0 = arith.constant 0 : index
    %c0_0 = arith.constant 0 : index
    %c0_1 = arith.constant 0 : index
    %c0_2 = arith.constant 0 : index
    %0 = vector.load %arg2[%c0, %c0_0, %c0_1, %c0_2] : memref<1x16x16x128xf32, #tpu.memory_space<vmem>>, vector<1x16x16x128xf32>
    %c0_3 = arith.constant 0 : index
    %c0_4 = arith.constant 0 : index
    %1 = vector.load %arg4[%c0_3, %c0_4] : memref<1x128xf32, #tpu.memory_space<vmem>>, vector<1x128xf32>
    %2 = vector.shape_cast %1 : vector<1x128xf32> to vector<1x1x1x128xf32>
    %3 = vector.broadcast %2 : vector<1x1x1x128xf32> to vector<1x16x16x128xf32>
    %4 = arith.mulf %0, %3 : vector<1x16x16x128xf32>
    %c0_5 = arith.constant 0 : index
    %c0_6 = arith.constant 0 : index
    %5 = vector.load %arg5[%c0_5, %c0_6] : memref<1x128xf32, #tpu.memory_space<vmem>>, vector<1x128xf32>
    %6 = vector.shape_cast %5 : vector<1x128xf32> to vector<1x1x1x128xf32>
    %7 = vector.broadcast %6 : vector<1x1x1x128xf32> to vector<1x16x16x128xf32>
    %8 = arith.addf %4, %7 : vector<1x16x16x128xf32>
    %c0_7 = arith.constant 0 : index
    %c0_8 = arith.constant 0 : index
    %c0_9 = arith.constant 0 : index
    %c0_10 = arith.constant 0 : index
    %9 = vector.load %arg3[%c0_7, %c0_8, %c0_9, %c0_10] : memref<1x16x16x128xf32, #tpu.memory_space<vmem>>, vector<1x16x16x128xf32>
    %10 = arith.addf %8, %9 : vector<1x16x16x128xf32>
    %cst = arith.constant 0.000000e+00 : f32
    %11 = vector.broadcast %cst : f32 to vector<1x16x16x128xf32>
    %12 = arith.maximumf %10, %11 : vector<1x16x16x128xf32>
    %c0_11 = arith.constant 0 : index
    %c0_12 = arith.constant 0 : index
    %c0_13 = arith.constant 0 : index
    %c0_14 = arith.constant 0 : index
    %13 = vector.load %arg6[%c0_11, %c0_12, %c0_13, %c0_14] : memref<1x16x16x128xf32, #tpu.memory_space<vmem>>, vector<1x16x16x128xf32>
    tpu.vector_store %arg6[%c0_11, %c0_12, %c0_13, %c0_14], %12 {strides = array<i32>} : memref<1x16x16x128xf32, #tpu.memory_space<vmem>>, vector<1x16x16x128xf32>,
    return
  }
  func.func @transform_0(%arg0: i32, %arg1: i32) -> (i32, i32, i32, i32) {
    %c0_i32 = arith.constant 0 : i32
    %c0_i32_0 = arith.constant 0 : i32
    %c0_i32_1 = arith.constant 0 : i32
    return %arg0, %arg1, %c0_i32, %c0_i32_0 : i32, i32, i32, i32
  }
  func.func @transform_1(%arg0: i32, %arg1: i32) -> (i32, i32, i32, i32) {
    %c0_i32 = arith.constant 0 : i32
    %c0_i32_0 = arith.constant 0 : i32
    %c0_i32_1 = arith.constant 0 : i32
    return %arg0, %arg1, %c0_i32, %c0_i32_0 : i32, i32, i32, i32
  }
  func.func @transform_2(%arg0: i32, %arg1: i32) -> (i32, i32) {
    %c0_i32 = arith.constant 0 : i32
    %c0_i32_0 = arith.constant 0 : i32
    %c0_i32_1 = arith.constant 0 : i32
    return %c0_i32, %c0_i32_0 : i32, i32
  }
  func.func @transform_3(%arg0: i32, %arg1: i32) -> (i32, i32) {
    %c0_i32 = arith.constant 0 : i32
    %c0_i32_0 = arith.constant 0 : i32
    %c0_i32_1 = arith.constant 0 : i32
    return %c0_i32, %c0_i32_0 : i32, i32
  }
  func.func @transform_4(%arg0: i32, %arg1: i32) -> (i32, i32, i32, i32) {
    %c0_i32 = arith.constant 0 : i32
    %c0_i32_0 = arith.constant 0 : i32
    %c0_i32_1 = arith.constant 0 : i32
    return %arg0, %arg1, %c0_i32, %c0_i32_0 : i32, i32, i32, i32
  }
}

</mosaic_0001>

<bundles_post_ra>
// kernel: basic_block.5
= control target key start
LH: loop header
LB: loop body
LE: loop exit
PB: predicated region body
PF: predicated region fallthrough
CT: control target
= control target key end

     0   :  { %s721_s15 = smov 0   ;;  %s723_s16 = smov 0   ;;  %s938_s0 = inlined_call_operand.vmem [shape: f32[2,16,16,128], index: 0, kind: input, shape index: {}]   ;;  %s939_s1 = inlined_call_operand.vmem [shape: f32[2,16,16,128], index: 1, kind: input, shape index: {}]   ;;  %s940_s2 = inlined_call_operand.vmem [shape: f32[1,128], index: 2, kind: input, shape index: {}]   ;;  %s941_s3 = inlined_call_operand.vmem [shape: f32[1,128], index: 3, kind: input, shape index: {}]   ;;  %s942_s4 = inlined_call_operand.vmem [shape: f32[2,16,16,128], index: 4, kind: output, shape index: {}]  }
   0x1   :  { %s725_s17 = smov 0  }
   0x2 LB: > { %s26_s18 = sadd.s32 1, %s690_s16  ;;  %p634_p0 = scmp.ge.s32.totalorder %s694_s17, 1  ;;  %s694_s17 = sphi %s725_s17, %s14_s17   ;;  %s690_s16 = sphi %s723_s16, %s944_s16   ;;  %s686_s15 = sphi %s721_s15, %s943_s15  }
   0x3   : > { %p28_p1 = scmp.ge.s32.totalorder %s26_s18, 2  ;;  %p202_p2 = scmp.lt.s32.totalorder %s694_s17, 3 }
   0x5   : > { %s946_s18 = smov (%p28_p1, %s26_s18), 0  ;;  %p203_p3 = pnand %p634_p0, %p202_p2 }
   0x6   : > { %p249_p4 = scmp.lt.s32.totalorder (!%p203_p3), %s686_s15, 1 }
   0x7   : > { %206 = sbr.rel (%p203_p3) target bundleno = 56 (0x38), region = 36 }
   0xc   : > { %s948_s15 = smov (!%p249_p4, %s686_s15), 1  ;;  %v742_v0 = vld [vmem:[%s940_s2] ss:$0 sm:$0xff] }
   0xd   : > { %s744_s21 = sshll.u32 %s948_s15, 8  ;;  %v761_v1 = vld [vmem:[%s941_s3] ss:$0 sm:$0xff] }
   0xe   : > { %s750_s24 = scalar_lea.vmem %s938_s0, %s744_s21  ;;  %s756_s27 = scalar_lea.vmem %s939_s1, %s744_s21 }
   0xf   : > { %v281_v2 = vld [vmem:[%s750_s24] sm:$0xff]  ;;  %v282_v3 = vld [vmem:[%s750_s24 + $0x8] sm:$0xff]  ;;  %v283_v7 = vld [vmem:[%s750_s24 + $0x10] sm:$0xff]  ;;  %s792_s6 = scalar_lea.vmem %s942_s4, %s744_s21 }
  0x10   : > { %v317_v4 = vmul.f32 %v742_v0, %v281_v2  ;;  %v385_v5 = vld [vmem:[%s756_s27] sm:$0xff]  ;;  %v318_v6 = vmul.f32 %v742_v0, %v282_v3  ;;  %v386_v8 = vld [vmem:[%s756_s27 + $0x8] sm:$0xff]  ;;  %v319_v9 = vmul.f32 %v742_v0, %v283_v7  ;;  %v284_v10 = vld [vmem:[%s750_s24 + $0x18] sm:$0xff] }
  0x11   : > { %v285_v11 = vld [vmem:[%s750_s24 + $0x20] sm:$0xff]  ;;  %v387_v14 = vld [vmem:[%s756_s27 + $0x10] sm:$0xff]  ;;  %v320_v15 = vmul.f32 %v742_v0, %v284_v10  ;;  %v388_v16 = vld [vmem:[%s756_s27 + $0x18] sm:$0xff] }
  0x12   : > { %v353_v12 = vadd.f32 %v761_v1, %v317_v4  ;;  %v354_v13 = vadd.f32 %v761_v1, %v318_v6  ;;  %v321_v17 = vmul.f32 %v742_v0, %v285_v11  ;;  %v286_v18 = vld [vmem:[%s750_s24 + $0x28] sm:$0xff]  ;;  %v355_v19 = vadd.f32 %v761_v1, %v319_v9  ;;  %v389_v20 = vld [vmem:[%s756_s27 + $0x20] sm:$0xff]  ;;  %v287_v22 = vld [vmem:[%s750_s24 + $0x30] sm:$0xff] }
  0x13   : > { %v322_v21 = vmul.f32 %v742_v0, %v286_v18  ;;  %v288_v23 = vld [vmem:[%s750_s24 + $0x38] sm:$0xff]  ;;  %v356_v26 = vadd.f32 %v761_v1, %v320_v15  ;;  %v390_v28 = vld [vmem:[%s756_s27 + $0x28] sm:$0xff]  ;;  %v323_v31 = vmul.f32 %v742_v0, %v287_v22  ;;  %v289_v33 = vld [vmem:[%s750_s24 + $0x40] sm:$0xff] }
  0x14   : > { %v417_v24 = vadd.f32 %v385_v5, %v353_v12  ;;  %v418_v25 = vadd.f32 %v386_v8, %v354_v13  ;;  %v357_v27 = vadd.f32 %v761_v1, %v321_v17  ;;  %v419_v29 = vadd.f32 %v387_v14, %v355_v19  ;;  %v290_v34 = vld [vmem:[%s750_s24 + $0x48] sm:$0xff]  ;;  %v391_v39 = vld [vmem:[%s756_s27 + $0x30] sm:$0xff]  ;;  %v392_v40 = vld [vmem:[%s756_s27 + $0x38] sm:$0xff] }
  0x15   : > { %v358_v30 = vadd.f32 %v761_v1, %v322_v21  ;;  %v324_v32 = vmul.f32 %v742_v0, %v288_v23  ;;  %v420_v37 = vadd.f32 %v388_v16, %v356_v26  ;;  %v291_v41 = vld [vmem:[%s750_s24 + $0x50] sm:$0xff]  ;;  %v359_v44 = vadd.f32 %v761_v1, %v323_v31  ;;  %v292_v46 = vld [vmem:[%s750_s24 + $0x58] sm:$0xff]  ;;  %v293_v47 = vld [vmem:[%s750_s24 + $0x60] sm:$0xff] }
  0x16   : > { %v449_v35 = vmax.f32 %v417_v24, 0.0  ;;  %v450_v36 = vmax.f32 %v418_v25, 0.0  ;;  %v421_v38 = vadd.f32 %v389_v20, %v357_v27  ;;  %v451_v42 = vmax.f32 %v419_v29, 0.0  ;;  %v294_v52 = vld [vmem:[%s750_s24 + $0x68] sm:$0xff]  ;;  %v393_v56 = vld [vmem:[%s756_s27 + $0x40] sm:$0xff]  ;;  %v395_v61 = vld [vmem:[%s756_s27 + $0x50] sm:$0xff] }
  0x17   : > { %v422_v43 = vadd.f32 %v390_v28, %v358_v30  ;;  %v360_v45 = vadd.f32 %v761_v1, %v324_v32  ;;  %v452_v48 = vmax.f32 %v420_v37, 0.0  ;;  %v325_v50 = vmul.f32 %v742_v0, %v289_v33  ;;  %v394_v57 = vld [vmem:[%s756_s27 + $0x48] sm:$0xff]  ;;  %v295_v2 = vld [vmem:[%s750_s24 + $0x70] sm:$0xff]  ;;  %v296_v3 = vld [vmem:[%s750_s24 + $0x78] sm:$0xff] }
  0x18   : > { %481 = vst [vmem:[%s792_s6] sm:$0xff] %v449_v35  ;;  %v453_v49 = vmax.f32 %v421_v38, 0.0  ;;  %v326_v51 = vmul.f32 %v742_v0, %v290_v34  ;;  %v423_v54 = vadd.f32 %v391_v39, %v359_v44  ;;  %v327_v58 = vmul.f32 %v742_v0, %v291_v41  ;;  %v396_v7 = vld [vmem:[%s756_s27 + $0x58] sm:$0xff]  ;;  %v397_v8 = vld [vmem:[%s756_s27 + $0x60] sm:$0xff]  ;;  %v398_v14 = vld [vmem:[%s756_s27 + $0x68] sm:$0xff] }
  0x19   : > { %482 = vst [vmem:[%s792_s6 + $0x8] sm:$0xff] %v450_v36  ;;  %v454_v53 = vmax.f32 %v422_v43, 0.0  ;;  %v424_v55 = vadd.f32 %v392_v40, %v360_v45  ;;  %v361_v59 = vadd.f32 %v761_v1, %v325_v50  ;;  %v328_v62 = vmul.f32 %v742_v0, %v292_v46  ;;  %v297_v19 = vld [vmem:[%s750_s24 + $0x80] sm:$0xff]  ;;  %v298_v20 = vld [vmem:[%s750_s24 + $0x88] sm:$0xff]  ;;  %v399_v25 = vld [vmem:[%s756_s27 + $0x70] sm:$0xff] }
  0x1a   : > { %483 = vst [vmem:[%s792_s6 + $0x10] sm:$0xff] %v451_v42  ;;  %v362_v60 = vadd.f32 %v761_v1, %v326_v51  ;;  %v329_v63 = vmul.f32 %v742_v0, %v293_v47  ;;  %v455_v4 = vmax.f32 %v423_v54, 0.0  ;;  %v363_v6 = vadd.f32 %v761_v1, %v327_v58  ;;  %v400_v26 = vld [vmem:[%s756_s27 + $0x78] sm:$0xff]  ;;  %v299_v27 = vld [vmem:[%s750_s24 + $0x90] sm:$0xff]  ;;  %v301_v33 = vld [vmem:[%s750_s24 + $0xa0] sm:$0xff] }
  0x1b   : > { %484 = vst [vmem:[%s792_s6 + $0x18] sm:$0xff] %v452_v48  ;;  %v456_v5 = vmax.f32 %v424_v55, 0.0  ;;  %v330_v9 = vmul.f32 %v742_v0, %v294_v52  ;;  %v425_v10 = vadd.f32 %v393_v56, %v361_v59  ;;  %v364_v12 = vadd.f32 %v761_v1, %v328_v62  ;;  %v300_v32 = vld [vmem:[%s750_s24 + $0x98] sm:$0xff]  ;;  %v302_v38 = vld [vmem:[%s750_s24 + $0xa8] sm:$0xff]  ;;  %v401_v42 = vld [vmem:[%s756_s27 + $0x80] sm:$0xff] }
  0x1c   : > { %485 = vst [vmem:[%s792_s6 + $0x20] sm:$0xff] %v453_v49  ;;  %v426_v11 = vadd.f32 %v394_v57, %v362_v60  ;;  %v365_v13 = vadd.f32 %v761_v1, %v329_v63  ;;  %v427_v15 = vadd.f32 %v395_v61, %v363_v6  ;;  %v331_v17 = vmul.f32 %v742_v0, %v295_v2  ;;  %v402_v43 = vld [vmem:[%s756_s27 + $0x88] sm:$0xff]  ;;  %v403_v47 = vld [vmem:[%s756_s27 + $0x90] sm:$0xff]  ;;  %v304_v51 = vld [vmem:[%s750_s24 + $0xb8] sm:$0xff] }
  0x1d   : > { %486 = vst [vmem:[%s792_s6 + $0x28] sm:$0xff] %v454_v53  ;;  %v366_v16 = vadd.f32 %v761_v1, %v330_v9  ;;  %v332_v18 = vmul.f32 %v742_v0, %v296_v3  ;;  %v457_v21 = vmax.f32 %v425_v10, 0.0  ;;  %v428_v23 = vadd.f32 %v396_v7, %v364_v12  ;;  %v303_v50 = vld [vmem:[%s750_s24 + $0xb0] sm:$0xff]  ;;  %v404_v55 = vld [vmem:[%s756_s27 + $0x98] sm:$0xff]  ;;  %v405_v56 = vld [vmem:[%s756_s27 + $0xa0] sm:$0xff] }
  0x1e   : > { %487 = vst [vmem:[%s792_s6 + $0x30] sm:$0xff] %v455_v4  ;;  %v458_v22 = vmax.f32 %v426_v11, 0.0  ;;  %v429_v24 = vadd.f32 %v397_v8, %v365_v13  ;;  %v459_v28 = vmax.f32 %v427_v15, 0.0  ;;  %v367_v30 = vadd.f32 %v761_v1, %v331_v17  ;;  %v406_v62 = vld [vmem:[%s756_s27 + $0xa8] sm:$0xff]  ;;  %v407_v11 = vld [vmem:[%s756_s27 + $0xb0] sm:$0xff]  ;;  %v408_v12 = vld [vmem:[%s756_s27 + $0xb8] sm:$0xff] }
  0x1f   : > { %488 = vst [vmem:[%s792_s6 + $0x38] sm:$0xff] %v456_v5  ;;  %v430_v29 = vadd.f32 %v398_v14, %v366_v16  ;;  %v368_v31 = vadd.f32 %v761_v1, %v332_v18  ;;  %v460_v34 = vmax.f32 %v428_v23, 0.0  ;;  %v333_v36 = vmul.f32 %v742_v0, %v297_v19  ;;  %v305_v5 = vld [vmem:[%s750_s24 + $0xc0] sm:$0xff]  ;;  %v306_v6 = vld [vmem:[%s750_s24 + $0xc8] sm:$0xff]  ;;  %v307_v13 = vld [vmem:[%s750_s24 + $0xd0] sm:$0xff] }
  0x20   : > { %489 = vst [vmem:[%s792_s6 + $0x40] sm:$0xff] %v457_v21  ;;  %v461_v35 = vmax.f32 %v429_v24, 0.0  ;;  %v334_v37 = vmul.f32 %v742_v0, %v298_v20  ;;  %v431_v40 = vadd.f32 %v399_v25, %v367_v30  ;;  %v335_v44 = vmul.f32 %v742_v0, %v299_v27  ;;  %v308_v18 = vld [vmem:[%s750_s24 + $0xd8] sm:$0xff]  ;;  %v309_v19 = vld [vmem:[%s750_s24 + $0xe0] sm:$0xff]  ;;  %v310_v24 = vld [vmem:[%s750_s24 + $0xe8] sm:$0xff] }
  0x21   : > { %490 = vst [vmem:[%s792_s6 + $0x48] sm:$0xff] %v458_v22  ;;  %v462_v39 = vmax.f32 %v430_v29, 0.0  ;;  %v432_v41 = vadd.f32 %v400_v26, %v368_v31  ;;  %v369_v45 = vadd.f32 %v761_v1, %v333_v36  ;;  %v336_v48 = vmul.f32 %v742_v0, %v300_v32  ;;  %v410_v29 = vld [vmem:[%s756_s27 + $0xc8] sm:$0xff]  ;;  %v311_v36 = vld [vmem:[%s750_s24 + $0xf0] sm:$0xff] }
  0x22   : > { %491 = vst [vmem:[%s792_s6 + $0x50] sm:$0xff] %v459_v28  ;;  %v370_v46 = vadd.f32 %v761_v1, %v334_v37  ;;  %v337_v49 = vmul.f32 %v742_v0, %v301_v33  ;;  %v463_v52 = vmax.f32 %v431_v40, 0.0  ;;  %v371_v54 = vadd.f32 %v761_v1, %v335_v44  ;;  %v409_v28 = vld [vmem:[%s756_s27 + $0xc0] sm:$0xff]  ;;  %v411_v33 = vld [vmem:[%s756_s27 + $0xd0] sm:$0xff]  ;;  %v312_v37 = vld [vmem:[%s750_s24 + $0xf8] sm:$0xff] }
  0x23   : > { %492 = vst [vmem:[%s792_s6 + $0x58] sm:$0xff] %v460_v34  ;;  %v464_v53 = vmax.f32 %v432_v41, 0.0  ;;  %v338_v57 = vmul.f32 %v742_v0, %v302_v38  ;;  %v433_v58 = vadd.f32 %v401_v42, %v369_v45  ;;  %v372_v60 = vadd.f32 %v761_v1, %v336_v48  ;;  %v412_v41 = vld [vmem:[%s756_s27 + $0xd8] sm:$0xff]  ;;  %v413_v42 = vld [vmem:[%s756_s27 + $0xe0] sm:$0xff]  ;;  %v414_v48 = vld [vmem:[%s756_s27 + $0xe8] sm:$0xff] }
  0x24   : > { %493 = vst [vmem:[%s792_s6 + $0x60] sm:$0xff] %v461_v35  ;;  %v434_v59 = vadd.f32 %v402_v43, %v370_v46  ;;  %v373_v61 = vadd.f32 %v761_v1, %v337_v49  ;;  %v435_v63 = vadd.f32 %v403_v47, %v371_v54  ;;  %v339_v3 = vmul.f32 %v742_v0, %v303_v50 }
  0x25   : > { %494 = vst [vmem:[%s792_s6 + $0x68] sm:$0xff] %v462_v39  ;;  %v374_v2 = vadd.f32 %v761_v1, %v338_v57  ;;  %v340_v4 = vmul.f32 %v742_v0, %v304_v51  ;;  %v465_v7 = vmax.f32 %v433_v58, 0.0  ;;  %v436_v9 = vadd.f32 %v404_v55, %v372_v60  ;;  %v415_v57 = vld [vmem:[%s756_s27 + $0xf0] sm:$0xff]  ;;  %v416_v58 = vld [vmem:[%s756_s27 + $0xf8] sm:$0xff] }
  0x26   : > { %495 = vst [vmem:[%s792_s6 + $0x70] sm:$0xff] %v463_v52  ;;  %v466_v8 = vmax.f32 %v434_v59, 0.0  ;;  %v437_v10 = vadd.f32 %v405_v56, %v373_v61  ;;  %v467_v14 = vmax.f32 %v435_v63, 0.0  ;;  %v375_v16 = vadd.f32 %v761_v1, %v339_v3 }
  0x27   : > { %496 = vst [vmem:[%s792_s6 + $0x78] sm:$0xff] %v464_v53  ;;  %v438_v15 = vadd.f32 %v406_v62, %v374_v2  ;;  %v376_v17 = vadd.f32 %v761_v1, %v340_v4  ;;  %v468_v20 = vmax.f32 %v436_v9, 0.0  ;;  %v341_v22 = vmul.f32 %v742_v0, %v305_v5 }
  0x28   : > { %497 = vst [vmem:[%s792_s6 + $0x80] sm:$0xff] %v465_v7  ;;  %v469_v21 = vmax.f32 %v437_v10, 0.0  ;;  %v342_v23 = vmul.f32 %v742_v0, %v306_v6  ;;  %v439_v26 = vadd.f32 %v407_v11, %v375_v16  ;;  %v343_v30 = vmul.f32 %v742_v0, %v307_v13 }
  0x29   : > { %498 = vst [vmem:[%s792_s6 + $0x88] sm:$0xff] %v466_v8  ;;  %v470_v25 = vmax.f32 %v438_v15, 0.0  ;;  %v440_v27 = vadd.f32 %v408_v12, %v376_v17  ;;  %v377_v31 = vadd.f32 %v761_v1, %v341_v22  ;;  %v344_v34 = vmul.f32 %v742_v0, %v308_v18 }
  0x2a   : > { %499 = vst [vmem:[%s792_s6 + $0x90] sm:$0xff] %v467_v14  ;;  %v378_v32 = vadd.f32 %v761_v1, %v342_v23  ;;  %v345_v35 = vmul.f32 %v742_v0, %v309_v19  ;;  %v471_v38 = vmax.f32 %v439_v26, 0.0  ;;  %v379_v40 = vadd.f32 %v761_v1, %v343_v30 }
  0x2b   : > { %500 = vst [vmem:[%s792_s6 + $0x98] sm:$0xff] %v468_v20  ;;  %v472_v39 = vmax.f32 %v440_v27, 0.0  ;;  %v346_v43 = vmul.f32 %v742_v0, %v310_v24  ;;  %v441_v44 = vadd.f32 %v409_v28, %v377_v31  ;;  %v380_v46 = vadd.f32 %v761_v1, %v344_v34 }
  0x2c   : > { %501 = vst [vmem:[%s792_s6 + $0xa0] sm:$0xff] %v469_v21  ;;  %v442_v45 = vadd.f32 %v410_v29, %v378_v32  ;;  %v381_v47 = vadd.f32 %v761_v1, %v345_v35  ;;  %v443_v49 = vadd.f32 %v411_v33, %v379_v40  ;;  %v347_v51 = vmul.f32 %v742_v0, %v311_v36 }
  0x2d   : > { %502 = vst [vmem:[%s792_s6 + $0xa8] sm:$0xff] %v470_v25  ;;  %v382_v50 = vadd.f32 %v761_v1, %v346_v43  ;;  %v348_v52 = vmul.f32 %v742_v0, %v312_v37  ;;  %v473_v53 = vmax.f32 %v441_v44, 0.0  ;;  %v444_v55 = vadd.f32 %v412_v41, %v380_v46 }
  0x2e   : > { %503 = vst [vmem:[%s792_s6 + $0xb0] sm:$0xff] %v471_v38  ;;  %v474_v54 = vmax.f32 %v442_v45, 0.0  ;;  %v445_v56 = vadd.f32 %v413_v42, %v381_v47  ;;  %v475_v59 = vmax.f32 %v443_v49, 0.0  ;;  %v383_v61 = vadd.f32 %v761_v1, %v347_v51 }
  0x2f   : > { %504 = vst [vmem:[%s792_s6 + $0xb8] sm:$0xff] %v472_v39  ;;  %v446_v60 = vadd.f32 %v414_v48, %v382_v50  ;;  %v384_v0 = vadd.f32 %v761_v1, %v348_v52  ;;  %v476_v62 = vmax.f32 %v444_v55, 0.0 }
  0x30   : > { %505 = vst [vmem:[%s792_s6 + $0xc0] sm:$0xff] %v473_v53  ;;  %v477_v63 = vmax.f32 %v445_v56, 0.0  ;;  %v447_v3 = vadd.f32 %v415_v57, %v383_v61 }
  0x31   : > { %506 = vst [vmem:[%s792_s6 + $0xc8] sm:$0xff] %v474_v54  ;;  %v478_v2 = vmax.f32 %v446_v60, 0.0  ;;  %v448_v4 = vadd.f32 %v416_v58, %v384_v0 }
  0x32   : > { %507 = vst [vmem:[%s792_s6 + $0xd0] sm:$0xff] %v475_v59  ;;  %v479_v5 = vmax.f32 %v447_v3, 0.0 }
  0x33   : > { %508 = vst [vmem:[%s792_s6 + $0xd8] sm:$0xff] %v476_v62  ;;  %v480_v6 = vmax.f32 %v448_v4, 0.0 }
  0x34   : > { %509 = vst [vmem:[%s792_s6 + $0xe0] sm:$0xff] %v477_v63 }
  0x35   : > { %510 = vst [vmem:[%s792_s6 + $0xe8] sm:$0xff] %v478_v2 }
  0x36   : > { %511 = vst [vmem:[%s792_s6 + $0xf0] sm:$0xff] %v479_v5 }
  0x37   : > { %512 = vst [vmem:[%s792_s6 + $0xf8] sm:$0xff] %v480_v6 }
  0x38 PF: > { %s14_s17 = sadd.s32 1, %s694_s17   ;;  %s943_s15 = smov %s690_s16 }
  0x39   : > { %p11_p5 = scmp.ge.s32.totalorder %s14_s17, 4   ;;  %s944_s16 = smov %s946_s18 }
  0x3b   :  { %13 = sbr.rel (!%p11_p5) target bundleno = 2 (0x2), region = 69 }

// kernel: basic_block.3
= control target key start
LH: loop header
LB: loop body
LE: loop exit
PB: predicated region body
PF: predicated region fallthrough
CT: control target
= control target key end

     0   :  { %s2230_s12 = smov 0   ;;  %s2232_s13 = smov 0   ;;  %s3702_s0 = inlined_call_operand.vmem [shape: f32[2,18,18,128], index: 0, kind: input, shape index: {}]   ;;  %s3703_s1 = inlined_call_operand.vmem [shape: f32[1152,128], index: 1, kind: input, shape index: {}]   ;;  %s3704_s2 = inlined_call_operand.vmem [shape: f32[2,18,18,128], index: 2, kind: output, shape index: {0}]   ;;  %s3705_s3 = inlined_call_operand.vmem [shape: f32[2,1,2,128], index: 3, kind: output, shape index: {1}]  }
   0x1   :  { %s2234_s14 = smov 0  }
   0x2 LB: > { %s26_s15 = sadd.s32 1, %s2203_s13  ;;  %p2044_p0 = scmp.ge.s32.totalorder %s2207_s14, 1  ;;  %s2207_s14 = sphi %s2234_s14, %s14_s14   ;;  %s2203_s13 = sphi %s2232_s13, %s3848_s13   ;;  %s2199_s12 = sphi %s2230_s12, %s3847_s12  }
   0x3   : > { %p28_p1 = scmp.ge.s32.totalorder %s26_s15, 2  ;;  %p154_p2 = scmp.lt.s32.totalorder %s2207_s14, 3 }
   0x5   : > { %s3850_s15 = smov (%p28_p1, %s26_s15), 0  ;;  %p155_p3 = pnand %p2044_p0, %p154_p2 }
   0x7   : > { %158 = sbr.rel (%p155_p3) target bundleno = 768 (0x300), region = 28 }
   0xc   : > { %v274_v0 = vld [vmem:[%s3703_s1 + $0x78] sm:$0xff]  ;;  %v273_v1 = vld [vmem:[%s3703_s1 + $0x70] sm:$0xff]  ;;  %v272_v2 = vld [vmem:[%s3703_s1 + $0x68] sm:$0xff]  ;;  %p185_p4 = scmp.lt.s32.totalorder %s2199_s12, 1  ;;  %vm451_vm0 = vcmask 1046528   ;;  %vm564_vm1 = vcmask 1045504  }
   0xd   : > { %2082 = vmatpush.msra.mxu1 %v274_v0  ;;  %2083 = vmatpush.msra.mxu2 %v274_v0  ;;  %v271_v3 = vld [vmem:[%s3703_s1 + $0x60] sm:$0xff]  ;;  %v270_v4 = vld [vmem:[%s3703_s1 + $0x58] sm:$0xff]  ;;  %v269_v5 = vld [vmem:[%s3703_s1 + $0x50] sm:$0xff]  ;;  %vm1834_vm2 = vcmask 1040384  }
   0xe   : > { %2084 = vmatpush.msra.mxu3 %v274_v0  ;;  %711 = vmatpush.msra.mxu0 %v274_v0  ;;  %v268_v6 = vld [vmem:[%s3703_s1 + $0x48] sm:$0xff]  ;;  %v267_v7 = vld [vmem:[%s3703_s1 + $0x40] sm:$0xff]  ;;  %v266_v8 = vld [vmem:[%s3703_s1 + $0x38] sm:$0xff]  ;;  %s3852_s12 = smov (!%p185_p4, %s2199_s12), 1 }
   0xf   : > { %2085 = vmatpush.msra.mxu1 %v273_v1  ;;  %2086 = vmatpush.msra.mxu2 %v273_v1  ;;  %v265_v9 = vld [vmem:[%s3703_s1 + $0x30] sm:$0xff]  ;;  %v264_v10 = vld [vmem:[%s3703_s1 + $0x28] sm:$0xff]  ;;  %v263_v11 = vld [vmem:[%s3703_s1 + $0x20] sm:$0xff]  ;;  %s2130_s19 = smul.u32 432, %s3852_s12 }
  0x10   : > { %2087 = vmatpush.msra.mxu3 %v273_v1  ;;  %712 = vmatpush.msra.mxu0 %v273_v1  ;;  %v262_v12 = vld [vmem:[%s3703_s1 + $0x18] sm:$0xff]  ;;  %v261_v13 = vld [vmem:[%s3703_s1 + $0x10] sm:$0xff]  ;;  %v260_v14 = vld [vmem:[%s3703_s1 + $0x8] sm:$0xff] }
  0x11   : > { %2088 = vmatpush.msra.mxu1 %v272_v2  ;;  %2089 = vmatpush.msra.mxu2 %v272_v2  ;;  %s2305_s26 = scalar_lea.vmem %s3702_s0, %s2130_s19  ;;  %v259_v15 = vld [vmem:[%s3703_s1] sm:$0xff]  ;;  %v306_v18 = vld [vmem:[%s3703_s1 + $0x178] sm:$0xff]  ;;  %v305_v22 = vld [vmem:[%s3703_s1 + $0x170] sm:$0xff]  ;;  %s3425_s8 = scalar_lea.vmem %s3704_s2, %s2130_s19 }
  0x12   : > { %2090 = vmatpush.msra.mxu3 %v272_v2  ;;  %713 = vmatpush.msra.mxu0 %v272_v2  ;;  %v2311_v16 = vld [vmem:[%s2305_s26 + $0x60] sm:$0xff]  ;;  %v290_v20 = vld [vmem:[%s3703_s1 + $0xf8] sm:$0xff]  ;;  %v289_v23 = vld [vmem:[%s3703_s1 + $0xf0] sm:$0xff]  ;;  %s2047_s19 = sshll.u32 %s3852_s12, 1 }
  0x13   : > { %2091 = vmatpush.msra.mxu1 %v271_v3  ;;  %2092 = vmatpush.msra.mxu2 %v271_v3  ;;  %v2314_v17 = vld [vmem:[%s2305_s26 + $0xc0] sm:$0xff]  ;;  %v322_v21 = vld [vmem:[%s3703_s1 + $0x1f8] sm:$0xff]  ;;  %v321_v24 = vld [vmem:[%s3703_s1 + $0x1f0] sm:$0xff]  ;;  %s201_s10 = scalar_lea.vmem %s3705_s3, %s2047_s19 }
  0x14   : > { %2093 = vmatpush.msra.mxu3 %v271_v3  ;;  %714 = vmatpush.msra.mxu0 %v271_v3  ;;  %v241_v19 = vld [vmem:[%s2305_s26 + $0x120] sm:$0xff]  ;;  %v304_v25 = vld [vmem:[%s3703_s1 + $0x168] sm:$0xff]  ;;  %v338_v29 = vld [vmem:[%s3703_s1 + $0x278] sm:$0xff] }
  0x15   : > { %2094 = vmatpush.msra.mxu1 %v270_v4  ;;  %2095 = vmatpush.msra.mxu2 %v270_v4  ;;  %v2341_v26 = vld [vmem:[%s2305_s26] sm:$0xff]  ;;  %v288_v27 = vld [vmem:[%s3703_s1 + $0xe8] sm:$0xff]  ;;  %v337_v35 = vld [vmem:[%s3703_s1 + $0x270] sm:$0xff] }
  0x16   : > { %2096 = vmatpush.msra.mxu3 %v270_v4  ;;  %715 = vmatpush.msra.mxu0 %v270_v4  ;;  %v320_v28 = vld [vmem:[%s3703_s1 + $0x1e8] sm:$0xff]  ;;  %v303_v32 = vld [vmem:[%s3703_s1 + $0x160] sm:$0xff]  ;;  %v302_v37 = vld [vmem:[%s3703_s1 + $0x158] sm:$0xff] }
  0x17   : > { %2097 = vmatpush.msra.mxu1 %v269_v5  ;;  %2098 = vmatpush.msra.mxu2 %v269_v5  ;;  %v2353_v30 = vld [vmem:[%s2305_s26 + $0x68] sm:$0xff]  ;;  %v319_v33 = vld [vmem:[%s3703_s1 + $0x1e0] sm:$0xff]  ;;  %v318_v38 = vld [vmem:[%s3703_s1 + $0x1d8] sm:$0xff] }
  0x18   : > { %2099 = vmatpush.msra.mxu3 %v269_v5  ;;  %716 = vmatpush.msra.mxu0 %v269_v5  ;;  %v2356_v31 = vld [vmem:[%s2305_s26 + $0xc8] sm:$0xff]  ;;  %v287_v36 = vld [vmem:[%s3703_s1 + $0xe0] sm:$0xff]  ;;  %v286_v40 = vld [vmem:[%s3703_s1 + $0xd8] sm:$0xff] }
  0x19   : > { %2100 = vmatpush.msra.mxu1 %v268_v6  ;;  %2101 = vmatpush.msra.mxu2 %v268_v6  ;;  %v242_v34 = vld [vmem:[%s2305_s26 + $0x128] sm:$0xff]  ;;  %v301_v41 = vld [vmem:[%s3703_s1 + $0x150] sm:$0xff]  ;;  %v335_v44 = vld [vmem:[%s3703_s1 + $0x260] sm:$0xff] }
  0x1a   : > { %2102 = vmatpush.msra.mxu3 %v268_v6  ;;  %717 = vmatpush.msra.mxu0 %v268_v6  ;;  %v336_v39 = vld [vmem:[%s3703_s1 + $0x268] sm:$0xff]  ;;  %v317_v43 = vld [vmem:[%s3703_s1 + $0x1d0] sm:$0xff]  ;;  %v2402_v46 = vld [vmem:[%s2305_s26 + $0x78] sm:$0xff] }
  0x1b   : > { %2103 = vmatpush.msra.mxu1 %v267_v7  ;;  %2104 = vmatpush.msra.mxu2 %v267_v7  ;;  %v2390_v42 = vld [vmem:[%s2305_s26 + $0x8] sm:$0xff]  ;;  %v285_v45 = vld [vmem:[%s3703_s1 + $0xd0] sm:$0xff]  ;;  %v2405_v47 = vld [vmem:[%s2305_s26 + $0xd8] sm:$0xff] }
  0x1c   : > { %2105 = vmatpush.msra.mxu3 %v267_v7  ;;  %718 = vmatpush.msra.mxu0 %v267_v7  ;;  %v300_v48 = vld [vmem:[%s3703_s1 + $0x148] sm:$0xff]  ;;  %v244_v50 = vld [vmem:[%s2305_s26 + $0x138] sm:$0xff]  ;;  %v299_v53 = vld [vmem:[%s3703_s1 + $0x140] sm:$0xff] }
  0x1d   : > { %2106 = vmatpush.msra.mxu1 %v266_v8  ;;  %2107 = vmatpush.msra.mxu2 %v266_v8  ;;  %v316_v49 = vld [vmem:[%s3703_s1 + $0x1c8] sm:$0xff]  ;;  %v334_v51 = vld [vmem:[%s3703_s1 + $0x258] sm:$0xff]  ;;  %v315_v54 = vld [vmem:[%s3703_s1 + $0x1c0] sm:$0xff] }
  0x1e   : > { %2108 = vmatpush.msra.mxu3 %v266_v8  ;;  %719 = vmatpush.msra.mxu0 %v266_v8  ;;  %v284_v52 = vld [vmem:[%s3703_s1 + $0xc8] sm:$0xff]  ;;  %v333_v55 = vld [vmem:[%s3703_s1 + $0x250] sm:$0xff]  ;;  %v283_v56 = vld [vmem:[%s3703_s1 + $0xc0] sm:$0xff] }
  0x1f   : > { %2109 = vmatpush.msra.mxu1 %v265_v9  ;;  %2110 = vmatpush.msra.mxu2 %v265_v9  ;;  %v298_v57 = vld [vmem:[%s3703_s1 + $0x138] sm:$0xff]  ;;  %v332_v60 = vld [vmem:[%s3703_s1 + $0x248] sm:$0xff]  ;;  %v2451_v62 = vld [vmem:[%s2305_s26 + $0x80] sm:$0xff] }
  0x20   : > { %2111 = vmatpush.msra.mxu3 %v265_v9  ;;  %720 = vmatpush.msra.mxu0 %v265_v9  ;;  %v2439_v58 = vld [vmem:[%s2305_s26 + $0x18] sm:$0xff]  ;;  %v2454_v63 = vld [vmem:[%s2305_s26 + $0xe0] sm:$0xff]  ;;  %v297_v0 = vld [vmem:[%s3703_s1 + $0x130] sm:$0xff] }
  0x21   : > { %2112 = vmatpush.msra.mxu1 %v264_v10  ;;  %2113 = vmatpush.msra.mxu2 %v264_v10  ;;  %v314_v59 = vld [vmem:[%s3703_s1 + $0x1b8] sm:$0xff]  ;;  %v313_v1 = vld [vmem:[%s3703_s1 + $0x1b0] sm:$0xff]  ;;  %v245_v2 = vld [vmem:[%s2305_s26 + $0x140] sm:$0xff] }
  0x22   : > { %2114 = vmatpush.msra.mxu3 %v264_v10  ;;  %721 = vmatpush.msra.mxu0 %v264_v10  ;;  %v282_v61 = vld [vmem:[%s3703_s1 + $0xb8] sm:$0xff]  ;;  %v331_v3 = vld [vmem:[%s3703_s1 + $0x240] sm:$0xff]  ;;  %v281_v4 = vld [vmem:[%s3703_s1 + $0xb0] sm:$0xff] }
  0x23   : > { %2115 = vmatpush.msra.mxu1 %v263_v11  ;;  %2116 = vmatpush.msra.mxu2 %v263_v11  ;;  %v296_v5 = vld [vmem:[%s3703_s1 + $0x128] sm:$0xff]  ;;  %v330_v7 = vld [vmem:[%s3703_s1 + $0x238] sm:$0xff]  ;;  %v295_v9 = vld [vmem:[%s3703_s1 + $0x120] sm:$0xff] }
  0x24   : > { %2117 = vmatpush.msra.mxu3 %v263_v11  ;;  %722 = vmatpush.msra.mxu0 %v263_v11  ;;  %v312_v6 = vld [vmem:[%s3703_s1 + $0x1a8] sm:$0xff]  ;;  %v2488_v10 = vld [vmem:[%s2305_s26 + $0x20] sm:$0xff] }
  0x25   : > { %2118 = vmatpush.msra.mxu1 %v262_v12  ;;  %2119 = vmatpush.msra.mxu2 %v262_v12  ;;  %v280_v8 = vld [vmem:[%s3703_s1 + $0xa8] sm:$0xff]  ;;  %v311_v11 = vld [vmem:[%s3703_s1 + $0x1a0] sm:$0xff] }
  0x26   : > { %2120 = vmatpush.msra.mxu3 %v262_v12  ;;  %723 = vmatpush.msra.mxu0 %v262_v12  ;;  %v329_v12 = vld [vmem:[%s3703_s1 + $0x230] sm:$0xff] }
  0x27   : > { %2121 = vmatpush.msra.mxu1 %v261_v13  ;;  %2122 = vmatpush.msra.mxu2 %v261_v13 }
  0x28   : > { %2123 = vmatpush.msra.mxu3 %v261_v13  ;;  %724 = vmatpush.msra.mxu0 %v261_v13  ;;  %v279_v13 = vld [vmem:[%s3703_s1 + $0xa0] sm:$0xff] }
  0x29   : > { %2124 = vmatpush.msra.mxu1 %v260_v14  ;;  %2125 = vmatpush.msra.mxu2 %v260_v14 }
  0x2a   : > { %2126 = vmatpush.msra.mxu3 %v260_v14  ;;  %725 = vmatpush.msra.mxu0 %v260_v14  ;;  %v2500_v14 = vld [vmem:[%s2305_s26 + $0x90] sm:$0xff] }
  0x2b   : > { %2127 = vmatpush.msra.mxu1 %v259_v15  ;;  %2128 = vmatpush.msra.mxu2 %v259_v15 }
  0x2c   : > { %751 = vmatmul.f32.vlgmr.msra.gmra.mxu1 %v2311_v16  ;;  %775 = vmatmul.f32.vlgmr.msra.gmra.mxu2 %v2314_v17 }
  0x2d   : > { %937 = vmatpush.msrb.mxu2 %v306_v18  ;;  %2129 = vmatpush.msra.mxu3 %v259_v15  ;;  %v294_v18 = vld [vmem:[%s3703_s1 + $0x118] sm:$0xff] }
  0x2e   : > { %799 = vmatmul.f32.vlgmr.msra.gmra.mxu3 %v241_v19  ;;  %824 = vmatpush.msrb.mxu1 %v290_v20  ;;  %v310_v19 = vld [vmem:[%s3703_s1 + $0x198] sm:$0xff]  ;;  %v247_v20 = vld [vmem:[%s2305_s26 + $0x150] sm:$0xff] }
  0x2f   : > { %1050 = vmatpush.msrb.mxu3 %v322_v21  ;;  %938 = vmatpush.msrb.mxu2 %v305_v22  ;;  %v328_v21 = vld [vmem:[%s3703_s1 + $0x228] sm:$0xff]  ;;  %v278_v22 = vld [vmem:[%s3703_s1 + $0x98] sm:$0xff] }
  0x30   : > { %825 = vmatpush.msrb.mxu1 %v289_v23  ;;  %726 = vmatpush.msra.mxu0 %v259_v15  ;;  %v2503_v15 = vld [vmem:[%s2305_s26 + $0xf0] sm:$0xff] }
  0x31   : > { %1051 = vmatpush.msrb.mxu3 %v321_v24  ;;  %939 = vmatpush.msrb.mxu2 %v304_v25  ;;  %v293_v23 = vld [vmem:[%s3703_s1 + $0x110] sm:$0xff]  ;;  %v327_v25 = vld [vmem:[%s3703_s1 + $0x220] sm:$0xff] }
  0x32   : > { %727 = vmatmul.f32.vlgmr.msra.gmra.mxu0 %v2341_v26  ;;  %826 = vmatpush.msrb.mxu1 %v288_v27  ;;  %v309_v24 = vld [vmem:[%s3703_s1 + $0x190] sm:$0xff] }
  0x33   : > { %1052 = vmatpush.msrb.mxu3 %v320_v28  ;;  %1163 = vmatpush.msrb.mxu0 %v338_v29  ;;  %v277_v27 = vld [vmem:[%s3703_s1 + $0x90] sm:$0xff]  ;;  %v292_v28 = vld [vmem:[%s3703_s1 + $0x108] sm:$0xff] }
  0x34   : > { %754 = vmatmul.f32.gmra.mxu1 %v2353_v30  ;;  %778 = vmatmul.f32.gmra.mxu2 %v2356_v31  ;;  %v2537_v29 = vld [vmem:[%s2305_s26 + $0x30] sm:$0xff] }
  0x35   : > { %940 = vmatpush.msrb.mxu2 %v303_v32  ;;  %1053 = vmatpush.msrb.mxu3 %v319_v33  ;;  %v308_v32 = vld [vmem:[%s3703_s1 + $0x188] sm:$0xff]  ;;  %v326_v33 = vld [vmem:[%s3703_s1 + $0x218] sm:$0xff] }
  0x36   : > { %802 = vmatmul.f32.gmra.mxu3 %v242_v34  ;;  %1164 = vmatpush.msrb.mxu0 %v337_v35  ;;  %v276_v34 = vld [vmem:[%s3703_s1 + $0x88] sm:$0xff]  ;;  %v2549_v35 = vld [vmem:[%s2305_s26 + $0x98] sm:$0xff] }
  0x37   : > { %827 = vmatpush.msrb.mxu1 %v287_v36  ;;  %941 = vmatpush.msrb.mxu2 %v302_v37  ;;  %v2552_v36 = vld [vmem:[%s2305_s26 + $0xf8] sm:$0xff]  ;;  %v291_v37 = vld [vmem:[%s3703_s1 + $0x100] sm:$0xff] }
  0x38   : > { %1054 = vmatpush.msrb.mxu3 %v318_v38  ;;  %1165 = vmatpush.msrb.mxu0 %v336_v39  ;;  %v307_v38 = vld [vmem:[%s3703_s1 + $0x180] sm:$0xff]  ;;  %v248_v39 = vld [vmem:[%s2305_s26 + $0x158] sm:$0xff] }
  0x39   : > { %828 = vmatpush.msrb.mxu1 %v286_v40  ;;  %942 = vmatpush.msrb.mxu2 %v301_v41  ;;  %v325_v40 = vld [vmem:[%s3703_s1 + $0x210] sm:$0xff]  ;;  %v275_v41 = vld [vmem:[%s3703_s1 + $0x80] sm:$0xff] }
  0x3a   : > { %730 = vmatmul.f32.gmra.mxu0 %v2390_v42  ;;  %1055 = vmatpush.msrb.mxu3 %v317_v43  ;;  %v370_v43 = vld [vmem:[%s3703_s1 + $0x378] sm:$0xff] }
  0x3b   : > { %1166 = vmatpush.msrb.mxu0 %v335_v44  ;;  %829 = vmatpush.msrb.mxu1 %v285_v45  ;;  %v324_v44 = vld [vmem:[%s3703_s1 + $0x208] sm:$0xff]  ;;  %v386_v45 = vld [vmem:[%s3703_s1 + $0x3f8] sm:$0xff] }
  0x3c   : > { %757 = vmatmul.f32.gmra.mxu1 %v2402_v46  ;;  %781 = vmatmul.f32.gmra.mxu2 %v2405_v47 }
  0x3d   : > { %943 = vmatpush.msrb.mxu2 %v300_v48  ;;  %1056 = vmatpush.msrb.mxu3 %v316_v49  ;;  %v354_v48 = vld [vmem:[%s3703_s1 + $0x2f8] sm:$0xff] }
  0x3e   : > { %805 = vmatmul.f32.gmra.mxu3 %v244_v50  ;;  %1167 = vmatpush.msrb.mxu0 %v334_v51  ;;  %v2583_v49 = vld [vmem:[%s2305_s26 + $0x38] sm:$0xff]  ;;  %v323_v50 = vld [vmem:[%s3703_s1 + $0x200] sm:$0xff]  ;;  %v2589_v51 = vld [vmem:[%s2305_s26 + $0xa8] sm:$0xff] }
  0x3f   : > { %830 = vmatpush.msrb.mxu1 %v284_v52  ;;  %944 = vmatpush.msrb.mxu2 %v299_v53  ;;  %v2592_v52 = vld [vmem:[%s2305_s26 + $0x108] sm:$0xff]  ;;  %v402_v53 = vld [vmem:[%s3703_s1 + $0x478] sm:$0xff] }
  0x40   : > { %1057 = vmatpush.msrb.mxu3 %v315_v54  ;;  %1168 = vmatpush.msrb.mxu0 %v333_v55  ;;  %v250_v54 = vld [vmem:[%s2305_s26 + $0x168] sm:$0xff]  ;;  %v369_v55 = vld [vmem:[%s3703_s1 + $0x370] sm:$0xff] }
  0x41   : > { %831 = vmatpush.msrb.mxu1 %v283_v56  ;;  %945 = vmatpush.msrb.mxu2 %v298_v57  ;;  %v385_v56 = vld [vmem:[%s3703_s1 + $0x3f0] sm:$0xff] }
  0x42   : > { %733 = vmatmul.f32.gmra.mxu0 %v2439_v58  ;;  %1058 = vmatpush.msrb.mxu3 %v314_v59  ;;  %v353_v57 = vld [vmem:[%s3703_s1 + $0x2f0] sm:$0xff]  ;;  %v2611_v59 = vld [vmem:[%s2305_s26 + $0x48] sm:$0xff] }
  0x43   : > { %1169 = vmatpush.msrb.mxu0 %v332_v60  ;;  %832 = vmatpush.msrb.mxu1 %v282_v61  ;;  %v2614_v60 = vld [vmem:[%s2305_s26 + $0xb0] sm:$0xff] }
  0x44   : > { %760 = vmatmul.f32.gmra.mxu1 %v2451_v62  ;;  %784 = vmatmul.f32.gmra.mxu2 %v2454_v63  ;;  %v2617_v61 = vld [vmem:[%s2305_s26 + $0x110] sm:$0xff] }
  0x45   : > { %946 = vmatpush.msrb.mxu2 %v297_v0  ;;  %1059 = vmatpush.msrb.mxu3 %v313_v1  ;;  %v251_v0 = vld [vmem:[%s2305_s26 + $0x170] sm:$0xff]  ;;  %v452_v1 = vrot.slane %v2341_v26, 1 }
  0x46   : > { %808 = vmatmul.f32.gmra.mxu3 %v245_v2  ;;  %1170 = vmatpush.msrb.mxu0 %v331_v3  ;;  %v565_v2 = vrot.slane %v2341_v26, 2  ;;  %v453_v3 = vrot.slane %v2390_v42, 1  ;;  %v207_v26 = vld [vmem:[%s2305_s26 + $0x10] sm:$0x3] }
  0x47   : > { %833 = vmatpush.msrb.mxu1 %v281_v4  ;;  %947 = vmatpush.msrb.mxu2 %v296_v5  ;;  %v566_v4 = vrot.slane %v2390_v42, 2  ;;  %v401_v5 = vld [vmem:[%s3703_s1 + $0x470] sm:$0xff]  ;;  %v457_v42 = vrot.slane %v2439_v58, 1 }
  0x48   : > { %1060 = vmatpush.msrb.mxu3 %v312_v6  ;;  %1171 = vmatpush.msrb.mxu0 %v330_v7  ;;  %v2631_v6 = vld [vmem:[%s2305_s26 + $0x50] sm:$0xff]  ;;  %v454_v7 = vsel %vm451_vm0, %v452_v1, %v453_v3  ;;  %v350_v1 = vld [vmem:[%s3703_s1 + $0x2d8] sm:$0xff] }
  0x49   : > { %834 = vmatpush.msrb.mxu1 %v280_v8  ;;  %948 = vmatpush.msrb.mxu2 %v295_v9  ;;  %v567_v8 = vsel %vm564_vm1, %v565_v2, %v566_v4  ;;  %v458_v9 = vrot.slane %v2488_v10, 1  ;;  %v216_v2 = vld [vmem:[%s2305_s26 + $0x58] sm:$0x3] }
  0x4a   : > { %736 = vmatmul.f32.gmra.mxu0 %v2488_v10  ;;  %1061 = vmatpush.msrb.mxu3 %v311_v11  ;;  %v368_v11 = vld [vmem:[%s3703_s1 + $0x368] sm:$0xff] }
  0x4b   : > { %1172 = vmatpush.msrb.mxu0 %v329_v12  ;;  %835 = vmatpush.msrb.mxu1 %v279_v13  ;;  %v455_v12 = vrot.slane %v207_v26, 1  ;;  %v568_v13 = vrot.slane %v207_v26, 2 }
  0x4c   : > { %763 = vmatmul.f32.gmra.mxu1 %v2500_v14  ;;  %787 = vmatmul.f32.gmra.mxu2 %v2503_v15 }
  0x4d   : > { %949 = vmatpush.msrb.mxu2 %v294_v18  ;;  %1062 = vmatpush.msrb.mxu3 %v310_v19  ;;  %v384_v18 = vld [vmem:[%s3703_s1 + $0x3e8] sm:$0xff] }
  0x4e   : > { %811 = vmatmul.f32.gmra.mxu3 %v247_v20  ;;  %1173 = vmatpush.msrb.mxu0 %v328_v21  ;;  %v352_v19 = vld [vmem:[%s3703_s1 + $0x2e8] sm:$0xff]  ;;  %v459_v20 = vsel %vm451_vm0, %v457_v42, %v458_v9 }
  0x4f   : > { %836 = vmatpush.msrb.mxu1 %v278_v22  ;;  %950 = vmatpush.msrb.mxu2 %v293_v23  ;;  %v210_v21 = vld [vmem:[%s2305_s26 + $0x28] sm:$0x3]  ;;  %v456_v22 = vsel %vm451_vm0, %v453_v3, %v455_v12  ;;  %v569_v23 = vsel %vm564_vm1, %v566_v4, %v568_v13  ;;  %v470_v4 = vrot.slane %v216_v2, 1  ;;  %v381_v12 = vld [vmem:[%s3703_s1 + $0x3d0] sm:$0xff] }
  0x50   : > { %1063 = vmatpush.msrb.mxu3 %v309_v24  ;;  %1174 = vmatpush.msrb.mxu0 %v327_v25  ;;  %v460_v24 = vrot.slane %v210_v21, 1  ;;  %v570_v25 = vrot.slane %v2439_v58, 2 }
  0x51   : > { %837 = vmatpush.msrb.mxu1 %v277_v27  ;;  %951 = vmatpush.msrb.mxu2 %v292_v28  ;;  %v571_v27 = vrot.slane %v2488_v10, 2  ;;  %v400_v28 = vld [vmem:[%s3703_s1 + $0x468] sm:$0xff] }
  0x52   : > { %739 = vmatmul.f32.gmra.mxu0 %v2537_v29  ;;  %1064 = vmatpush.msrb.mxu3 %v308_v32  ;;  %v461_v32 = vsel %vm451_vm0, %v458_v9, %v460_v24  ;;  %v473_v9 = vrot.slane %v2353_v30, 1  ;;  %v397_v24 = vld [vmem:[%s3703_s1 + $0x450] sm:$0xff] }
  0x53   : > { %1175 = vmatpush.msrb.mxu0 %v326_v33  ;;  %838 = vmatpush.msrb.mxu1 %v276_v34  ;;  %v2661_v33 = vsel %vm564_vm1, %v570_v25, %v571_v27  ;;  %v462_v34 = vrot.slane %v2537_v29, 1 }
  0x54   : > { %766 = vmatmul.f32.gmra.mxu1 %v2549_v35  ;;  %790 = vmatmul.f32.gmra.mxu2 %v2552_v36 }
  0x55   : > { %952 = vmatpush.msrb.mxu2 %v291_v37  ;;  %1065 = vmatpush.msrb.mxu3 %v307_v38  ;;  %v573_v37 = vrot.slane %v210_v21, 2  ;;  %v383_v38 = vld [vmem:[%s3703_s1 + $0x3e0] sm:$0xff] }
  0x56   : > { %814 = vmatmul.f32.gmra.mxu3 %v248_v39  ;;  %1176 = vmatpush.msrb.mxu0 %v325_v40  ;;  %v351_v39 = vld [vmem:[%s3703_s1 + $0x2e0] sm:$0xff] }
  0x57   : > { %839 = vmatpush.msrb.mxu1 %v275_v41  ;;  %1389 = vmatpush.msra.mxu2 %v370_v43  ;;  %v213_v41 = vld [vmem:[%s2305_s26 + $0x40] sm:$0x3]  ;;  %v2681_v43 = vsel %vm564_vm1, %v571_v27, %v573_v37 }
  0x58   : > { %1177 = vmatpush.msrb.mxu0 %v324_v44  ;;  %1502 = vmatpush.msra.mxu3 %v386_v45  ;;  %v465_v44 = vrot.slane %v213_v41, 1  ;;  %v575_v45 = vrot.slane %v2537_v29, 2 }
  0x59   : > { %1276 = vmatpush.msra.mxu1 %v354_v48  ;;  %1390 = vmatpush.msra.mxu2 %v369_v55  ;;  %v576_v48 = vrot.slane %v2583_v49, 2  ;;  %v468_v55 = vrot.slane %v2631_v6, 1 }
  0x5a   : > { %742 = vmatmul.f32.gmra.mxu0 %v2583_v49  ;;  %1503 = vmatpush.msra.mxu3 %v385_v56  ;;  %v578_v56 = vrot.slane %v213_v41, 2  ;;  %v222_v41 = vld [vmem:[%s2305_s26 + $0x88] sm:$0x3] }
  0x5b   : > { %1178 = vmatpush.msrb.mxu0 %v323_v50  ;;  %1277 = vmatpush.msra.mxu1 %v353_v57  ;;  %v399_v50 = vld [vmem:[%s3703_s1 + $0x460] sm:$0xff]  ;;  %v382_v57 = vld [vmem:[%s3703_s1 + $0x3d8] sm:$0xff]  ;;  %v2729_v26 = vsel %vm451_vm0, %v468_v55, %v470_v4 }
  0x5c   : > { %769 = vmatmul.f32.gmra.mxu1 %v2589_v51  ;;  %793 = vmatmul.f32.gmra.mxu2 %v2592_v52  ;;  %v2717_v3 = vsel %vm564_vm1, %v576_v48, %v578_v56 }
  0x5d   : > { %1615 = vmatpush.msra.mxu0 %v402_v53  ;;  %1391 = vmatpush.msra.mxu2 %v368_v11  ;;  %v583_v11 = vrot.slane %v216_v2, 2 }
  0x5e   : > { %817 = vmatmul.f32.gmra.mxu3 %v250_v54  ;;  %1278 = vmatpush.msra.mxu1 %v352_v19  ;;  %v2695_v54 = vsel %vm564_vm1, %v575_v45, %v576_v48  ;;  %v219_v19 = vld [vmem:[%s2305_s26 + $0x70] sm:$0x3] }
  0x5f   : > { %1616 = vmatpush.msra.mxu0 %v401_v5  ;;  %1504 = vmatpush.msra.mxu3 %v384_v18  ;;  %v580_v5 = vrot.slane %v2611_v59, 2  ;;  %v349_v18 = vld [vmem:[%s3703_s1 + $0x2d0] sm:$0xff]  ;;  %v475_v21 = vrot.slane %v219_v19, 1 }
  0x60   : > { %1279 = vmatpush.msra.mxu1 %v351_v39  ;;  %v348_v39 = vld [vmem:[%s3703_s1 + $0x2c8] sm:$0xff] }
  0x61   : > { %1617 = vmatpush.msra.mxu0 %v400_v28  ;;  %1505 = vmatpush.msra.mxu3 %v383_v38  ;;  %v2766_v25 = vsel %vm451_vm0, %v473_v9, %v475_v21 }
  0x62   : > { %745 = vmatmul.f32.gmra.mxu0 %v2611_v59  ;;  %1280 = vmatpush.msra.mxu1 %v350_v1 }
  0x63   : > { %1618 = vmatpush.msra.mxu0 %v399_v50  ;;  %1506 = vmatpush.msra.mxu3 %v382_v57  ;;  %v480_v50 = vrot.slane %v222_v41, 1 }
  0x64   : > { %772 = vmatmul.f32.gmra.mxu1 %v2614_v60  ;;  %796 = vmatmul.f32.gmra.mxu2 %v2617_v61 }
  0x65   : > { %1507 = vmatpush.msra.mxu3 %v381_v12  ;;  %1281 = vmatpush.msra.mxu1 %v349_v18  ;;  %v347_v12 = vld [vmem:[%s3703_s1 + $0x2c0] sm:$0xff] }
  0x66   : > { %820 = vmatmul.f32.gmra.mxu3 %v251_v0  ;;  %v225_v18 = vld [vmem:[%s2305_s26 + $0xa0] sm:$0x3] }
  0x67   : > { %1282 = vmatpush.msra.mxu1 %v348_v39 }
  0x69   : > { %1283 = vmatpush.msra.mxu1 %v347_v12 }
  0x6a   : > { %748 = vmatmul.f32.gmra.mxu0 %v2631_v6 }
  0x6c   : > { %840 = vmatmul.f32.vlgmr.msrb.gmra.mxu1 %v454_v7  ;;  %953 = vmatmul.f32.vlgmr.msrb.gmra.mxu2 %v567_v8  ;;  %v581_v7 = vrot.slane %v2631_v6, 2  ;;  %v398_v8 = vld [vmem:[%s3703_s1 + $0x458] sm:$0xff] }
  0x6d   : > { %1619 = vmatpush.msra.mxu0 %v398_v8  ;;  %v593_v8 = vrot.slane %v222_v41, 2 }
  0x6e   : > { %1066 = vmatmul.f32.vlgmr.msrb.gmra.mxu3 %v2439_v58  ;;  %v463_v58 = vrot.slane %v2583_v49, 1  ;;  %v2732_v42 = vsel %vm564_vm1, %v580_v5, %v581_v7  ;;  %v483_v5 = vrot.slane %v2549_v35, 1 }
  0x6f   : > { %1620 = vmatpush.msra.mxu0 %v397_v24  ;;  %v595_v24 = vrot.slane %v2500_v14, 2 }
  0x70   : > { %v2677_v40 = vsel %vm451_vm0, %v462_v34, %v463_v58  ;;  %v2692_v53 = vsel %vm451_vm0, %v463_v58, %v465_v44  ;;  %v588_v34 = vrot.slane %v219_v19, 2  ;;  %v380_v58 = vld [vmem:[%s3703_s1 + $0x3c8] sm:$0xff] }
  0x71   : > { %1508 = vmatpush.msra.mxu3 %v380_v58 }
  0x72   : > { %1179 = vmatmul.f32.vlgmr.msrb.gmra.mxu0 %v459_v20 }
  0x74   : > { %843 = vmatmul.f32.gmra.mxu1 %v456_v22  ;;  %956 = vmatmul.f32.gmra.mxu2 %v569_v23  ;;  %v585_v22 = vrot.slane %v2311_v16, 2  ;;  %v586_v23 = vrot.slane %v2353_v30, 2 }
  0x76   : > { %1069 = vmatmul.f32.gmra.mxu3 %v2488_v10  ;;  %v367_v10 = vld [vmem:[%s3703_s1 + $0x360] sm:$0xff]  ;;  %v2771_v28 = vsel %vm564_vm1, %v585_v22, %v586_v23  ;;  %v2801_v48 = vsel %vm564_vm1, %v586_v23, %v588_v34  ;;  %v485_v23 = vrot.slane %v225_v18, 1 }
  0x77   : > { %1392 = vmatpush.msra.mxu2 %v367_v10 }
  0x78   : > { %v2870_v58 = vsel %vm451_vm0, %v483_v5, %v485_v23 }
  0x79   : > { %3751 = vst [vmem:[#allocation8_spill] sm:$0xff] %v2870_v58 }
  0x7a   : > { %1182 = vmatmul.f32.gmra.mxu0 %v461_v32 }
  0x7c   : > { %846 = vmatmul.f32.gmra.mxu1 %v459_v20  ;;  %959 = vmatmul.f32.gmra.mxu2 %v2661_v33  ;;  %v2754_v20 = vsel %vm564_vm1, %v581_v7, %v583_v11  ;;  %v363_v7 = vld [vmem:[%s3703_s1 + $0x340] sm:$0xff] }
  0x7e   : > { %1072 = vmatmul.f32.gmra.mxu3 %v2537_v29  ;;  %v467_v29 = vrot.slane %v2611_v59, 1 }
  0x80   : > { %v2710_v0 = vsel %vm451_vm0, %v467_v29, %v468_v55  ;;  %v590_v29 = vrot.slane %v2402_v46, 2  ;;  %v591_v55 = vrot.slane %v2451_v62, 2 }
  0x82   : > { %1185 = vmatmul.f32.gmra.mxu0 %v2677_v40  ;;  %v2854_v22 = vsel %vm564_vm1, %v591_v55, %v593_v8  ;;  %v228_v8 = vld [vmem:[%s2305_s26 + $0xb8] sm:$0x3] }
  0x83   : > { %3750 = vst [vmem:[#allocation7_spill] sm:$0xff] %v2854_v22 }
  0x84   : > { %849 = vmatmul.f32.gmra.mxu1 %v461_v32  ;;  %962 = vmatmul.f32.gmra.mxu2 %v2681_v43  ;;  %v364_v32 = vld [vmem:[%s3703_s1 + $0x348] sm:$0xff] }
  0x86   : > { %1075 = vmatmul.f32.gmra.mxu3 %v2583_v49  ;;  %v366_v49 = vld [vmem:[%s3703_s1 + $0x358] sm:$0xff] }
  0x87   : > { %1393 = vmatpush.msra.mxu2 %v366_v49  ;;  %v396_v49 = vld [vmem:[%s3703_s1 + $0x448] sm:$0xff] }
  0x88   : > { %1621 = vmatpush.msra.mxu0 %v396_v49  ;;  %v378_v49 = vld [vmem:[%s3703_s1 + $0x3b8] sm:$0xff] }
  0x8a   : > { %1188 = vmatmul.f32.gmra.mxu0 %v2692_v53 }
  0x8c   : > { %852 = vmatmul.f32.gmra.mxu1 %v2677_v40  ;;  %965 = vmatmul.f32.gmra.mxu2 %v2695_v54 }
  0x8e   : > { %1078 = vmatmul.f32.gmra.mxu3 %v2611_v59  ;;  %v472_v59 = vrot.slane %v2311_v16, 1 }
  0x90   : > { %v2747_v13 = vsel %vm451_vm0, %v472_v59, %v473_v9  ;;  %v379_v59 = vld [vmem:[%s3703_s1 + $0x3c0] sm:$0xff] }
  0x91   : > { %1509 = vmatpush.msra.mxu3 %v379_v59  ;;  %v346_v59 = vld [vmem:[%s3703_s1 + $0x2b8] sm:$0xff] }
  0x92   : > { %1191 = vmatmul.f32.gmra.mxu0 %v2710_v0  ;;  %1284 = vmatpush.msra.mxu1 %v346_v59 }
  0x93   : > { %1510 = vmatpush.msra.mxu3 %v378_v49 }
  0x94   : > { %855 = vmatmul.f32.gmra.mxu1 %v2692_v53  ;;  %968 = vmatmul.f32.gmra.mxu2 %v2717_v3 }
  0x96   : > { %1081 = vmatmul.f32.gmra.mxu3 %v2631_v6  ;;  %v365_v6 = vld [vmem:[%s3703_s1 + $0x350] sm:$0xff] }
  0x97   : > { %1394 = vmatpush.msra.mxu2 %v365_v6 }
  0x99   : > { %1395 = vmatpush.msra.mxu2 %v364_v32 }
  0x9a   : > { %1194 = vmatmul.f32.gmra.mxu0 %v2729_v26 }
  0x9b   : > { %1396 = vmatpush.msra.mxu2 %v363_v7 }
  0x9c   : > { %858 = vmatmul.f32.gmra.mxu1 %v2710_v0  ;;  %971 = vmatmul.f32.gmra.mxu2 %v2732_v42 }
  0x9e   : > { %1084 = vmatmul.f32.gmra.mxu3 %v2311_v16  ;;  %v477_v16 = vrot.slane %v2402_v46, 1 }
  0xa2   : > { %1197 = vmatmul.f32.gmra.mxu0 %v2747_v13 }
  0xa4   : > { %861 = vmatmul.f32.gmra.mxu1 %v2729_v26  ;;  %974 = vmatmul.f32.gmra.mxu2 %v2754_v20 }
  0xa6   : > { %1087 = vmatmul.f32.gmra.mxu3 %v2353_v30  ;;  %v478_v30 = vrot.slane %v2451_v62, 1 }
  0xa8   : > { %v2790_v38 = vsel %vm451_vm0, %v477_v16, %v478_v30  ;;  %v2817_v1 = vsel %vm451_vm0, %v478_v30, %v480_v50  ;;  %v596_v16 = vrot.slane %v2549_v35, 2  ;;  %v395_v30 = vld [vmem:[%s3703_s1 + $0x440] sm:$0xff]  ;;  %v488_v50 = vrot.slane %v2614_v60, 1 }
  0xa9   : > { %v2768_v27 = vpop.f32.mrf.mxu1  ;;  %3746 = vst [vmem:[#allocation3_spill] sm:$0xff] %v2817_v1  ;;  %1622 = vmatpush.msra.mxu0 %v395_v30  ;;  %v600_v30 = vrot.slane %v2589_v51, 2 }
  0xaa   : > { %1200 = vmatmul.f32.gmra.mxu0 %v2766_v25 }
  0xac   : > { %864 = vmatmul.f32.gmra.mxu1 %v2747_v13  ;;  %977 = vmatmul.f32.gmra.mxu2 %v2771_v28 }
  0xae   : > { %1090 = vmatmul.f32.gmra.mxu3 %v2402_v46  ;;  %v2824_v46 = vsel %vm564_vm1, %v590_v29, %v591_v55  ;;  %v362_v29 = vld [vmem:[%s3703_s1 + $0x338] sm:$0xff]  ;;  %v598_v55 = vrot.slane %v225_v18, 2 }
  0xaf   : > { %v2785_v10 = vpop.f32.mrf.mxu2  ;;  %v2787_v37 = vpop.f32.mrf.mxu0  ;;  %1397 = vmatpush.msra.mxu2 %v362_v29  ;;  %v394_v29 = vld [vmem:[%s3703_s1 + $0x438] sm:$0xff] }
  0xb0   : > { %v2907_v23 = vsel %vm564_vm1, %v596_v16, %v598_v55  ;;  %1623 = vmatpush.msra.mxu0 %v394_v29 }
  0xb1   : > { %v2796_v44 = vpop.f32.mrf.mxu1  ;;  %v2798_v45 = vpop.f32.mrf.mxu3  ;;  %3756 = vst [vmem:[#allocation13_spill] sm:$0xff] %v2907_v23 }
  0xb2   : > { %3745 = vst [vmem:[#allocation2_spill] sm:$0xff] %v2798_v45  ;;  %1203 = vmatmul.f32.gmra.mxu0 %v2790_v38 }
  0xb4   : > { %867 = vmatmul.f32.gmra.mxu1 %v2766_v25  ;;  %980 = vmatmul.f32.gmra.mxu2 %v2801_v48 }
  0xb6   : > { %1093 = vmatmul.f32.gmra.mxu3 %v2451_v62  ;;  %v482_v62 = vrot.slane %v2500_v14, 1 }
  0xb7   : > { %v2812_v56 = vpop.f32.mrf.mxu2  ;;  %v2814_v57 = vpop.f32.mrf.mxu0 }
  0xb8   : > { %v2843_v11 = vsel %vm451_vm0, %v482_v62, %v483_v5 }
  0xb9   : > { %v2819_v2 = vpop.f32.mrf.mxu1  ;;  %v2821_v4 = vpop.f32.mrf.mxu3  ;;  %3748 = vst [vmem:[#allocation5_spill] sm:$0xff] %v2843_v11 }
  0xba   : > { %3747 = vst [vmem:[#allocation4_spill] sm:$0xff] %v2821_v4  ;;  %1206 = vmatmul.f32.gmra.mxu0 %v2817_v1  ;;  %v498_v4 = vrot.slane %v2454_v63, 1 }
  0xbc   : > { %870 = vmatmul.f32.gmra.mxu1 %v2790_v38  ;;  %983 = vmatmul.f32.gmra.mxu2 %v2824_v46 }
  0xbe   : > { %1096 = vmatmul.f32.gmra.mxu3 %v2500_v14  ;;  %v2877_v14 = vsel %vm564_vm1, %v595_v24, %v596_v16  ;;  %v490_v24 = vrot.slane %v228_v8, 1 }
  0xbf   : > { %v2838_v9 = vpop.f32.mrf.mxu2  ;;  %v2840_v6 = vpop.f32.mrf.mxu0  ;;  %3753 = vst [vmem:[#allocation10_spill] sm:$0xff] %v2877_v14 }
  0xc0   : > { %v2923_v49 = vsel %vm451_vm0, %v488_v50, %v490_v24  ;;  %v603_v24 = vrot.slane %v228_v8, 2  ;;  %v345_v8 = vld [vmem:[%s3703_s1 + $0x2b0] sm:$0xff] }
  0xc1   : > { %v2849_v19 = vpop.f32.mrf.mxu1  ;;  %v2851_v21 = vpop.f32.mrf.mxu3  ;;  %3757 = vst [vmem:[#allocation14_spill] sm:$0xff] %v2923_v49  ;;  %1285 = vmatpush.msra.mxu1 %v345_v8 }
  0xc2   : > { %3749 = vst [vmem:[#allocation6_spill] sm:$0xff] %v2851_v21  ;;  %1209 = vmatmul.f32.gmra.mxu0 %v2843_v11 }
  0xc4   : > { %873 = vmatmul.f32.gmra.mxu1 %v2817_v1  ;;  %986 = vmatmul.f32.gmra.mxu2 %v2854_v22 }
  0xc6   : > { %1099 = vmatmul.f32.gmra.mxu3 %v2549_v35  ;;  %v487_v35 = vrot.slane %v2589_v51, 1 }
  0xc7   : > { %v2865_v32 = vpop.f32.mrf.mxu2  ;;  %v2867_v34 = vpop.f32.mrf.mxu0 }
  0xc8   : > { %v2896_v7 = vsel %vm451_vm0, %v487_v35, %v488_v50  ;;  %v601_v35 = vrot.slane %v2614_v60, 2  ;;  %v361_v50 = vld [vmem:[%s3703_s1 + $0x330] sm:$0xff] }
  0xc9   : > { %v2872_v39 = vpop.f32.mrf.mxu1  ;;  %v2874_v41 = vpop.f32.mrf.mxu3  ;;  %3754 = vst [vmem:[#allocation11_spill] sm:$0xff] %v2896_v7  ;;  %1398 = vmatpush.msra.mxu2 %v361_v50 }
  0xca   : > { %3752 = vst [vmem:[#allocation9_spill] sm:$0xff] %v2874_v41  ;;  %1212 = vmatmul.f32.gmra.mxu0 %v2870_v58  ;;  %v493_v41 = vrot.slane %v2356_v31, 1 }
  0xcc   : > { %876 = vmatmul.f32.gmra.mxu1 %v2843_v11  ;;  %989 = vmatmul.f32.gmra.mxu2 %v2877_v14  ;;  %v234_v11 = vld [vmem:[%s2305_s26 + $0xe8] sm:$0x3] }
  0xcd   : > { %v500_v22 = vrot.slane %v234_v11, 1 }
  0xce   : > { %1102 = vmatmul.f32.gmra.mxu3 %v2589_v51  ;;  %v2930_v51 = vsel %vm564_vm1, %v600_v30, %v601_v35  ;;  %v377_v30 = vld [vmem:[%s3703_s1 + $0x3b0] sm:$0xff] }
  0xcf   : > { %v2891_v62 = vpop.f32.mrf.mxu2  ;;  %v2893_v5 = vpop.f32.mrf.mxu0  ;;  %3759 = vst [vmem:[#allocation16_spill] sm:$0xff] %v2930_v51  ;;  %1511 = vmatpush.msra.mxu3 %v377_v30  ;;  %v606_v30 = vrot.slane %v2356_v31, 2 }
  0xd1   : > { %v2902_v12 = vpop.f32.mrf.mxu1  ;;  %v2904_v18 = vpop.f32.mrf.mxu3 }
  0xd2   : > { %3755 = vst [vmem:[#allocation12_spill] sm:$0xff] %v2904_v18  ;;  %1215 = vmatmul.f32.gmra.mxu0 %v2896_v7 }
  0xd4   : > { %879 = vmatmul.f32.gmra.mxu1 %v2870_v58  ;;  %992 = vmatmul.f32.gmra.mxu2 %v2907_v23  ;;  %v2960_v23 = vsel %vm564_vm1, %v601_v35, %v603_v24 }
  0xd5   : > { %3762 = vst [vmem:[#allocation19_spill] sm:$0xff] %v2960_v23 }
  0xd6   : > { %1105 = vmatmul.f32.gmra.mxu3 %v2614_v60  ;;  %v492_v60 = vrot.slane %v2314_v17, 1 }
  0xd7   : > { %v2918_v16 = vpop.f32.mrf.mxu2  ;;  %v2920_v55 = vpop.f32.mrf.mxu0 }
  0xd9   : > { %v2925_v59 = vpop.f32.mrf.mxu1  ;;  %v2927_v18 = vpop.f32.mrf.mxu3 }
  0xda   : > { %3758 = vst [vmem:[#allocation15_spill] sm:$0xff] %v2927_v18  ;;  %1218 = vmatmul.f32.gmra.mxu0 %v2923_v49 }
  0xdc   : > { %882 = vmatmul.f32.gmra.mxu1 %v2896_v7  ;;  %995 = vmatmul.f32.gmra.mxu2 %v2930_v51  ;;  %v2949_v7 = vsel %vm451_vm0, %v492_v60, %v493_v41  ;;  %v231_v51 = vld [vmem:[%s2305_s26 + $0xd0] sm:$0x3]  ;;  %v605_v60 = vrot.slane %v2314_v17, 2 }
  0xdd   : > { %3760 = vst [vmem:[#allocation17_spill] sm:$0xff] %v2949_v7  ;;  %v495_v58 = vrot.slane %v231_v51, 1 }
  0xde   : > { %1108 = vmatmul.f32.gmra.mxu3 %v2314_v17  ;;  %v2981_v17 = vsel %vm564_vm1, %v605_v60, %v606_v30  ;;  %v376_v60 = vld [vmem:[%s3703_s1 + $0x3a8] sm:$0xff] }
  0xdf   : > { %v2944_v29 = vpop.f32.mrf.mxu2  ;;  %v2946_v18 = vpop.f32.mrf.mxu0  ;;  %v2976_v8 = vsel %vm451_vm0, %v493_v41, %v495_v58  ;;  %3764 = vst [vmem:[#allocation21_spill] sm:$0xff] %v2981_v17  ;;  %v608_v58 = vrot.slane %v231_v51, 2  ;;  %1512 = vmatpush.msra.mxu3 %v376_v60  ;;  %v344_v51 = vld [vmem:[%s3703_s1 + $0x2a8] sm:$0xff] }
  0xe0   : > { %1286 = vmatpush.msra.mxu1 %v344_v51 }
  0xe1   : > { %v2955_v50 = vpop.f32.mrf.mxu1  ;;  %v2957_v21 = vpop.f32.mrf.mxu3 }
  0xe2   : > { %3761 = vst [vmem:[#allocation18_spill] sm:$0xff] %v2957_v21  ;;  %1221 = vmatmul.f32.gmra.mxu0 %v2949_v7  ;;  %v393_v21 = vld [vmem:[%s3703_s1 + $0x430] sm:$0xff] }
  0xe3   : > { %1624 = vmatpush.msra.mxu0 %v393_v21  ;;  %v360_v21 = vld [vmem:[%s3703_s1 + $0x328] sm:$0xff] }
  0xe4   : > { %885 = vmatmul.f32.gmra.mxu1 %v2923_v49  ;;  %998 = vmatmul.f32.gmra.mxu2 %v2960_v23 }
  0xe5   : > { %1399 = vmatpush.msra.mxu2 %v360_v21 }
  0xe6   : > { %1111 = vmatmul.f32.gmra.mxu3 %v2356_v31  ;;  %v497_v31 = vrot.slane %v2405_v47, 1 }
  0xe7   : > { %v2971_v35 = vpop.f32.mrf.mxu2  ;;  %v2973_v24 = vpop.f32.mrf.mxu0 }
  0xe9   : > { %v2978_v49 = vpop.f32.mrf.mxu3  ;;  %v841_v23 = vpop.f32.mrf.mxu1 }
  0xea   : > { %3763 = vst [vmem:[#allocation20_spill] sm:$0xff] %v2978_v49  ;;  %1224 = vmatmul.f32.gmra.mxu0 %v2976_v8  ;;  %v842_v41 = vadd.f32 %v841_v23, %v2787_v37  ;;  %v3004_v23 = vsel %vm564_vm1, %v606_v30, %v608_v58  ;;  %v392_v30 = vld [vmem:[%s3703_s1 + $0x428] sm:$0xff] }
  0xeb   : > { %1625 = vmatpush.msra.mxu0 %v392_v30 }
  0xec   : > { %888 = vmatmul.f32.gmra.mxu1 %v2949_v7  ;;  %1001 = vmatmul.f32.gmra.mxu2 %v2981_v17  ;;  %v2997_v7 = vsel %vm451_vm0, %v497_v31, %v498_v4  ;;  %v611_v31 = vrot.slane %v2454_v63, 2 }
  0xee   : > { %1114 = vmatmul.f32.gmra.mxu3 %v2405_v47 }
  0xef   : > { %v954_v49 = vpop.f32.mrf.mxu2  ;;  %v1180_v14 = vpop.f32.mrf.mxu0 }
  0xf0   : > { %v955_v17 = vadd.f32 %v954_v49, %v842_v41  ;;  %v610_v49 = vrot.slane %v2405_v47, 2 }
  0xf1   : > { %v844_v21 = vpop.f32.mrf.mxu1  ;;  %v1067_v37 = vpop.f32.mrf.mxu3 }
  0xf2   : > { %v1068_v45 = vadd.f32 %v1067_v37, %v955_v17  ;;  %1227 = vmatmul.f32.gmra.mxu0 %v2997_v7  ;;  %v845_v41 = vadd.f32 %v844_v21, %v2814_v57  ;;  %v3022_v47 = vsel %vm564_vm1, %v610_v49, %v611_v31  ;;  %v503_v57 = vrot.slane %v2552_v36, 1 }
  0xf4   : > { %v3007_v1 = vadd.f32 %v1180_v14, %v1068_v45  ;;  %891 = vmatmul.f32.gmra.mxu1 %v2976_v8  ;;  %1004 = vmatmul.f32.gmra.mxu2 %v3004_v23  ;;  %v3019_v45 = vsel %vm451_vm0, %v498_v4, %v500_v22  ;;  %v359_v4 = vld [vmem:[%s3703_s1 + $0x320] sm:$0xff]  ;;  %v613_v22 = vrot.slane %v234_v11, 2 }
  0xf5   : > { %1400 = vmatpush.msra.mxu2 %v359_v4  ;;  %v343_v11 = vld [vmem:[%s3703_s1 + $0x2a0] sm:$0xff] }
  0xf6   : > { %3765 = vst [vmem:[#allocation22_spill] sm:$0xff] %v3007_v1  ;;  %1117 = vmatmul.f32.gmra.mxu3 %v2454_v63  ;;  %v502_v63 = vrot.slane %v2503_v15, 1  ;;  %1287 = vmatpush.msra.mxu1 %v343_v11 }
  0xf7   : > { %v957_v17 = vpop.f32.mrf.mxu2  ;;  %v1183_v58 = vpop.f32.mrf.mxu0 }
  0xf8   : > { %v958_v14 = vadd.f32 %v957_v17, %v845_v41  ;;  %v375_v41 = vld [vmem:[%s3703_s1 + $0x3a0] sm:$0xff] }
  0xf9   : > { %v847_v60 = vpop.f32.mrf.mxu1  ;;  %v1070_v51 = vpop.f32.mrf.mxu3  ;;  %1513 = vmatpush.msra.mxu3 %v375_v41 }
  0xfa   : > { %v1071_v37 = vadd.f32 %v1070_v51, %v958_v14  ;;  %1230 = vmatmul.f32.gmra.mxu0 %v3019_v45  ;;  %v848_v49 = vadd.f32 %v847_v60, %v2840_v6  ;;  %v237_v51 = vld [vmem:[%s2305_s26 + $0x100] sm:$0x3]  ;;  %v3047_v60 = vsel %vm564_vm1, %v611_v31, %v613_v22 }
  0xfb   : > { %v391_v31 = vld [vmem:[%s3703_s1 + $0x420] sm:$0xff] }
  0xfc   : > { %v3027_v21 = vadd.f32 %v1183_v58, %v1071_v37  ;;  %894 = vmatmul.f32.gmra.mxu1 %v2997_v7  ;;  %1007 = vmatmul.f32.gmra.mxu2 %v3022_v47  ;;  %v3040_v58 = vsel %vm451_vm0, %v502_v63, %v503_v57  ;;  %v615_v63 = vrot.slane %v2503_v15, 2 }
  0xfd   : > { %1626 = vmatpush.msra.mxu0 %v391_v31 }
  0xfe   : > { %3766 = vst [vmem:[#allocation23_spill] sm:$0xff] %v3027_v21  ;;  %1120 = vmatmul.f32.gmra.mxu3 %v2503_v15  ;;  %v505_v21 = vrot.slane %v237_v51, 1 }
  0xff   : > { %v960_v30 = vpop.f32.mrf.mxu2  ;;  %v1186_v17 = vpop.f32.mrf.mxu0 }
 0x100   : > { %v961_v14 = vadd.f32 %v960_v30, %v848_v49  ;;  %v616_v49 = vrot.slane %v2552_v36, 2 }
 0x101   : > { %v850_v37 = vpop.f32.mrf.mxu1  ;;  %v1073_v6 = vpop.f32.mrf.mxu3 }
 0x102   : > { %v1074_v4 = vadd.f32 %v1073_v6, %v961_v14  ;;  %1233 = vmatmul.f32.gmra.mxu0 %v3040_v58  ;;  %v851_v41 = vadd.f32 %v850_v37, %v2867_v34  ;;  %v3065_v15 = vsel %vm564_vm1, %v615_v63, %v616_v49  ;;  %v508_v34 = vrot.slane %v2617_v61, 1 }
 0x104   : > { %v3050_v1 = vadd.f32 %v1186_v17, %v1074_v4  ;;  %897 = vmatmul.f32.gmra.mxu1 %v3019_v45  ;;  %1010 = vmatmul.f32.gmra.mxu2 %v3047_v60  ;;  %v3062_v17 = vsel %vm451_vm0, %v503_v57, %v505_v21  ;;  %v358_v57 = vld [vmem:[%s3703_s1 + $0x318] sm:$0xff]  ;;  %v618_v21 = vrot.slane %v237_v51, 2 }
 0x105   : > { %1401 = vmatpush.msra.mxu2 %v358_v57  ;;  %v342_v51 = vld [vmem:[%s3703_s1 + $0x298] sm:$0xff] }
 0x106   : > { %3767 = vst [vmem:[#allocation24_spill] sm:$0xff] %v3050_v1  ;;  %1123 = vmatmul.f32.gmra.mxu3 %v2552_v36  ;;  %v507_v36 = vrot.slane %v2592_v52, 1  ;;  %1288 = vmatpush.msra.mxu1 %v342_v51 }
 0x107   : > { %v963_v22 = vpop.f32.mrf.mxu2  ;;  %v1189_v30 = vpop.f32.mrf.mxu0 }
 0x108   : > { %v964_v14 = vadd.f32 %v963_v22, %v851_v41  ;;  %v374_v41 = vld [vmem:[%s3703_s1 + $0x398] sm:$0xff] }
 0x109   : > { %v853_v11 = vpop.f32.mrf.mxu1  ;;  %v1076_v6 = vpop.f32.mrf.mxu3  ;;  %1514 = vmatpush.msra.mxu3 %v374_v41 }
 0x10a   : > { %v1077_v4 = vadd.f32 %v1076_v6, %v964_v14  ;;  %1236 = vmatmul.f32.gmra.mxu0 %v3062_v17  ;;  %v854_v63 = vadd.f32 %v853_v11, %v2893_v5  ;;  %v240_v6 = vld [vmem:[%s2305_s26 + $0x118] sm:$0x3]  ;;  %v3090_v11 = vsel %vm564_vm1, %v616_v49, %v618_v21 }
 0x10b   : > { %v390_v21 = vld [vmem:[%s3703_s1 + $0x418] sm:$0xff] }
 0x10c   : > { %v3070_v37 = vadd.f32 %v1189_v30, %v1077_v4  ;;  %900 = vmatmul.f32.gmra.mxu1 %v3040_v58  ;;  %1013 = vmatmul.f32.gmra.mxu2 %v3065_v15  ;;  %v3083_v30 = vsel %vm451_vm0, %v507_v36, %v508_v34  ;;  %v620_v36 = vrot.slane %v2592_v52, 2 }
 0x10d   : > { %3769 = vst [vmem:[#allocation26_spill] sm:$0xff] %v3083_v30  ;;  %1627 = vmatpush.msra.mxu0 %v390_v21 }
 0x10e   : > { %3768 = vst [vmem:[#allocation25_spill] sm:$0xff] %v3070_v37  ;;  %1126 = vmatmul.f32.gmra.mxu3 %v2592_v52  ;;  %v510_v37 = vrot.slane %v240_v6, 1 }
 0x10f   : > { %v966_v31 = vpop.f32.mrf.mxu2  ;;  %v1192_v22 = vpop.f32.mrf.mxu0 }
 0x110   : > { %v967_v14 = vadd.f32 %v966_v31, %v854_v63  ;;  %v621_v63 = vrot.slane %v2617_v61, 2 }
 0x111   : > { %v856_v4 = vpop.f32.mrf.mxu1  ;;  %v1079_v5 = vpop.f32.mrf.mxu3 }
 0x112   : > { %v1080_v57 = vadd.f32 %v1079_v5, %v967_v14  ;;  %1239 = vmatmul.f32.gmra.mxu0 %v3083_v30  ;;  %v857_v49 = vadd.f32 %v856_v4, %v2920_v55  ;;  %v3108_v5 = vsel %vm564_vm1, %v620_v36, %v621_v63  ;;  %v3116_v4 = vld [vmem:[%s2305_s26 + $0x128] sm:$0xff]  ;;  %v357_v36 = vld [vmem:[%s3703_s1 + $0x310] sm:$0xff] }
 0x113   : > { %3771 = vst [vmem:[#allocation28_spill] sm:$0xff] %v3108_v5  ;;  %1402 = vmatpush.msra.mxu2 %v357_v36 }
 0x114   : > { %v3093_v1 = vadd.f32 %v1192_v22, %v1080_v57  ;;  %903 = vmatmul.f32.gmra.mxu1 %v3062_v17  ;;  %1016 = vmatmul.f32.gmra.mxu2 %v3090_v11  ;;  %v3105_v22 = vsel %vm451_vm0, %v508_v34, %v510_v37  ;;  %v513_v34 = vrot.slane %v3116_v4, 1 }
 0x116   : > { %3770 = vst [vmem:[#allocation27_spill] sm:$0xff] %v3093_v1  ;;  %1129 = vmatmul.f32.gmra.mxu3 %v2617_v61  ;;  %v3112_v61 = vld [vmem:[%s2305_s26 + $0x120] sm:$0xff] }
 0x117   : > { %v969_v41 = vpop.f32.mrf.mxu2  ;;  %v1195_v31 = vpop.f32.mrf.mxu0  ;;  %3772 = vst [vmem:[#allocation29_spill] sm:$0xff] %v3112_v61  ;;  %v512_v55 = vrot.slane %v3112_v61, 1 }
 0x118   : > { %v970_v14 = vadd.f32 %v969_v41, %v857_v49  ;;  %v623_v49 = vrot.slane %v240_v6, 2  ;;  %v373_v41 = vld [vmem:[%s3703_s1 + $0x390] sm:$0xff] }
 0x119   : > { %v859_v51 = vpop.f32.mrf.mxu1  ;;  %v1082_v52 = vpop.f32.mrf.mxu3  ;;  %1515 = vmatpush.msra.mxu3 %v373_v41  ;;  %v341_v6 = vld [vmem:[%s3703_s1 + $0x290] sm:$0xff] }
 0x11a   : > { %v1083_v57 = vadd.f32 %v1082_v52, %v970_v14  ;;  %1242 = vmatmul.f32.gmra.mxu0 %v3105_v22  ;;  %v860_v21 = vadd.f32 %v859_v51, %v2946_v18  ;;  %v3132_v52 = vsel %vm451_vm0, %v512_v55, %v513_v34  ;;  %v3139_v51 = vsel %vm564_vm1, %v621_v63, %v623_v49  ;;  %v389_v49 = vld [vmem:[%s3703_s1 + $0x410] sm:$0xff] }
 0x11b   : > { %3774 = vst [vmem:[#allocation31_spill] sm:$0xff] %v3132_v52  ;;  %1289 = vmatpush.msra.mxu1 %v341_v6  ;;  %v625_v55 = vrot.slane %v3112_v61, 2  ;;  %1628 = vmatpush.msra.mxu0 %v389_v49 }
 0x11c   : > { %v3119_v37 = vadd.f32 %v1195_v31, %v1083_v57  ;;  %906 = vmatmul.f32.gmra.mxu1 %v3083_v30  ;;  %1019 = vmatmul.f32.gmra.mxu2 %v3108_v5 }
 0x11e   : > { %3773 = vst [vmem:[#allocation30_spill] sm:$0xff] %v3119_v37  ;;  %1132 = vmatmul.f32.gmra.mxu3 %v3112_v61  ;;  %v243_v37 = vld [vmem:[%s2305_s26 + $0x130] sm:$0x3] }
 0x11f   : > { %v972_v31 = vpop.f32.mrf.mxu2  ;;  %v1198_v14 = vpop.f32.mrf.mxu0  ;;  %v515_v5 = vrot.slane %v243_v37, 1 }
 0x120   : > { %v973_v57 = vadd.f32 %v972_v31, %v860_v21  ;;  %v626_v21 = vrot.slane %v3116_v4, 2 }
 0x121   : > { %v862_v36 = vpop.f32.mrf.mxu1  ;;  %v1085_v18 = vpop.f32.mrf.mxu3  ;;  %v3154_v31 = vsel %vm451_vm0, %v513_v34, %v515_v5 }
 0x122   : > { %v1086_v1 = vadd.f32 %v1085_v18, %v973_v57  ;;  %1245 = vmatmul.f32.gmra.mxu0 %v3132_v52  ;;  %v863_v63 = vadd.f32 %v862_v36, %v2973_v24  ;;  %v3157_v18 = vsel %vm564_vm1, %v625_v55, %v626_v21  ;;  %v3161_v24 = vld [vmem:[%s2305_s26 + $0x138] sm:$0xff]  ;;  %v3165_v36 = vld [vmem:[%s2305_s26 + $0x140] sm:$0xff]  ;;  %v356_v55 = vld [vmem:[%s3703_s1 + $0x308] sm:$0xff] }
 0x123   : > { %3776 = vst [vmem:[#allocation33_spill] sm:$0xff] %v3157_v18  ;;  %v518_v5 = vrot.slane %v3165_v36, 1  ;;  %1403 = vmatpush.msra.mxu2 %v356_v55 }
 0x124   : > { %v3142_v30 = vadd.f32 %v1198_v14, %v1086_v1  ;;  %909 = vmatmul.f32.gmra.mxu1 %v3105_v22  ;;  %1022 = vmatmul.f32.gmra.mxu2 %v3139_v51  ;;  %3777 = vst [vmem:[#allocation34_spill] sm:$0xff] %v3161_v24 }
 0x125   : > { %3778 = vst [vmem:[#allocation35_spill] sm:$0xff] %v3165_v36 }
 0x126   : > { %3775 = vst [vmem:[#allocation32_spill] sm:$0xff] %v3142_v30  ;;  %1135 = vmatmul.f32.gmra.mxu3 %v3116_v4  ;;  %v517_v4 = vrot.slane %v3161_v24, 1 }
 0x127   : > { %v975_v1 = vpop.f32.mrf.mxu2  ;;  %v1201_v41 = vpop.f32.mrf.mxu0 }
 0x128   : > { %v976_v14 = vadd.f32 %v975_v1, %v863_v63  ;;  %v628_v63 = vrot.slane %v243_v37, 2  ;;  %v372_v1 = vld [vmem:[%s3703_s1 + $0x388] sm:$0xff] }
 0x129   : > { %v865_v57 = vpop.f32.mrf.mxu1  ;;  %v1088_v6 = vpop.f32.mrf.mxu3  ;;  %1516 = vmatpush.msra.mxu3 %v372_v1  ;;  %v340_v37 = vld [vmem:[%s3703_s1 + $0x288] sm:$0xff] }
 0x12a   : > { %v1089_v30 = vadd.f32 %v1088_v6, %v976_v14  ;;  %1248 = vmatmul.f32.gmra.mxu0 %v3154_v31  ;;  %v866_v49 = vadd.f32 %v865_v57, %v2768_v27  ;;  %v3181_v14 = vsel %vm451_vm0, %v517_v4, %v518_v5  ;;  %v3188_v57 = vsel %vm564_vm1, %v626_v21, %v628_v63  ;;  %v388_v63 = vld [vmem:[%s3703_s1 + $0x408] sm:$0xff] }
 0x12b   : > { %3780 = vst [vmem:[#allocation37_spill] sm:$0xff] %v3181_v14  ;;  %1290 = vmatpush.msra.mxu1 %v340_v37  ;;  %v630_v4 = vrot.slane %v3161_v24, 2  ;;  %1629 = vmatpush.msra.mxu0 %v388_v63 }
 0x12c   : > { %v3168_v34 = vadd.f32 %v1201_v41, %v1089_v30  ;;  %912 = vmatmul.f32.gmra.mxu1 %v3132_v52  ;;  %1025 = vmatmul.f32.gmra.mxu2 %v3157_v18 }
 0x12e   : > { %3779 = vst [vmem:[#allocation36_spill] sm:$0xff] %v3168_v34  ;;  %1138 = vmatmul.f32.gmra.mxu3 %v3161_v24  ;;  %v246_v34 = vld [vmem:[%s2305_s26 + $0x148] sm:$0x3] }
 0x12f   : > { %v978_v30 = vpop.f32.mrf.mxu2  ;;  %v1204_v41 = vpop.f32.mrf.mxu0  ;;  %v520_v52 = vrot.slane %v246_v34, 1 }
 0x130   : > { %v979_v6 = vadd.f32 %v978_v30, %v866_v49  ;;  %v631_v49 = vrot.slane %v3165_v36, 2 }
 0x131   : > { %v868_v55 = vpop.f32.mrf.mxu1  ;;  %v1091_v27 = vpop.f32.mrf.mxu3  ;;  %v3203_v30 = vsel %vm451_vm0, %v518_v5, %v520_v52 }
 0x132   : > { %v1092_v18 = vadd.f32 %v1091_v27, %v979_v6  ;;  %1251 = vmatmul.f32.gmra.mxu0 %v3181_v14  ;;  %v869_v21 = vadd.f32 %v868_v55, %v2796_v44  ;;  %3782 = vst [vmem:[#allocation39_spill] sm:$0xff] %v3203_v30  ;;  %v3206_v27 = vsel %vm564_vm1, %v630_v4, %v631_v49  ;;  %v3210_v44 = vld [vmem:[%s2305_s26 + $0x150] sm:$0xff]  ;;  %v355_v4 = vld [vmem:[%s3703_s1 + $0x300] sm:$0xff] }
 0x133   : > { %3783 = vst [vmem:[#allocation40_spill] sm:$0xff] %v3206_v27  ;;  %v522_v55 = vrot.slane %v3210_v44, 1  ;;  %1404 = vmatpush.msra.mxu2 %v355_v4 }
 0x134   : > { %v3191_v61 = vadd.f32 %v1204_v41, %v1092_v18  ;;  %915 = vmatmul.f32.gmra.mxu1 %v3154_v31  ;;  %1028 = vmatmul.f32.gmra.mxu2 %v3188_v57  ;;  %3784 = vst [vmem:[#allocation41_spill] sm:$0xff] %v3210_v44 }
 0x136   : > { %3781 = vst [vmem:[#allocation38_spill] sm:$0xff] %v3191_v61  ;;  %1141 = vmatmul.f32.gmra.mxu3 %v3165_v36  ;;  %v3214_v36 = vld [vmem:[%s2305_s26 + $0x158] sm:$0xff] }
 0x137   : > { %v981_v18 = vpop.f32.mrf.mxu2  ;;  %v1207_v1 = vpop.f32.mrf.mxu0  ;;  %3785 = vst [vmem:[#allocation42_spill] sm:$0xff] %v3214_v36  ;;  %v523_v52 = vrot.slane %v3214_v36, 1 }
 0x138   : > { %v982_v41 = vadd.f32 %v981_v18, %v869_v21  ;;  %v633_v21 = vrot.slane %v246_v34, 2  ;;  %v371_v18 = vld [vmem:[%s3703_s1 + $0x380] sm:$0xff] }
 0x139   : > { %v871_v6 = vpop.f32.mrf.mxu1  ;;  %v1094_v37 = vpop.f32.mrf.mxu3  ;;  %1517 = vmatpush.msra.mxu3 %v371_v18  ;;  %v339_v34 = vld [vmem:[%s3703_s1 + $0x280] sm:$0xff] }
 0x13a   : > { %v1095_v61 = vadd.f32 %v1094_v37, %v982_v41  ;;  %1254 = vmatmul.f32.gmra.mxu0 %v3203_v30  ;;  %v872_v63 = vadd.f32 %v871_v6, %v2819_v2  ;;  %v3230_v41 = vsel %vm451_vm0, %v522_v55, %v523_v52  ;;  %v3237_v6 = vsel %vm564_vm1, %v631_v49, %v633_v21  ;;  %v387_v21 = vld [vmem:[%s3703_s1 + $0x400] sm:$0xff] }
 0x13b   : > { %3787 = vst [vmem:[#allocation44_spill] sm:$0xff] %v3237_v6  ;;  %1291 = vmatpush.msra.mxu1 %v339_v34  ;;  %v635_v55 = vrot.slane %v3210_v44, 2  ;;  %1630 = vmatpush.msra.mxu0 %v387_v21 }
 0x13c   : > { %v3217_v5 = vadd.f32 %v1207_v1, %v1095_v61  ;;  %918 = vmatmul.f32.gmra.mxu1 %v3181_v14  ;;  %1031 = vmatmul.f32.gmra.mxu2 %v3206_v27 }
 0x13e   : > { %3786 = vst [vmem:[#allocation43_spill] sm:$0xff] %v3217_v5  ;;  %1144 = vmatmul.f32.gmra.mxu3 %v3210_v44  ;;  %v249_v5 = vld [vmem:[%s2305_s26 + $0x160] sm:$0x3]  ;;  %v252_v44 = vld [vmem:[%s2305_s26 + $0x178] sm:$0x3] }
 0x13f   : > { %v984_v61 = vpop.f32.mrf.mxu2  ;;  %v1210_v1 = vpop.f32.mrf.mxu0  ;;  %v525_v14 = vrot.slane %v249_v5, 1 }
 0x140   : > { %v985_v37 = vadd.f32 %v984_v61, %v872_v63  ;;  %v636_v63 = vrot.slane %v3214_v36, 2 }
 0x141   : > { %v874_v4 = vpop.f32.mrf.mxu1  ;;  %v1097_v2 = vpop.f32.mrf.mxu3  ;;  %v3252_v61 = vsel %vm451_vm0, %v523_v52, %v525_v14 }
 0x142   : > { %v1098_v27 = vadd.f32 %v1097_v2, %v985_v37  ;;  %1257 = vmatmul.f32.gmra.mxu0 %v3230_v41  ;;  %v875_v49 = vadd.f32 %v874_v4, %v2849_v19  ;;  %v3255_v2 = vsel %vm564_vm1, %v635_v55, %v636_v63  ;;  %v3259_v19 = vld [vmem:[%s2305_s26 + $0x168] sm:$0xff]  ;;  %v638_v55 = vrot.slane %v249_v5, 2 }
 0x143   : > { %3789 = vst [vmem:[#allocation46_spill] sm:$0xff] %v3259_v19  ;;  %v527_v4 = vrot.slane %v3259_v19, 1  ;;  %v530_v5 = vrot.slane %v252_v44, 1 }
 0x144   : > { %v3240_v24 = vadd.f32 %v1210_v1, %v1098_v27  ;;  %921 = vmatmul.f32.gmra.mxu1 %v3203_v30  ;;  %1034 = vmatmul.f32.gmra.mxu2 %v3237_v6 }
 0x146   : > { %3788 = vst [vmem:[#allocation45_spill] sm:$0xff] %v3240_v24  ;;  %1147 = vmatmul.f32.gmra.mxu3 %v3214_v36  ;;  %v3263_v36 = vld [vmem:[%s2305_s26 + $0x170] sm:$0xff] }
 0x147   : > { %v987_v27 = vpop.f32.mrf.mxu2  ;;  %v1213_v18 = vpop.f32.mrf.mxu0  ;;  %3790 = vst [vmem:[#allocation47_spill] sm:$0xff] %v3263_v36  ;;  %v528_v14 = vrot.slane %v3263_v36, 1 }
 0x148   : > { %v988_v1 = vadd.f32 %v987_v27, %v875_v49 }
 0x149   : > { %v877_v37 = vpop.f32.mrf.mxu1  ;;  %v1100_v34 = vpop.f32.mrf.mxu3 }
 0x14a   : > { %v1101_v24 = vadd.f32 %v1100_v34, %v988_v1  ;;  %1260 = vmatmul.f32.gmra.mxu0 %v3252_v61  ;;  %v878_v49 = vadd.f32 %v877_v37, %v2872_v39  ;;  %v3273_v1 = vsel %vm451_vm0, %v527_v4, %v528_v14  ;;  %v640_v37 = vrot.slane %v3259_v19, 2 }
 0x14b   : > { %v641_v4 = vrot.slane %v3263_v36, 2 }
 0x14c   : > { %v3266_v52 = vadd.f32 %v1213_v18, %v1101_v24  ;;  %924 = vmatmul.f32.gmra.mxu1 %v3230_v41  ;;  %1037 = vmatmul.f32.gmra.mxu2 %v3255_v2  ;;  %v3277_v24 = vsel %vm564_vm1, %v636_v63, %v638_v55  ;;  %v3289_v55 = vsel %vm451_vm0, %v528_v14, %v530_v5  ;;  %v643_v5 = vrot.slane %v252_v44, 2 }
 0x14d   : > { %3792 = vst [vmem:[#allocation49_spill] sm:$0xff] %v3277_v24 }
 0x14e   : > { %3791 = vst [vmem:[#allocation48_spill] sm:$0xff] %v3266_v52  ;;  %1150 = vmatmul.f32.gmra.mxu3 %v3259_v19  ;;  %v3298_v19 = vld [vmem:[%s2305_s26 + $0x180] sm:$0xff] }
 0x14f   : > { %v990_v21 = vpop.f32.mrf.mxu2  ;;  %v1216_v27 = vpop.f32.mrf.mxu0 }
 0x150   : > { %v991_v34 = vadd.f32 %v990_v21, %v878_v49 }
 0x151   : > { %v880_v6 = vpop.f32.mrf.mxu1  ;;  %v1103_v30 = vpop.f32.mrf.mxu3 }
 0x152   : > { %v1104_v18 = vadd.f32 %v1103_v30, %v991_v34  ;;  %1263 = vmatmul.f32.gmra.mxu0 %v3273_v1  ;;  %v881_v49 = vadd.f32 %v880_v6, %v2902_v12  ;;  %v680_v12 = vrot.slane %v3298_v19, 1 }
 0x154   : > { %v3280_v39 = vadd.f32 %v1216_v27, %v1104_v18  ;;  %927 = vmatmul.f32.gmra.mxu1 %v3252_v61  ;;  %1040 = vmatmul.f32.gmra.mxu2 %v3277_v24  ;;  %v3292_v27 = vld [vmem:[%s2305_s26 + $0x188] sm:$0xff] }
 0x155   : > { %v681_v6 = vrot.slane %v3292_v27, 1 }
 0x156   : > { %3793 = vst [vmem:[#allocation50_spill] sm:$0xff] %v3280_v39  ;;  %1153 = vmatmul.f32.gmra.mxu3 %v3263_v36  ;;  %v3295_v39 = vsel %vm564_vm1, %v640_v37, %v641_v4  ;;  %v3313_v36 = vld [vmem:[%s2305_s26 + $0x190] sm:$0x3] }
 0x157   : > { %v993_v63 = vpop.f32.mrf.mxu2  ;;  %v1219_v30 = vpop.f32.mrf.mxu0 }
 0x158   : > { %v994_v21 = vadd.f32 %v993_v63, %v881_v49 }
 0x159   : > { %v883_v34 = vpop.f32.mrf.mxu1  ;;  %v1106_v18 = vpop.f32.mrf.mxu3 }
 0x15a   : > { %v1107_v52 = vadd.f32 %v1106_v18, %v994_v21  ;;  %1266 = vmatmul.f32.gmra.mxu0 %v3289_v55  ;;  %v884_v37 = vadd.f32 %v883_v34, %v2925_v59  ;;  %v3310_v21 = vsel %vm451_vm0, %v680_v12, %v681_v6  ;;  %v683_v59 = vrot.slane %v3313_v36, 1 }
 0x15c   : > { %v3303_v14 = vadd.f32 %v1219_v30, %v1107_v52  ;;  %930 = vmatmul.f32.gmra.mxu1 %v3273_v1  ;;  %1043 = vmatmul.f32.gmra.mxu2 %v3295_v39  ;;  %v3316_v30 = vsel %vm564_vm1, %v641_v4, %v643_v5  ;;  %v3327_v4 = vsel %vm451_vm0, %v681_v6, %v683_v59 }
 0x15e   : > { %3794 = vst [vmem:[#allocation51_spill] sm:$0xff] %v3303_v14  ;;  %1156 = vmatmul.f32.gmra.mxu3 %v3298_v19 }
 0x15f   : > { %v996_v49 = vpop.f32.mrf.mxu2  ;;  %v1222_v63 = vpop.f32.mrf.mxu0 }
 0x160   : > { %v997_v18 = vadd.f32 %v996_v49, %v884_v37 }
 0x161   : > { %v886_v24 = vpop.f32.mrf.mxu1  ;;  %v1109_v52 = vpop.f32.mrf.mxu3 }
 0x162   : > { %v1110_v14 = vadd.f32 %v1109_v52, %v997_v18  ;;  %1269 = vmatmul.f32.gmra.mxu0 %v3310_v21  ;;  %v887_v34 = vadd.f32 %v886_v24, %v2955_v50 }
 0x164   : > { %v3320_v44 = vadd.f32 %v1222_v63, %v1110_v14  ;;  %933 = vmatmul.f32.gmra.mxu1 %v3289_v55  ;;  %1046 = vmatmul.f32.gmra.mxu2 %v3316_v30  ;;  %v2164_v63 = vld [vmem:[%s2305_s26 + $0x30] sm:$0xff] }
 0x166   : > { %3795 = vst [vmem:[#allocation52_spill] sm:$0xff] %v3320_v44  ;;  %1159 = vmatmul.f32.gmra.mxu3 %v3292_v27 }
 0x167   : > { %v999_v12 = vpop.f32.mrf.mxu2  ;;  %v1225_v37 = vpop.f32.mrf.mxu0 }
 0x168   : > { %v1000_v5 = vadd.f32 %v999_v12, %v887_v34 }
 0x169   : > { %v889_v49 = vpop.f32.mrf.mxu1  ;;  %v1112_v18 = vpop.f32.mrf.mxu3 }
 0x16a   : > { %v1113_v52 = vadd.f32 %v1112_v18, %v1000_v5  ;;  %1272 = vmatmul.f32.gmra.mxu0 %v3327_v4  ;;  %v890_v50 = vadd.f32 %v889_v49, %v2785_v10 }
 0x16c   : > { %v3330_v14 = vadd.f32 %v1225_v37, %v1113_v52  ;;  %1292 = vmatmul.f32.vlgmr.msra.gmra.mxu1 %v2661_v33  ;;  %1405 = vmatmul.f32.vlgmr.msra.gmra.mxu2 %v2164_v63  ;;  %v2165_v33 = vld [vmem:[%s2305_s26 + $0x38] sm:$0xff] }
 0x16e   : > { %1518 = vmatmul.f32.vlgmr.msra.gmra.mxu3 %v2677_v40 }
 0x16f   : > { %v1002_v24 = vpop.f32.mrf.mxu2  ;;  %v1228_v6 = vpop.f32.mrf.mxu0 }
 0x170   : > { %v1003_v59 = vadd.f32 %v1002_v24, %v890_v50 }
 0x171   : > { %v892_v34 = vpop.f32.mrf.mxu1  ;;  %v1115_v12 = vpop.f32.mrf.mxu3 }
 0x172   : > { %v1116_v44 = vadd.f32 %v1115_v12, %v1003_v59  ;;  %1631 = vmatmul.f32.vlgmr.msra.gmra.mxu0 %v2695_v54  ;;  %v893_v37 = vadd.f32 %v892_v34, %v2812_v56 }
 0x174   : > { %v3337_v5 = vadd.f32 %v1228_v6, %v1116_v44  ;;  %1295 = vmatmul.f32.gmra.mxu1 %v2681_v43  ;;  %1408 = vmatmul.f32.gmra.mxu2 %v2165_v33  ;;  %v2166_v43 = vld [vmem:[%s2305_s26 + $0x48] sm:$0xff] }
 0x176   : > { %1521 = vmatmul.f32.gmra.mxu3 %v2692_v53 }
 0x177   : > { %v1005_v40 = vpop.f32.mrf.mxu2  ;;  %v1231_v10 = vpop.f32.mrf.mxu0 }
 0x178   : > { %v1006_v49 = vadd.f32 %v1005_v40, %v893_v37 }
 0x179   : > { %v895_v18 = vpop.f32.mrf.mxu1  ;;  %v1118_v52 = vpop.f32.mrf.mxu3 }
 0x17a   : > { %v1119_v63 = vadd.f32 %v1118_v52, %v1006_v49  ;;  %1634 = vmatmul.f32.gmra.mxu0 %v2717_v3  ;;  %v896_v44 = vadd.f32 %v895_v18, %v2838_v9 }
 0x17c   : > { %v3344_v50 = vadd.f32 %v1231_v10, %v1119_v63  ;;  %1298 = vmatmul.f32.gmra.mxu1 %v2695_v54  ;;  %1411 = vmatmul.f32.gmra.mxu2 %v2166_v43  ;;  %v2167_v54 = vld [vmem:[%s2305_s26 + $0x50] sm:$0xff] }
 0x17e   : > { %1524 = vmatmul.f32.gmra.mxu3 %v2710_v0 }
 0x17f   : > { %v1008_v53 = vpop.f32.mrf.mxu2  ;;  %v1234_v56 = vpop.f32.mrf.mxu0 }
 0x180   : > { %v1009_v24 = vadd.f32 %v1008_v53, %v896_v44 }
 0x181   : > { %v898_v6 = vpop.f32.mrf.mxu1  ;;  %v1121_v59 = vpop.f32.mrf.mxu3 }
 0x182   : > { %v1122_v34 = vadd.f32 %v1121_v59, %v1009_v24  ;;  %1637 = vmatmul.f32.gmra.mxu0 %v2732_v42  ;;  %v899_v33 = vadd.f32 %v898_v6, %v2865_v32 }
 0x184   : > { %v3351_v12 = vadd.f32 %v1234_v56, %v1122_v34  ;;  %1301 = vmatmul.f32.gmra.mxu1 %v2717_v3  ;;  %1414 = vmatmul.f32.gmra.mxu2 %v2167_v54  ;;  %v2168_v3 = vld [vmem:[%s2305_s26 + $0x60] sm:$0xff] }
 0x186   : > { %1527 = vmatmul.f32.gmra.mxu3 %v2729_v26 }
 0x187   : > { %v1011_v0 = vpop.f32.mrf.mxu2  ;;  %v1237_v9 = vpop.f32.mrf.mxu0 }
 0x188   : > { %v1012_v37 = vadd.f32 %v1011_v0, %v899_v33 }
 0x189   : > { %v901_v40 = vpop.f32.mrf.mxu1  ;;  %v1124_v10 = vpop.f32.mrf.mxu3 }
 0x18a   : > { %v1125_v49 = vadd.f32 %v1124_v10, %v1012_v37  ;;  %1640 = vmatmul.f32.gmra.mxu0 %v2754_v20  ;;  %v902_v52 = vadd.f32 %v901_v40, %v2891_v62 }
 0x18c   : > { %v3358_v18 = vadd.f32 %v1237_v9, %v1125_v49  ;;  %1304 = vmatmul.f32.gmra.mxu1 %v2732_v42  ;;  %1417 = vmatmul.f32.gmra.mxu2 %v2168_v3  ;;  %v2169_v42 = vld [vmem:[%s2305_s26 + $0x68] sm:$0xff] }
 0x18e   : > { %1530 = vmatmul.f32.gmra.mxu3 %v2747_v13 }
 0x18f   : > { %v1014_v26 = vpop.f32.mrf.mxu2  ;;  %v1240_v32 = vpop.f32.mrf.mxu0 }
 0x190   : > { %v1015_v63 = vadd.f32 %v1014_v26, %v902_v52 }
 0x191   : > { %v904_v43 = vpop.f32.mrf.mxu1  ;;  %v1127_v44 = vpop.f32.mrf.mxu3 }
 0x192   : > { %v1128_v53 = vadd.f32 %v1127_v44, %v1015_v63  ;;  %1643 = vmatmul.f32.gmra.mxu0 %v2771_v28  ;;  %v905_v24 = vadd.f32 %v904_v43, %v2918_v16  ;;  %v3797_v44 = vld [vmem:[#allocation7_spill] sm:$0xff] }
 0x194   : > { %v3365_v56 = vadd.f32 %v1240_v32, %v1128_v53  ;;  %1307 = vmatmul.f32.gmra.mxu1 %v2754_v20  ;;  %1420 = vmatmul.f32.gmra.mxu2 %v2169_v42  ;;  %v2170_v20 = vld [vmem:[%s2305_s26 + $0x78] sm:$0xff]  ;;  %v3798_v42 = vld [vmem:[#allocation2_spill] sm:$0xff] }
 0x196   : > { %1533 = vmatmul.f32.gmra.mxu3 %v2766_v25 }
 0x197   : > { %v1017_v13 = vpop.f32.mrf.mxu2  ;;  %v1243_v62 = vpop.f32.mrf.mxu0 }
 0x198   : > { %v1018_v6 = vadd.f32 %v1017_v13, %v905_v24 }
 0x199   : > { %v907_v59 = vpop.f32.mrf.mxu1  ;;  %v1130_v34 = vpop.f32.mrf.mxu3 }
 0x19a   : > { %v1131_v54 = vadd.f32 %v1130_v34, %v1018_v6  ;;  %1646 = vmatmul.f32.gmra.mxu0 %v2801_v48  ;;  %v908_v0 = vadd.f32 %v907_v59, %v2944_v29  ;;  %v3796_v29 = vld [vmem:[#allocation3_spill] sm:$0xff] }
 0x19c   : > { %v3372_v33 = vadd.f32 %v1243_v62, %v1131_v54  ;;  %1310 = vmatmul.f32.gmra.mxu1 %v2771_v28  ;;  %1423 = vmatmul.f32.gmra.mxu2 %v2170_v20  ;;  %v2171_v28 = vld [vmem:[%s2305_s26 + $0x80] sm:$0xff] }
 0x19d   : > { %v3800_v20 = vld [vmem:[#allocation10_spill] sm:$0xff] }
 0x19e   : > { %1536 = vmatmul.f32.gmra.mxu3 %v2790_v38 }
 0x19f   : > { %v1020_v25 = vpop.f32.mrf.mxu2  ;;  %v1246_v16 = vpop.f32.mrf.mxu0 }
 0x1a0   : > { %v1021_v9 = vadd.f32 %v1020_v25, %v908_v0  ;;  %v3801_v25 = vld [vmem:[#allocation4_spill] sm:$0xff] }
 0x1a1   : > { %v910_v37 = vpop.f32.mrf.mxu1  ;;  %v1133_v40 = vpop.f32.mrf.mxu3 }
 0x1a2   : > { %v1134_v10 = vadd.f32 %v1133_v40, %v1021_v9  ;;  %1649 = vmatmul.f32.gmra.mxu0 %v2824_v46  ;;  %v911_v3 = vadd.f32 %v910_v37, %v2971_v35  ;;  %v3799_v35 = vld [vmem:[#allocation5_spill] sm:$0xff]  ;;  %v3802_v9 = vld [vmem:[#allocation8_spill] sm:$0xff] }
 0x1a4   : > { %v3379_v49 = vadd.f32 %v1246_v16, %v1134_v10  ;;  %1313 = vmatmul.f32.gmra.mxu1 %v2801_v48  ;;  %1426 = vmatmul.f32.gmra.mxu2 %v2171_v28  ;;  %v2172_v48 = vld [vmem:[%s2305_s26 + $0x90] sm:$0xff] }
 0x1a6   : > { %1539 = vmatmul.f32.gmra.mxu3 %v3796_v29 }
 0x1a7   : > { %v1023_v38 = vpop.f32.mrf.mxu2  ;;  %v1249_v52 = vpop.f32.mrf.mxu0 }
 0x1a8   : > { %v1024_v26 = vadd.f32 %v1023_v38, %v911_v3  ;;  %v3803_v38 = vld [vmem:[#allocation13_spill] sm:$0xff] }
 0x1a9   : > { %v913_v32 = vpop.f32.mrf.mxu1  ;;  %v1136_v63 = vpop.f32.mrf.mxu3 }
 0x1aa   : > { %v1137_v43 = vadd.f32 %v1136_v63, %v1024_v26  ;;  %1652 = vmatmul.f32.gmra.mxu0 %v3797_v44  ;;  %v914_v24 = vadd.f32 %v913_v32, %v3798_v42  ;;  %v2174_v26 = vld [vmem:[%s2305_s26 + $0xa8] sm:$0xff]  ;;  %v3804_v32 = vld [vmem:[#allocation6_spill] sm:$0xff] }
 0x1ac   : > { %v3386_v53 = vadd.f32 %v1249_v52, %v1137_v43  ;;  %1316 = vmatmul.f32.gmra.mxu1 %v2824_v46  ;;  %1429 = vmatmul.f32.gmra.mxu2 %v2172_v48  ;;  %v2173_v46 = vld [vmem:[%s2305_s26 + $0x98] sm:$0xff]  ;;  %v3805_v43 = vld [vmem:[#allocation11_spill] sm:$0xff] }
 0x1ae   : > { %1542 = vmatmul.f32.gmra.mxu3 %v3799_v35 }
 0x1af   : > { %v1026_v13 = vpop.f32.mrf.mxu2  ;;  %v1252_v62 = vpop.f32.mrf.mxu0 }
 0x1b0   : > { %v1027_v6 = vadd.f32 %v1026_v13, %v914_v24 }
 0x1b1   : > { %v916_v59 = vpop.f32.mrf.mxu1  ;;  %v1139_v34 = vpop.f32.mrf.mxu3 }
 0x1b2   : > { %v1140_v54 = vadd.f32 %v1139_v34, %v1027_v6  ;;  %1655 = vmatmul.f32.gmra.mxu0 %v3800_v20  ;;  %v917_v16 = vadd.f32 %v916_v59, %v3801_v25  ;;  %v2175_v59 = vld [vmem:[%s2305_s26 + $0xb0] sm:$0xff]  ;;  %v3807_v34 = vld [vmem:[#allocation9_spill] sm:$0xff] }
 0x1b4   : > { %v3393_v0 = vadd.f32 %v1252_v62, %v1140_v54  ;;  %1319 = vmatmul.f32.gmra.mxu1 %v3797_v44  ;;  %1432 = vmatmul.f32.gmra.mxu2 %v2173_v46  ;;  %v3806_v62 = vld [vmem:[#allocation16_spill] sm:$0xff] }
 0x1b6   : > { %1545 = vmatmul.f32.gmra.mxu3 %v3802_v9 }
 0x1b7   : > { %v1029_v37 = vpop.f32.mrf.mxu2  ;;  %v1255_v40 = vpop.f32.mrf.mxu0 }
 0x1b8   : > { %v1030_v10 = vadd.f32 %v1029_v37, %v917_v16 }
 0x1b9   : > { %v919_v28 = vpop.f32.mrf.mxu1  ;;  %v1142_v3 = vpop.f32.mrf.mxu3 }
 0x1ba   : > { %v1143_v29 = vadd.f32 %v1142_v3, %v1030_v10  ;;  %1658 = vmatmul.f32.gmra.mxu0 %v3803_v38  ;;  %v920_v63 = vadd.f32 %v919_v28, %v3804_v32  ;;  %v3809_v10 = vld [vmem:[#allocation19_spill] sm:$0xff]  ;;  %v2176_v3 = vld [vmem:[%s2305_s26 + $0xc0] sm:$0xff] }
 0x1bc   : > { %v3400_v52 = vadd.f32 %v1255_v40, %v1143_v29  ;;  %1322 = vmatmul.f32.gmra.mxu1 %v3800_v20  ;;  %1435 = vmatmul.f32.gmra.mxu2 %v2174_v26  ;;  %v3808_v20 = vld [vmem:[#allocation14_spill] sm:$0xff]  ;;  %v3810_v29 = vld [vmem:[#allocation12_spill] sm:$0xff]  ;;  %v3811_v26 = vld [vmem:[#allocation17_spill] sm:$0xff] }
 0x1be   : > { %1548 = vmatmul.f32.gmra.mxu3 %v3805_v43 }
 0x1bf   : > { %v1032_v44 = vpop.f32.mrf.mxu2  ;;  %v1258_v48 = vpop.f32.mrf.mxu0 }
 0x1c0   : > { %v1033_v42 = vadd.f32 %v1032_v44, %v920_v63 }
 0x1c1   : > { %v922_v24 = vpop.f32.mrf.mxu1  ;;  %v1145_v35 = vpop.f32.mrf.mxu3 }
 0x1c2   : > { %v1146_v13 = vadd.f32 %v1145_v35, %v1033_v42  ;;  %1661 = vmatmul.f32.gmra.mxu0 %v3806_v62  ;;  %v923_v54 = vadd.f32 %v922_v24, %v3807_v34  ;;  %v3812_v24 = vld [vmem:[#allocation21_spill] sm:$0xff] }
 0x1c4   : > { %v3407_v6 = vadd.f32 %v1258_v48, %v1146_v13  ;;  %1325 = vmatmul.f32.gmra.mxu1 %v3803_v38  ;;  %1438 = vmatmul.f32.gmra.mxu2 %v2175_v59  ;;  %v2177_v13 = vld [vmem:[%s2305_s26 + $0xc8] sm:$0xff] }
 0x1c5   : > { %v3813_v59 = vld [vmem:[#allocation15_spill] sm:$0xff] }
 0x1c6   : > { %1551 = vmatmul.f32.gmra.mxu3 %v3808_v20 }
 0x1c7   : > { %v1035_v46 = vpop.f32.mrf.mxu2  ;;  %v1261_v25 = vpop.f32.mrf.mxu0 }
 0x1c8   : > { %v1036_v16 = vadd.f32 %v1035_v46, %v923_v54 }
 0x1c9   : > { %v925_v9 = vpop.f32.mrf.mxu1  ;;  %v1148_v37 = vpop.f32.mrf.mxu3 }
 0x1ca   : > { %v1149_v40 = vadd.f32 %v1148_v37, %v1036_v16  ;;  %1664 = vmatmul.f32.gmra.mxu0 %v3809_v10  ;;  %v926_v38 = vadd.f32 %v925_v9, %v3810_v29  ;;  %v2178_v37 = vld [vmem:[%s2305_s26 + $0xd8] sm:$0xff] }
 0x1cc   : > { %v3414_v28 = vadd.f32 %v1261_v25, %v1149_v40  ;;  %1328 = vmatmul.f32.gmra.mxu1 %v3806_v62  ;;  %1441 = vmatmul.f32.gmra.mxu2 %v2176_v3  ;;  %v2209_v62 = vmov 0.0   ;;  %v3814_v40 = vld [vmem:[#allocation18_spill] sm:$0xff] }
 0x1cd   : > { %1844 = vst [vmem:[%s3425_s8 + $0x18] sm:$0xff] %v2209_v62 }
 0x1ce   : > { %1554 = vmatmul.f32.gmra.mxu3 %v3811_v26  ;;  %1845 = vst [vmem:[%s3425_s8 + $0x20] sm:$0xff] %v2209_v62 }
 0x1cf   : > { %v1038_v32 = vpop.f32.mrf.mxu2  ;;  %v1264_v63 = vpop.f32.mrf.mxu0  ;;  %1841 = vst [vmem:[%s3425_s8] sm:$0xff] %v2209_v62 }
 0x1d0   : > { %v1039_v43 = vadd.f32 %v1038_v32, %v926_v38  ;;  %1842 = vst [vmem:[%s3425_s8 + $0x8] sm:$0xff] %v2209_v62 }
 0x1d1   : > { %v928_v44 = vpop.f32.mrf.mxu1  ;;  %v1151_v48 = vpop.f32.mrf.mxu3  ;;  %1843 = vst [vmem:[%s3425_s8 + $0x10] sm:$0x3] %v2209_v62 }
 0x1d2   : > { %v1152_v42 = vadd.f32 %v1151_v48, %v1039_v43  ;;  %1667 = vmatmul.f32.gmra.mxu0 %v3812_v24  ;;  %v929_v34 = vadd.f32 %v928_v44, %v3813_v59  ;;  %1846 = vst [vmem:[%s3425_s8 + $0x28] sm:$0x3] %v2209_v62  ;;  %v2179_v43 = vld [vmem:[%s2305_s26 + $0xe0] sm:$0xff]  ;;  %v3815_v44 = vld [vmem:[#allocation20_spill] sm:$0xff] }
 0x1d3   : > { %1847 = vst [vmem:[%s3425_s8 + $0x30] sm:$0xff] %v2209_v62 }
 0x1d4   : > { %v3428_v35 = vadd.f32 %v1264_v63, %v1152_v42  ;;  %1331 = vmatmul.f32.gmra.mxu1 %v3809_v10  ;;  %1444 = vmatmul.f32.gmra.mxu2 %v2177_v13  ;;  %1848 = vst [vmem:[%s3425_s8 + $0x38] sm:$0xff] %v2209_v62 }
 0x1d5   : > { %1849 = vst [vmem:[%s3425_s8 + $0x40] sm:$0x3] %v2209_v62 }
 0x1d6   : > { %1557 = vmatmul.f32.gmra.mxu3 %v2976_v8  ;;  %1850 = vst [vmem:[%s3425_s8 + $0x48] sm:$0xff] %v2209_v62 }
 0x1d7   : > { %v1041_v54 = vpop.f32.mrf.mxu2  ;;  %v1267_v20 = vpop.f32.mrf.mxu0  ;;  %1851 = vst [vmem:[%s3425_s8 + $0x50] sm:$0xff] %v2209_v62 }
 0x1d8   : > { %v1042_v46 = vadd.f32 %v1041_v54, %v929_v34  ;;  %1852 = vst [vmem:[%s3425_s8 + $0x58] sm:$0x3] %v2209_v62  ;;  %v2180_v54 = vld [vmem:[%s2305_s26 + $0xf0] sm:$0xff] }
 0x1d9   : > { %v931_v25 = vpop.f32.mrf.mxu1  ;;  %v1154_v16 = vpop.f32.mrf.mxu3  ;;  %1853 = vst [vmem:[%s3425_s8 + $0x60] sm:$0xff] %v2209_v62 }
 0x1da   : > { %v1155_v9 = vadd.f32 %v1154_v16, %v1042_v46  ;;  %1670 = vmatmul.f32.gmra.mxu0 %v3004_v23  ;;  %v932_v10 = vadd.f32 %v931_v25, %v3814_v40  ;;  %1854 = vst [vmem:[%s3425_s8 + $0x68] sm:$0xff] %v2209_v62 }
 0x1db   : > { %1855 = vst [vmem:[%s3425_s8 + $0x70] sm:$0x3] %v2209_v62 }
 0x1dc   : > { %v3449_v8 = vadd.f32 %v1267_v20, %v1155_v9  ;;  %1334 = vmatmul.f32.gmra.mxu1 %v3812_v24  ;;  %1447 = vmatmul.f32.gmra.mxu2 %v2178_v37  ;;  %1856 = vst [vmem:[%s3425_s8 + $0x78] sm:$0xff] %v2209_v62  ;;  %v3816_v20 = vld [vmem:[#allocation22_spill] sm:$0xff] }
 0x1dd   : > { %1857 = vst [vmem:[%s3425_s8 + $0x80] sm:$0xff] %v2209_v62 }
 0x1de   : > { %1560 = vmatmul.f32.gmra.mxu3 %v2997_v7  ;;  %1858 = vst [vmem:[%s3425_s8 + $0x88] sm:$0x3] %v2209_v62 }
 0x1df   : > { %v1044_v3 = vpop.f32.mrf.mxu2  ;;  %v1270_v29 = vpop.f32.mrf.mxu0  ;;  %1859 = vst [vmem:[%s3425_s8 + $0x90] sm:$0xff] %v2209_v62 }
 0x1e0   : > { %v1045_v38 = vadd.f32 %v1044_v3, %v932_v10  ;;  %1860 = vst [vmem:[%s3425_s8 + $0x98] sm:$0xff] %v2209_v62  ;;  %v2181_v10 = vld [vmem:[%s2305_s26 + $0xf8] sm:$0xff]  ;;  %v3817_v3 = vld [vmem:[#allocation23_spill] sm:$0xff] }
 0x1e1   : > { %v934_v26 = vpop.f32.mrf.mxu1  ;;  %v1157_v32 = vpop.f32.mrf.mxu3  ;;  %1861 = vst [vmem:[%s3425_s8 + $0xa0] sm:$0x3] %v2209_v62 }
 0x1e2   : > { %v1158_v63 = vadd.f32 %v1157_v32, %v1045_v38  ;;  %1673 = vmatmul.f32.gmra.mxu0 %v3022_v47  ;;  %v935_v48 = vadd.f32 %v934_v26, %v3815_v44  ;;  %1862 = vst [vmem:[%s3425_s8 + $0xa8] sm:$0xff] %v2209_v62  ;;  %v2182_v44 = vld [vmem:[%s2305_s26 + $0x108] sm:$0xff] }
 0x1e3   : > { %1863 = vst [vmem:[%s3425_s8 + $0xb0] sm:$0xff] %v2209_v62 }
 0x1e4   : > { %v3472_v7 = vadd.f32 %v1270_v29, %v1158_v63  ;;  %1337 = vmatmul.f32.gmra.mxu1 %v3004_v23  ;;  %1450 = vmatmul.f32.gmra.mxu2 %v2179_v43  ;;  %1864 = vst [vmem:[%s3425_s8 + $0xb8] sm:$0x3] %v2209_v62 }
 0x1e5   : > { %1865 = vst [vmem:[%s3425_s8 + $0xc0] sm:$0xff] %v2209_v62 }
 0x1e6   : > { %1563 = vmatmul.f32.gmra.mxu3 %v3019_v45  ;;  %1866 = vst [vmem:[%s3425_s8 + $0xc8] sm:$0xff] %v2209_v62 }
 0x1e7   : > { %v1047_v42 = vpop.f32.mrf.mxu2  ;;  %v1273_v24 = vpop.f32.mrf.mxu0  ;;  %1867 = vst [vmem:[%s3425_s8 + $0xd0] sm:$0x3] %v2209_v62 }
 0x1e8   : > { %v1048_v23 = vadd.f32 %v1047_v42, %v935_v48  ;;  %1868 = vst [vmem:[%s3425_s8 + $0xd8] sm:$0xff] %v2209_v62  ;;  %v3818_v42 = vld [vmem:[#allocation24_spill] sm:$0xff] }
 0x1e9   : > { %v1160_v13 = vpop.f32.mrf.mxu3  ;;  %v1293_v59 = vpop.f32.mrf.mxu1  ;;  %1869 = vst [vmem:[%s3425_s8 + $0xe0] sm:$0xff] %v2209_v62 }
 0x1ea   : > { %v1161_v34 = vadd.f32 %v1160_v13, %v1048_v23  ;;  %1676 = vmatmul.f32.gmra.mxu0 %v3047_v60  ;;  %v1294_v46 = vadd.f32 %v1293_v59, %v3816_v20  ;;  %1870 = vst [vmem:[%s3425_s8 + $0xe8] sm:$0x3] %v2209_v62  ;;  %v3819_v59 = vld [vmem:[#allocation26_spill] sm:$0xff] }
 0x1eb   : > { %1871 = vst [vmem:[%s3425_s8 + $0xf0] sm:$0xff] %v2209_v62 }
 0x1ec   : > { %v3495_v45 = vadd.f32 %v1273_v24, %v1161_v34  ;;  %1340 = vmatmul.f32.gmra.mxu1 %v3022_v47  ;;  %1453 = vmatmul.f32.gmra.mxu2 %v2180_v54  ;;  %1872 = vst [vmem:[%s3425_s8 + $0xf8] sm:$0xff] %v2209_v62 }
 0x1ed   : > { %1873 = vst [vmem:[%s3425_s8 + $0x100] sm:$0x3] %v2209_v62 }
 0x1ee   : > { %1566 = vmatmul.f32.gmra.mxu3 %v3040_v58  ;;  %1874 = vst [vmem:[%s3425_s8 + $0x108] sm:$0xff] %v2209_v62 }
 0x1ef   : > { %v1406_v25 = vpop.f32.mrf.mxu2  ;;  %v1632_v16 = vpop.f32.mrf.mxu0  ;;  %1875 = vst [vmem:[%s3425_s8 + $0x110] sm:$0xff] %v2209_v62 }
 0x1f0   : > { %v1407_v47 = vadd.f32 %v1406_v25, %v1294_v46  ;;  %1876 = vst [vmem:[%s3425_s8 + $0x118] sm:$0x3] %v2209_v62 }
 0x1f1   : > { %v1296_v9 = vpop.f32.mrf.mxu1  ;;  %v1519_v37 = vpop.f32.mrf.mxu3  ;;  %1877 = vst [vmem:[%s3425_s8 + $0x120] sm:$0xff] %v2209_v62 }
 0x1f2   : > { %v1520_v40 = vadd.f32 %v1519_v37, %v1407_v47  ;;  %1679 = vmatmul.f32.gmra.mxu0 %v3065_v15  ;;  %v1297_v29 = vadd.f32 %v1296_v9, %v3817_v3  ;;  %1878 = vst [vmem:[%s3425_s8 + $0x128] sm:$0xff] %v2209_v62  ;;  %v3820_v47 = vld [vmem:[#allocation28_spill] sm:$0xff] }
 0x1f3   : > { %1879 = vst [vmem:[%s3425_s8 + $0x130] sm:$0x3] %v2209_v62  ;;  %v2183_v37 = vld [vmem:[%s2305_s26 + $0x110] sm:$0xff] }
 0x1f4   : > { %v1633_v58 = vadd.f32 %v1632_v16, %v1520_v40  ;;  %1343 = vmatmul.f32.gmra.mxu1 %v3047_v60  ;;  %1456 = vmatmul.f32.gmra.mxu2 %v2181_v10  ;;  %1880 = vst [vmem:[%s3425_s8 + $0x138] sm:$0xff] %v2209_v62  ;;  %v3821_v40 = vld [vmem:[#allocation25_spill] sm:$0xff] }
 0x1f5   : > { %1881 = vst [vmem:[%s3425_s8 + $0x140] sm:$0xff] %v2209_v62 }
 0x1f6   : > { %2048 = vst [vmem:[%s3425_s8 + $0x19] sm:$0xff] %v1633_v58  ;;  %1569 = vmatmul.f32.gmra.mxu3 %v3062_v17  ;;  %v1765_v48 = vmul.f32 %v1633_v58, %v1633_v58 }
 0x1f7   : > { %v1409_v38 = vpop.f32.mrf.mxu2  ;;  %v1635_v26 = vpop.f32.mrf.mxu0  ;;  %1882 = vst [vmem:[%s3425_s8 + $0x148] sm:$0x3] %v2209_v62 }
 0x1f8   : > { %v1410_v60 = vadd.f32 %v1409_v38, %v1297_v29  ;;  %1883 = vst [vmem:[%s3425_s8 + $0x150] sm:$0xff] %v2209_v62 }
 0x1f9   : > { %v1299_v32 = vpop.f32.mrf.mxu1  ;;  %v1522_v63 = vpop.f32.mrf.mxu3  ;;  %1884 = vst [vmem:[%s3425_s8 + $0x158] sm:$0xff] %v2209_v62 }
 0x1fa   : > { %v1523_v43 = vadd.f32 %v1522_v63, %v1410_v60  ;;  %1682 = vmatmul.f32.gmra.mxu0 %v3090_v11  ;;  %v1300_v24 = vadd.f32 %v1299_v32, %v3818_v42  ;;  %1885 = vst [vmem:[%s3425_s8 + $0x160] sm:$0x3] %v2209_v62 }
 0x1fb   : > { %1886 = vst [vmem:[%s3425_s8 + $0x168] sm:$0xff] %v2209_v62 }
 0x1fc   : > { %v1636_v17 = vadd.f32 %v1635_v26, %v1523_v43  ;;  %1346 = vmatmul.f32.gmra.mxu1 %v3065_v15  ;;  %1459 = vmatmul.f32.gmra.mxu2 %v2182_v44  ;;  %1887 = vst [vmem:[%s3425_s8 + $0x170] sm:$0xff] %v2209_v62  ;;  %v3822_v43 = vld [vmem:[#allocation29_spill] sm:$0xff]  ;;  %v3823_v44 = vld [vmem:[#allocation27_spill] sm:$0xff] }
 0x1fd   : > { %1888 = vst [vmem:[%s3425_s8 + $0x178] sm:$0x3] %v2209_v62 }
 0x1fe   : > { %v1728_v23 = vadd.f32 %v1636_v17, %v1633_v58  ;;  %v1766_v13 = vmul.f32 %v1636_v17, %v1636_v17  ;;  %1572 = vmatmul.f32.gmra.mxu3 %v3819_v59  ;;  %1889 = vst [vmem:[%s3425_s8 + $0x180] sm:$0xff] %v2209_v62 }
 0x1ff   : > { %v1412_v15 = vpop.f32.mrf.mxu2  ;;  %v1638_v34 = vpop.f32.mrf.mxu0  ;;  %1890 = vst [vmem:[%s3425_s8 + $0x188] sm:$0xff] %v2209_v62 }
 0x200   : > { %v1797_v54 = vadd.f32 %v1766_v13, %v1765_v48  ;;  %v1413_v20 = vadd.f32 %v1412_v15, %v1300_v24  ;;  %1891 = vst [vmem:[%s3425_s8 + $0x190] sm:$0x3] %v2209_v62 }
 0x201   : > { %v1302_v46 = vpop.f32.mrf.mxu1  ;;  %v1525_v25 = vpop.f32.mrf.mxu3  ;;  %1892 = vst [vmem:[%s3425_s8 + $0x198] sm:$0xff] %v2209_v62 }
 0x202   : > { %v1526_v16 = vadd.f32 %v1525_v25, %v1413_v20  ;;  %1685 = vmatmul.f32.gmra.mxu0 %v3820_v47  ;;  %v1303_v58 = vadd.f32 %v1302_v46, %v3821_v40  ;;  %1893 = vst [vmem:[%s3425_s8 + $0x1a0] sm:$0xff] %v2209_v62  ;;  %v3825_v20 = vld [vmem:[#allocation33_spill] sm:$0xff]  ;;  %v2184_v25 = vld [vmem:[%s2305_s26 + $0x128] sm:$0xff] }
 0x203   : > { %1894 = vst [vmem:[%s3425_s8 + $0x1a8] sm:$0x3] %v2209_v62 }
 0x204   : > { %v1639_v9 = vadd.f32 %v1638_v34, %v1526_v16  ;;  %1349 = vmatmul.f32.gmra.mxu1 %v3090_v11  ;;  %1462 = vmatmul.f32.gmra.mxu2 %v2183_v37  ;;  %2049 = vst [vmem:[%s3425_s8 + $0x21] sm:$0xff] %v1636_v17  ;;  %v3826_v16 = vld [vmem:[#allocation30_spill] sm:$0xff] }
 0x206   : > { %v1729_v10 = vadd.f32 %v1728_v23, %v1639_v9  ;;  %v1767_v3 = vmul.f32 %v1639_v9, %v1639_v9  ;;  %1575 = vmatmul.f32.gmra.mxu3 %v3105_v22  ;;  %2050 = vst [vmem:[%s3425_s8 + $0x31] sm:$0xff] %v1639_v9  ;;  %v3824_v23 = vld [vmem:[#allocation31_spill] sm:$0xff] }
 0x207   : > { %v1415_v29 = vpop.f32.mrf.mxu2  ;;  %v1641_v11 = vpop.f32.mrf.mxu0 }
 0x208   : > { %v1798_v38 = vadd.f32 %v1797_v54, %v1767_v3  ;;  %v1416_v26 = vadd.f32 %v1415_v29, %v1303_v58 }
 0x209   : > { %v1305_v60 = vpop.f32.mrf.mxu1  ;;  %v1528_v32 = vpop.f32.mrf.mxu3 }
 0x20a   : > { %v1529_v63 = vadd.f32 %v1528_v32, %v1416_v26  ;;  %1688 = vmatmul.f32.gmra.mxu0 %v3139_v51  ;;  %v1306_v48 = vadd.f32 %v1305_v60, %v3823_v44  ;;  %v3827_v26 = vld [vmem:[#allocation34_spill] sm:$0xff]  ;;  %v3828_v60 = vld [vmem:[#allocation32_spill] sm:$0xff] }
 0x20c   : > { %v1642_v22 = vadd.f32 %v1641_v11, %v1529_v63  ;;  %1352 = vmatmul.f32.gmra.mxu1 %v3820_v47  ;;  %1465 = vmatmul.f32.gmra.mxu2 %v3822_v43 }
 0x20e   : > { %v1730_v42 = vadd.f32 %v1729_v10, %v1642_v22  ;;  %v1768_v24 = vmul.f32 %v1642_v22, %v1642_v22  ;;  %2051 = vst [vmem:[%s3425_s8 + $0x39] sm:$0xff] %v1642_v22  ;;  %1578 = vmatmul.f32.gmra.mxu3 %v3824_v23 }
 0x20f   : > { %v1418_v13 = vpop.f32.mrf.mxu2  ;;  %v1644_v59 = vpop.f32.mrf.mxu0 }
 0x210   : > { %v1799_v15 = vadd.f32 %v1798_v38, %v1768_v24  ;;  %v1419_v62 = vadd.f32 %v1418_v13, %v1306_v48 }
 0x211   : > { %v1308_v17 = vpop.f32.mrf.mxu1  ;;  %v1531_v34 = vpop.f32.mrf.mxu3 }
 0x212   : > { %v1532_v54 = vadd.f32 %v1531_v34, %v1419_v62  ;;  %1691 = vmatmul.f32.gmra.mxu0 %v3825_v20  ;;  %v1309_v47 = vadd.f32 %v1308_v17, %v3826_v16  ;;  %v3831_v62 = vld [vmem:[#allocation35_spill] sm:$0xff]  ;;  %v3832_v17 = vld [vmem:[#allocation36_spill] sm:$0xff] }
 0x214   : > { %v1645_v46 = vadd.f32 %v1644_v59, %v1532_v54  ;;  %1355 = vmatmul.f32.gmra.mxu1 %v3139_v51  ;;  %1468 = vmatmul.f32.gmra.mxu2 %v2184_v25  ;;  %v3830_v59 = vld [vmem:[#allocation40_spill] sm:$0xff] }
 0x216   : > { %v1731_v9 = vadd.f32 %v1730_v42, %v1645_v46  ;;  %v1769_v37 = vmul.f32 %v1645_v46, %v1645_v46  ;;  %2052 = vst [vmem:[%s3425_s8 + $0x49] sm:$0xff] %v1645_v46  ;;  %1581 = vmatmul.f32.gmra.mxu3 %v3154_v31  ;;  %v3829_v31 = vld [vmem:[#allocation37_spill] sm:$0xff]  ;;  %v3833_v46 = vld [vmem:[#allocation39_spill] sm:$0xff] }
 0x217   : > { %v1421_v40 = vpop.f32.mrf.mxu2  ;;  %v1647_v58 = vpop.f32.mrf.mxu0 }
 0x218   : > { %v1800_v10 = vadd.f32 %v1799_v15, %v1769_v37  ;;  %v1422_v3 = vadd.f32 %v1421_v40, %v1309_v47 }
 0x219   : > { %v1311_v29 = vpop.f32.mrf.mxu1  ;;  %v1534_v11 = vpop.f32.mrf.mxu3 }
 0x21a   : > { %v1535_v38 = vadd.f32 %v1534_v11, %v1422_v3  ;;  %1694 = vmatmul.f32.gmra.mxu0 %v3188_v57  ;;  %v1312_v32 = vadd.f32 %v1311_v29, %v3828_v60  ;;  %v3835_v3 = vld [vmem:[#allocation41_spill] sm:$0xff]  ;;  %v3836_v29 = vld [vmem:[#allocation38_spill] sm:$0xff] }
 0x21c   : > { %v1648_v51 = vadd.f32 %v1647_v58, %v1535_v38  ;;  %1358 = vmatmul.f32.gmra.mxu1 %v3825_v20  ;;  %1471 = vmatmul.f32.gmra.mxu2 %v3827_v26 }
 0x21e   : > { %v1732_v63 = vadd.f32 %v1731_v9, %v1648_v51  ;;  %v1770_v22 = vmul.f32 %v1648_v51, %v1648_v51  ;;  %2053 = vst [vmem:[%s3425_s8 + $0x51] sm:$0xff] %v1648_v51  ;;  %1584 = vmatmul.f32.gmra.mxu3 %v3829_v31 }
 0x21f   : > { %v1424_v43 = vpop.f32.mrf.mxu2  ;;  %v1650_v44 = vpop.f32.mrf.mxu0 }
 0x220   : > { %v1801_v48 = vadd.f32 %v1800_v10, %v1770_v22  ;;  %v1425_v42 = vadd.f32 %v1424_v43, %v1312_v32  ;;  %v3834_v10 = vld [vmem:[#allocation44_spill] sm:$0xff] }
 0x221   : > { %v1314_v24 = vpop.f32.mrf.mxu1  ;;  %v1537_v23 = vpop.f32.mrf.mxu3 }
 0x222   : > { %v1538_v13 = vadd.f32 %v1537_v23, %v1425_v42  ;;  %1697 = vmatmul.f32.gmra.mxu0 %v3830_v59  ;;  %v1315_v34 = vadd.f32 %v1314_v24, %v3832_v17  ;;  %v3838_v42 = vld [vmem:[#allocation43_spill] sm:$0xff] }
 0x224   : > { %v1651_v15 = vadd.f32 %v1650_v44, %v1538_v13  ;;  %1361 = vmatmul.f32.gmra.mxu1 %v3188_v57  ;;  %1474 = vmatmul.f32.gmra.mxu2 %v3831_v62 }
 0x226   : > { %v1733_v54 = vadd.f32 %v1732_v63, %v1651_v15  ;;  %v1771_v20 = vmul.f32 %v1651_v15, %v1651_v15  ;;  %2054 = vst [vmem:[%s3425_s8 + $0x61] sm:$0xff] %v1651_v15  ;;  %1587 = vmatmul.f32.gmra.mxu3 %v3833_v46 }
 0x227   : > { %v1427_v25 = vpop.f32.mrf.mxu2  ;;  %v1653_v16 = vpop.f32.mrf.mxu0 }
 0x228   : > { %v1802_v47 = vadd.f32 %v1801_v48, %v1771_v20  ;;  %v1428_v9 = vadd.f32 %v1427_v25, %v1315_v34  ;;  %v3837_v48 = vld [vmem:[#allocation42_spill] sm:$0xff]  ;;  %v3839_v20 = vld [vmem:[#allocation49_spill] sm:$0xff] }
 0x229   : > { %v1317_v37 = vpop.f32.mrf.mxu1  ;;  %v1540_v40 = vpop.f32.mrf.mxu3  ;;  %v3840_v25 = vld [vmem:[#allocation46_spill] sm:$0xff] }
 0x22a   : > { %v1541_v58 = vadd.f32 %v1540_v40, %v1428_v9  ;;  %1700 = vmatmul.f32.gmra.mxu0 %v3834_v10  ;;  %v1318_v11 = vadd.f32 %v1317_v37, %v3836_v29 }
 0x22c   : > { %v1654_v57 = vadd.f32 %v1653_v16, %v1541_v58  ;;  %1364 = vmatmul.f32.gmra.mxu1 %v3830_v59  ;;  %1477 = vmatmul.f32.gmra.mxu2 %v3835_v3  ;;  %v3841_v16 = vld [vmem:[#allocation45_spill] sm:$0xff] }
 0x22e   : > { %v1734_v38 = vadd.f32 %v1733_v54, %v1654_v57  ;;  %v1772_v51 = vmul.f32 %v1654_v57, %v1654_v57  ;;  %2055 = vst [vmem:[%s3425_s8 + $0x69] sm:$0xff] %v1654_v57  ;;  %1590 = vmatmul.f32.gmra.mxu3 %v3230_v41 }
 0x22f   : > { %v1430_v26 = vpop.f32.mrf.mxu2  ;;  %v1656_v60 = vpop.f32.mrf.mxu0 }
 0x230   : > { %v1803_v32 = vadd.f32 %v1802_v47, %v1772_v51  ;;  %v1431_v63 = vadd.f32 %v1430_v26, %v1318_v11  ;;  %v3842_v11 = vld [vmem:[#allocation47_spill] sm:$0xff] }
 0x231   : > { %v1320_v22 = vpop.f32.mrf.mxu1  ;;  %v1543_v31 = vpop.f32.mrf.mxu3 }
 0x232   : > { %v1544_v43 = vadd.f32 %v1543_v31, %v1431_v63  ;;  %1703 = vmatmul.f32.gmra.mxu0 %v3255_v2  ;;  %v1321_v24 = vadd.f32 %v1320_v22, %v3838_v42  ;;  %v688_v42 = vrot.slane %v3292_v27, 2 }
 0x234   : > { %v1657_v44 = vadd.f32 %v1656_v60, %v1544_v43  ;;  %1367 = vmatmul.f32.gmra.mxu1 %v3834_v10  ;;  %1480 = vmatmul.f32.gmra.mxu2 %v3837_v48  ;;  %v687_v48 = vrot.slane %v3298_v19, 2 }
 0x236   : > { %v1735_v23 = vadd.f32 %v1734_v38, %v1657_v44  ;;  %v1773_v13 = vmul.f32 %v1657_v44, %v1657_v44  ;;  %2056 = vst [vmem:[%s3425_s8 + $0x79] sm:$0xff] %v1657_v44  ;;  %1593 = vmatmul.f32.gmra.mxu3 %v3252_v61  ;;  %v3843_v38 = vld [vmem:[#allocation48_spill] sm:$0xff] }
 0x237   : > { %v1433_v41 = vpop.f32.mrf.mxu2  ;;  %v1659_v59 = vpop.f32.mrf.mxu0 }
 0x238   : > { %v1804_v15 = vadd.f32 %v1803_v32, %v1773_v13  ;;  %v1434_v62 = vadd.f32 %v1433_v41, %v1321_v24 }
 0x239   : > { %v1323_v17 = vpop.f32.mrf.mxu1  ;;  %v1546_v34 = vpop.f32.mrf.mxu3 }
 0x23a   : > { %v1547_v54 = vadd.f32 %v1546_v34, %v1434_v62  ;;  %1706 = vmatmul.f32.gmra.mxu0 %v3839_v20  ;;  %v1324_v47 = vadd.f32 %v1323_v17, %v3841_v16  ;;  %v689_v62 = vsel %vm564_vm1, %v687_v48, %v688_v42  ;;  %v3845_v16 = vld [vmem:[#allocation51_spill] sm:$0xff] }
 0x23c   : > { %v1660_v46 = vadd.f32 %v1659_v59, %v1547_v54  ;;  %1370 = vmatmul.f32.gmra.mxu1 %v3255_v2  ;;  %1483 = vmatmul.f32.gmra.mxu2 %v3840_v25  ;;  %v256_v25 = vld [vmem:[%s2305_s26 + $0x198] sm:$0xff] }
 0x23e   : > { %v1736_v9 = vadd.f32 %v1735_v23, %v1660_v46  ;;  %v1774_v37 = vmul.f32 %v1660_v46, %v1660_v46  ;;  %2057 = vst [vmem:[%s3425_s8 + $0x81] sm:$0xff] %v1660_v46  ;;  %1596 = vmatmul.f32.gmra.mxu3 %v3273_v1 }
 0x23f   : > { %v1436_v61 = vpop.f32.mrf.mxu2  ;;  %v1662_v40 = vpop.f32.mrf.mxu0 }
 0x240   : > { %v1805_v58 = vadd.f32 %v1804_v15, %v1774_v37  ;;  %v1437_v10 = vadd.f32 %v1436_v61, %v1324_v47 }
 0x241   : > { %v1326_v57 = vpop.f32.mrf.mxu1  ;;  %v1549_v3 = vpop.f32.mrf.mxu3 }
 0x242   : > { %v1550_v29 = vadd.f32 %v1549_v3, %v1437_v10  ;;  %1709 = vmatmul.f32.gmra.mxu0 %v3295_v39  ;;  %v1327_v51 = vadd.f32 %v1326_v57, %v3843_v38 }
 0x244   : > { %v1663_v2 = vadd.f32 %v1662_v40, %v1550_v29  ;;  %1373 = vmatmul.f32.gmra.mxu1 %v3839_v20  ;;  %1486 = vmatmul.f32.gmra.mxu2 %v3842_v11 }
 0x246   : > { %v1737_v26 = vadd.f32 %v1736_v9, %v1663_v2  ;;  %v1775_v60 = vmul.f32 %v1663_v2, %v1663_v2  ;;  %2058 = vst [vmem:[%s3425_s8 + $0x91] sm:$0xff] %v1663_v2  ;;  %1599 = vmatmul.f32.gmra.mxu3 %v3289_v55  ;;  %v3844_v55 = vld [vmem:[#allocation50_spill] sm:$0xff]  ;;  %v704_v2 = vrot.slane %v256_v25, 2 }
 0x247   : > { %v1439_v1 = vpop.f32.mrf.mxu2  ;;  %v1665_v32 = vpop.f32.mrf.mxu0 }
 0x248   : > { %v1806_v63 = vadd.f32 %v1805_v58, %v1775_v60  ;;  %v1440_v22 = vadd.f32 %v1439_v1, %v1327_v51  ;;  %v697_v58 = vrot.slane %v256_v25, 1 }
 0x249   : > { %v1329_v31 = vpop.f32.mrf.mxu1  ;;  %v1552_v43 = vpop.f32.mrf.mxu3 }
 0x24a   : > { %v1553_v44 = vadd.f32 %v1552_v43, %v1440_v22  ;;  %1712 = vmatmul.f32.gmra.mxu0 %v3316_v30  ;;  %v1330_v23 = vadd.f32 %v1329_v31, %v3844_v55 }
 0x24c   : > { %v1666_v24 = vadd.f32 %v1665_v32, %v1553_v44  ;;  %1376 = vmatmul.f32.gmra.mxu1 %v3295_v39  ;;  %1489 = vmatmul.f32.gmra.mxu2 %v3298_v19  ;;  %v690_v19 = vrot.slane %v3313_v36, 2 }
 0x24e   : > { %v1738_v13 = vadd.f32 %v1737_v26, %v1666_v24  ;;  %v1776_v41 = vmul.f32 %v1666_v24, %v1666_v24  ;;  %2059 = vst [vmem:[%s3425_s8 + $0x99] sm:$0xff] %v1666_v24  ;;  %1602 = vmatmul.f32.gmra.mxu3 %v3310_v21  ;;  %v257_v21 = vld [vmem:[%s2305_s26 + $0x1a0] sm:$0xff]  ;;  %v691_v36 = vsel %vm564_vm1, %v688_v42, %v690_v19  ;;  %v3846_v26 = vld [vmem:[#allocation52_spill] sm:$0xff] }
 0x24f   : > { %v1442_v59 = vpop.f32.mrf.mxu2  ;;  %v1668_v15 = vpop.f32.mrf.mxu0  ;;  %v698_v10 = vrot.slane %v257_v21, 1  ;;  %v705_v38 = vrot.slane %v257_v21, 2 }
 0x250   : > { %v1807_v17 = vadd.f32 %v1806_v63, %v1776_v41  ;;  %v1443_v34 = vadd.f32 %v1442_v59, %v1330_v23 }
 0x251   : > { %v1332_v54 = vpop.f32.mrf.mxu1  ;;  %v1555_v39 = vpop.f32.mrf.mxu3  ;;  %v699_v11 = vsel %vm451_vm0, %v697_v58, %v698_v10  ;;  %v706_v43 = vsel %vm564_vm1, %v704_v2, %v705_v38 }
 0x252   : > { %v1556_v20 = vadd.f32 %v1555_v39, %v1443_v34  ;;  %1715 = vmatmul.f32.gmra.mxu0 %v689_v62  ;;  %v1333_v47 = vadd.f32 %v1332_v54, %v3845_v16 }
 0x254   : > { %v1669_v46 = vadd.f32 %v1668_v15, %v1556_v20  ;;  %1379 = vmatmul.f32.gmra.mxu1 %v3316_v30  ;;  %1492 = vmatmul.f32.gmra.mxu2 %v3292_v27 }
 0x256   : > { %v1739_v9 = vadd.f32 %v1738_v13, %v1669_v46  ;;  %v1777_v37 = vmul.f32 %v1669_v46, %v1669_v46  ;;  %2060 = vst [vmem:[%s3425_s8 + $0xa9] sm:$0xff] %v1669_v46  ;;  %1605 = vmatmul.f32.gmra.mxu3 %v3327_v4  ;;  %v258_v4 = vld [vmem:[%s2305_s26 + $0x1a8] sm:$0x3] }
 0x257   : > { %v1445_v61 = vpop.f32.mrf.mxu2  ;;  %v1671_v40 = vpop.f32.mrf.mxu0  ;;  %v700_v31 = vrot.slane %v258_v4, 1  ;;  %v707_v13 = vrot.slane %v258_v4, 2 }
 0x258   : > { %v1808_v57 = vadd.f32 %v1807_v17, %v1777_v37  ;;  %v1446_v30 = vadd.f32 %v1445_v61, %v1333_v47 }
 0x259   : > { %v1335_v27 = vpop.f32.mrf.mxu1  ;;  %v1558_v3 = vpop.f32.mrf.mxu3  ;;  %v701_v23 = vsel %vm451_vm0, %v698_v10, %v700_v31  ;;  %v708_v54 = vsel %vm564_vm1, %v705_v38, %v707_v13 }
 0x25a   : > { %v1559_v29 = vadd.f32 %v1558_v3, %v1446_v30  ;;  %1718 = vmatmul.f32.gmra.mxu0 %v691_v36  ;;  %v1336_v60 = vadd.f32 %v1335_v27, %v3846_v26 }
 0x25c   : > { %v1672_v51 = vadd.f32 %v1671_v40, %v1559_v29  ;;  %1382 = vmatmul.f32.gmra.mxu1 %v689_v62  ;;  %1495 = vmatmul.f32.gmra.mxu2 %v256_v25 }
 0x25e   : > { %v1740_v1 = vadd.f32 %v1739_v9, %v1672_v51  ;;  %v1778_v32 = vmul.f32 %v1672_v51, %v1672_v51  ;;  %2061 = vst [vmem:[%s3425_s8 + $0xb1] sm:$0xff] %v1672_v51  ;;  %1608 = vmatmul.f32.gmra.mxu3 %v699_v11 }
 0x25f   : > { %v1448_v63 = vpop.f32.mrf.mxu2  ;;  %v1674_v22 = vpop.f32.mrf.mxu0 }
 0x260   : > { %v1809_v44 = vadd.f32 %v1808_v57, %v1778_v32  ;;  %v1449_v48 = vadd.f32 %v1448_v63, %v1336_v60 }
 0x261   : > { %v1338_v42 = vpop.f32.mrf.mxu1  ;;  %v1561_v24 = vpop.f32.mrf.mxu3 }
 0x262   : > { %v1562_v55 = vadd.f32 %v1561_v24, %v1449_v48  ;;  %1721 = vmatmul.f32.gmra.mxu0 %v706_v43  ;;  %v1339_v59 = vadd.f32 %v1338_v42, %v3330_v14 }
 0x264   : > { %v1675_v41 = vadd.f32 %v1674_v22, %v1562_v55  ;;  %1385 = vmatmul.f32.gmra.mxu1 %v691_v36  ;;  %1498 = vmatmul.f32.gmra.mxu2 %v257_v21 }
 0x266   : > { %v1741_v15 = vadd.f32 %v1740_v1, %v1675_v41  ;;  %v1779_v62 = vmul.f32 %v1675_v41, %v1675_v41  ;;  %2062 = vst [vmem:[%s3425_s8 + $0xc1] sm:$0xff] %v1675_v41  ;;  %1611 = vmatmul.f32.gmra.mxu3 %v701_v23 }
 0x267   : > { %v1451_v17 = vpop.f32.mrf.mxu2  ;;  %v1677_v34 = vpop.f32.mrf.mxu0 }
 0x268   : > { %v1810_v39 = vadd.f32 %v1809_v44, %v1779_v62  ;;  %v1452_v20 = vadd.f32 %v1451_v17, %v1339_v59 }
 0x269   : > { %v1341_v19 = vpop.f32.mrf.mxu1  ;;  %v1564_v46 = vpop.f32.mrf.mxu3 }
 0x26a   : > { %v1565_v25 = vadd.f32 %v1564_v46, %v1452_v20  ;;  %1724 = vmatmul.f32.gmra.mxu0 %v708_v54  ;;  %v1342_v21 = vadd.f32 %v1341_v19, %v3337_v5 }
 0x26c   : > { %v1678_v16 = vadd.f32 %v1677_v34, %v1565_v25 }
 0x26e   : > { %v1742_v14 = vadd.f32 %v1741_v15, %v1678_v16  ;;  %v1780_v47 = vmul.f32 %v1678_v16, %v1678_v16  ;;  %2063 = vst [vmem:[%s3425_s8 + $0xc9] sm:$0xff] %v1678_v16 }
 0x26f   : > { %v1454_v9 = vpop.f32.mrf.mxu2  ;;  %v1680_v37 = vpop.f32.mrf.mxu0 }
 0x270   : > { %v1811_v61 = vadd.f32 %v1810_v39, %v1780_v47  ;;  %v1455_v40 = vadd.f32 %v1454_v9, %v1342_v21 }
 0x271   : > { %v1344_v58 = vpop.f32.mrf.mxu1  ;;  %v1567_v10 = vpop.f32.mrf.mxu3 }
 0x272   : > { %v1568_v36 = vadd.f32 %v1567_v10, %v1455_v40  ;;  %v1345_v30 = vadd.f32 %v1344_v58, %v3344_v50 }
 0x274   : > { %v1681_v57 = vadd.f32 %v1680_v37, %v1568_v36 }
 0x276   : > { %v1743_v27 = vadd.f32 %v1742_v14, %v1681_v57  ;;  %v1781_v3 = vmul.f32 %v1681_v57, %v1681_v57  ;;  %2064 = vst [vmem:[%s3425_s8 + $0xd9] sm:$0xff] %v1681_v57 }
 0x277   : > { %v1457_v29 = vpop.f32.mrf.mxu2  ;;  %v1683_v2 = vpop.f32.mrf.mxu0 }
 0x278   : > { %v1812_v5 = vadd.f32 %v1811_v61, %v1781_v3  ;;  %v1458_v11 = vadd.f32 %v1457_v29, %v1345_v30 }
 0x279   : > { %v1347_v38 = vpop.f32.mrf.mxu1  ;;  %v1570_v51 = vpop.f32.mrf.mxu3 }
 0x27a   : > { %v1571_v4 = vadd.f32 %v1570_v51, %v1458_v11  ;;  %v1348_v60 = vadd.f32 %v1347_v38, %v3351_v12 }
 0x27c   : > { %v1684_v26 = vadd.f32 %v1683_v2, %v1571_v4 }
 0x27e   : > { %v1744_v1 = vadd.f32 %v1743_v27, %v1684_v26  ;;  %v1782_v32 = vmul.f32 %v1684_v26, %v1684_v26  ;;  %2065 = vst [vmem:[%s3425_s8 + $0xe1] sm:$0xff] %v1684_v26 }
 0x27f   : > { %v1460_v63 = vpop.f32.mrf.mxu2  ;;  %v1686_v22 = vpop.f32.mrf.mxu0 }
 0x280   : > { %v1813_v50 = vadd.f32 %v1812_v5, %v1782_v32  ;;  %v1461_v31 = vadd.f32 %v1460_v63, %v1348_v60 }
 0x281   : > { %v1350_v43 = vpop.f32.mrf.mxu1  ;;  %v1573_v44 = vpop.f32.mrf.mxu3 }
 0x282   : > { %v1574_v48 = vadd.f32 %v1573_v44, %v1461_v31  ;;  %v1351_v24 = vadd.f32 %v1350_v43, %v3358_v18 }
 0x284   : > { %v1687_v42 = vadd.f32 %v1686_v22, %v1574_v48 }
 0x286   : > { %v1745_v55 = vadd.f32 %v1744_v1, %v1687_v42  ;;  %v1783_v23 = vmul.f32 %v1687_v42, %v1687_v42  ;;  %2066 = vst [vmem:[%s3425_s8 + $0xf1] sm:$0xff] %v1687_v42 }
 0x287   : > { %v1463_v13 = vpop.f32.mrf.mxu2  ;;  %v1689_v41 = vpop.f32.mrf.mxu0 }
 0x288   : > { %v1814_v12 = vadd.f32 %v1813_v50, %v1783_v23  ;;  %v1464_v59 = vadd.f32 %v1463_v13, %v1351_v24 }
 0x289   : > { %v1353_v15 = vpop.f32.mrf.mxu1  ;;  %v1576_v62 = vpop.f32.mrf.mxu3 }
 0x28a   : > { %v1577_v17 = vadd.f32 %v1576_v62, %v1464_v59  ;;  %v1354_v54 = vadd.f32 %v1353_v15, %v3365_v56 }
 0x28c   : > { %v1690_v34 = vadd.f32 %v1689_v41, %v1577_v17 }
 0x28e   : > { %v1746_v39 = vadd.f32 %v1745_v55, %v1690_v34  ;;  %v1784_v20 = vmul.f32 %v1690_v34, %v1690_v34  ;;  %2067 = vst [vmem:[%s3425_s8 + $0xf9] sm:$0xff] %v1690_v34 }
 0x28f   : > { %v1466_v19 = vpop.f32.mrf.mxu2  ;;  %v1692_v46 = vpop.f32.mrf.mxu0 }
 0x290   : > { %v1815_v18 = vadd.f32 %v1814_v12, %v1784_v20  ;;  %v1467_v25 = vadd.f32 %v1466_v19, %v1354_v54 }
 0x291   : > { %v1356_v16 = vpop.f32.mrf.mxu1  ;;  %v1579_v21 = vpop.f32.mrf.mxu3 }
 0x292   : > { %v1580_v14 = vadd.f32 %v1579_v21, %v1467_v25  ;;  %v1357_v9 = vadd.f32 %v1356_v16, %v3372_v33 }
 0x294   : > { %v1693_v47 = vadd.f32 %v1692_v46, %v1580_v14 }
 0x296   : > { %v1747_v37 = vadd.f32 %v1746_v39, %v1693_v47  ;;  %v1785_v61 = vmul.f32 %v1693_v47, %v1693_v47  ;;  %2068 = vst [vmem:[%s3425_s8 + $0x109] sm:$0xff] %v1693_v47 }
 0x297   : > { %v1469_v40 = vpop.f32.mrf.mxu2  ;;  %v1695_v58 = vpop.f32.mrf.mxu0 }
 0x298   : > { %v1816_v56 = vadd.f32 %v1815_v18, %v1785_v61  ;;  %v1470_v10 = vadd.f32 %v1469_v40, %v1357_v9 }
 0x299   : > { %v1359_v36 = vpop.f32.mrf.mxu1  ;;  %v1582_v57 = vpop.f32.mrf.mxu3 }
 0x29a   : > { %v1583_v30 = vadd.f32 %v1582_v57, %v1470_v10  ;;  %v1360_v3 = vadd.f32 %v1359_v36, %v3379_v49 }
 0x29c   : > { %v1696_v27 = vadd.f32 %v1695_v58, %v1583_v30 }
 0x29e   : > { %v1748_v29 = vadd.f32 %v1747_v37, %v1696_v27  ;;  %v1786_v2 = vmul.f32 %v1696_v27, %v1696_v27  ;;  %2069 = vst [vmem:[%s3425_s8 + $0x111] sm:$0xff] %v1696_v27 }
 0x29f   : > { %v1472_v5 = vpop.f32.mrf.mxu2  ;;  %v1698_v11 = vpop.f32.mrf.mxu0 }
 0x2a0   : > { %v1817_v33 = vadd.f32 %v1816_v56, %v1786_v2  ;;  %v1473_v38 = vadd.f32 %v1472_v5, %v1360_v3 }
 0x2a1   : > { %v1362_v51 = vpop.f32.mrf.mxu1  ;;  %v1585_v4 = vpop.f32.mrf.mxu3 }
 0x2a2   : > { %v1586_v26 = vadd.f32 %v1585_v4, %v1473_v38  ;;  %v1363_v1 = vadd.f32 %v1362_v51, %v3386_v53 }
 0x2a4   : > { %v1699_v60 = vadd.f32 %v1698_v11, %v1586_v26 }
 0x2a6   : > { %v1749_v32 = vadd.f32 %v1748_v29, %v1699_v60  ;;  %v1787_v63 = vmul.f32 %v1699_v60, %v1699_v60  ;;  %2070 = vst [vmem:[%s3425_s8 + $0x121] sm:$0xff] %v1699_v60 }
 0x2a7   : > { %v1475_v22 = vpop.f32.mrf.mxu2  ;;  %v1701_v50 = vpop.f32.mrf.mxu0 }
 0x2a8   : > { %v1818_v49 = vadd.f32 %v1817_v33, %v1787_v63  ;;  %v1476_v31 = vadd.f32 %v1475_v22, %v1363_v1 }
 0x2a9   : > { %v1365_v43 = vpop.f32.mrf.mxu1  ;;  %v1588_v44 = vpop.f32.mrf.mxu3 }
 0x2aa   : > { %v1589_v48 = vadd.f32 %v1588_v44, %v1476_v31  ;;  %v1366_v24 = vadd.f32 %v1365_v43, %v3393_v0 }
 0x2ac   : > { %v1702_v42 = vadd.f32 %v1701_v50, %v1589_v48 }
 0x2ae   : > { %v1750_v55 = vadd.f32 %v1749_v32, %v1702_v42  ;;  %v1788_v23 = vmul.f32 %v1702_v42, %v1702_v42  ;;  %2071 = vst [vmem:[%s3425_s8 + $0x129] sm:$0xff] %v1702_v42 }
 0x2af   : > { %v1478_v13 = vpop.f32.mrf.mxu2  ;;  %v1704_v41 = vpop.f32.mrf.mxu0 }
 0x2b0   : > { %v1819_v53 = vadd.f32 %v1818_v49, %v1788_v23  ;;  %v1479_v12 = vadd.f32 %v1478_v13, %v1366_v24 }
 0x2b1   : > { %v1368_v59 = vpop.f32.mrf.mxu1  ;;  %v1591_v15 = vpop.f32.mrf.mxu3 }
 0x2b2   : > { %v1592_v62 = vadd.f32 %v1591_v15, %v1479_v12  ;;  %v1369_v34 = vadd.f32 %v1368_v59, %v3400_v52 }
 0x2b4   : > { %v1705_v17 = vadd.f32 %v1704_v41, %v1592_v62 }
 0x2b6   : > { %v1751_v54 = vadd.f32 %v1750_v55, %v1705_v17  ;;  %v1789_v39 = vmul.f32 %v1705_v17, %v1705_v17  ;;  %2072 = vst [vmem:[%s3425_s8 + $0x139] sm:$0xff] %v1705_v17 }
 0x2b7   : > { %v1481_v20 = vpop.f32.mrf.mxu2  ;;  %v1707_v19 = vpop.f32.mrf.mxu0 }
 0x2b8   : > { %v1820_v0 = vadd.f32 %v1819_v53, %v1789_v39  ;;  %v1482_v46 = vadd.f32 %v1481_v20, %v1369_v34 }
 0x2b9   : > { %v1371_v18 = vpop.f32.mrf.mxu1  ;;  %v1594_v25 = vpop.f32.mrf.mxu3 }
 0x2ba   : > { %v1595_v16 = vadd.f32 %v1594_v25, %v1482_v46  ;;  %v1372_v14 = vadd.f32 %v1371_v18, %v3407_v6 }
 0x2bc   : > { %v1708_v21 = vadd.f32 %v1707_v19, %v1595_v16 }
 0x2be   : > { %v1752_v47 = vadd.f32 %v1751_v54, %v1708_v21  ;;  %v1790_v9 = vmul.f32 %v1708_v21, %v1708_v21  ;;  %2073 = vst [vmem:[%s3425_s8 + $0x141] sm:$0xff] %v1708_v21 }
 0x2bf   : > { %v1484_v37 = vpop.f32.mrf.mxu2  ;;  %v1710_v61 = vpop.f32.mrf.mxu0 }
 0x2c0   : > { %v1821_v52 = vadd.f32 %v1820_v0, %v1790_v9  ;;  %v1485_v40 = vadd.f32 %v1484_v37, %v1372_v14 }
 0x2c1   : > { %v1374_v58 = vpop.f32.mrf.mxu1  ;;  %v1597_v56 = vpop.f32.mrf.mxu3 }
 0x2c2   : > { %v1598_v10 = vadd.f32 %v1597_v56, %v1485_v40  ;;  %v1375_v57 = vadd.f32 %v1374_v58, %v3414_v28 }
 0x2c4   : > { %v1711_v36 = vadd.f32 %v1710_v61, %v1598_v10 }
 0x2c6   : > { %v1753_v30 = vadd.f32 %v1752_v47, %v1711_v36  ;;  %v1791_v27 = vmul.f32 %v1711_v36, %v1711_v36  ;;  %2074 = vst [vmem:[%s3425_s8 + $0x151] sm:$0xff] %v1711_v36 }
 0x2c7   : > { %v1487_v3 = vpop.f32.mrf.mxu2  ;;  %v1713_v29 = vpop.f32.mrf.mxu0 }
 0x2c8   : > { %v1822_v6 = vadd.f32 %v1821_v52, %v1791_v27  ;;  %v1488_v2 = vadd.f32 %v1487_v3, %v1375_v57 }
 0x2c9   : > { %v1377_v5 = vpop.f32.mrf.mxu1  ;;  %v1600_v11 = vpop.f32.mrf.mxu3 }
 0x2ca   : > { %v1601_v33 = vadd.f32 %v1600_v11, %v1488_v2  ;;  %v1378_v51 = vadd.f32 %v1377_v5, %v3428_v35 }
 0x2cc   : > { %v1714_v38 = vadd.f32 %v1713_v29, %v1601_v33 }
 0x2ce   : > { %v1754_v4 = vadd.f32 %v1753_v30, %v1714_v38  ;;  %v1792_v26 = vmul.f32 %v1714_v38, %v1714_v38  ;;  %2075 = vst [vmem:[%s3425_s8 + $0x159] sm:$0xff] %v1714_v38 }
 0x2cf   : > { %v1490_v60 = vpop.f32.mrf.mxu2  ;;  %v1716_v1 = vpop.f32.mrf.mxu0 }
 0x2d0   : > { %v1823_v28 = vadd.f32 %v1822_v6, %v1792_v26  ;;  %v1491_v32 = vadd.f32 %v1490_v60, %v1378_v51 }
 0x2d1   : > { %v1380_v63 = vpop.f32.mrf.mxu1  ;;  %v1603_v22 = vpop.f32.mrf.mxu3 }
 0x2d2   : > { %v1604_v50 = vadd.f32 %v1603_v22, %v1491_v32  ;;  %v1381_v31 = vadd.f32 %v1380_v63, %v3449_v8 }
 0x2d4   : > { %v1717_v49 = vadd.f32 %v1716_v1, %v1604_v50 }
 0x2d6   : > { %v1755_v43 = vadd.f32 %v1754_v4, %v1717_v49  ;;  %v1793_v44 = vmul.f32 %v1717_v49, %v1717_v49  ;;  %2076 = vst [vmem:[%s3425_s8 + $0x169] sm:$0xff] %v1717_v49 }
 0x2d7   : > { %v1493_v48 = vpop.f32.mrf.mxu2  ;;  %v1719_v42 = vpop.f32.mrf.mxu0 }
 0x2d8   : > { %v1824_v35 = vadd.f32 %v1823_v28, %v1793_v44  ;;  %v1494_v24 = vadd.f32 %v1493_v48, %v1381_v31 }
 0x2d9   : > { %v1383_v55 = vpop.f32.mrf.mxu1  ;;  %v1606_v23 = vpop.f32.mrf.mxu3 }
 0x2da   : > { %v1607_v13 = vadd.f32 %v1606_v23, %v1494_v24  ;;  %v1384_v53 = vadd.f32 %v1383_v55, %v3472_v7 }
 0x2dc   : > { %v1720_v41 = vadd.f32 %v1719_v42, %v1607_v13 }
 0x2de   : > { %v1756_v12 = vadd.f32 %v1755_v43, %v1720_v41  ;;  %v1794_v59 = vmul.f32 %v1720_v41, %v1720_v41  ;;  %2077 = vst [vmem:[%s3425_s8 + $0x171] sm:$0xff] %v1720_v41 }
 0x2df   : > { %v1496_v15 = vpop.f32.mrf.mxu2  ;;  %v1722_v62 = vpop.f32.mrf.mxu0 }
 0x2e0   : > { %v1825_v8 = vadd.f32 %v1824_v35, %v1794_v59  ;;  %v1497_v17 = vadd.f32 %v1496_v15, %v1384_v53 }
 0x2e1   : > { %v1609_v34 = vpop.f32.mrf.mxu3  ;;  %v1386_v39 = vpop.f32.mrf.mxu1 }
 0x2e2   : > { %v1610_v54 = vadd.f32 %v1609_v34, %v1497_v17  ;;  %v1387_v19 = vadd.f32 %v1386_v39, %v3495_v45 }
 0x2e4   : > { %v1723_v20 = vadd.f32 %v1722_v62, %v1610_v54 }
 0x2e6   : > { %v1757_v0 = vadd.f32 %v1756_v12, %v1723_v20  ;;  %v1795_v46 = vmul.f32 %v1723_v20, %v1723_v20  ;;  %2078 = vst [vmem:[%s3425_s8 + $0x181] sm:$0xff] %v1723_v20 }
 0x2e7   : > { %v1499_v18 = vpop.f32.mrf.mxu2  ;;  %v1725_v21 = vpop.f32.mrf.mxu0 }
 0x2e8   : > { %v1826_v25 = vadd.f32 %v1825_v8, %v1795_v46  ;;  %v1500_v7 = vadd.f32 %v1499_v18, %v1387_v19 }
 0x2e9   : > { %v1612_v16 = vpop.f32.mrf.mxu3 }
 0x2ea   : > { %v1613_v14 = vadd.f32 %v1612_v16, %v1500_v7 }
 0x2ec   : > { %v1726_v47 = vadd.f32 %v1725_v21, %v1613_v14 }
 0x2ee   : > { %v1758_v9 = vadd.f32 %v1757_v0, %v1726_v47  ;;  %v1796_v37 = vmul.f32 %v1726_v47, %v1726_v47  ;;  %2079 = vst [vmem:[%s3425_s8 + $0x189] sm:$0xff] %v1726_v47 }
 0x2f0   : > { %v1759_v61 = vrot.slane %v1758_v9, 4  ;;  %v1827_v52 = vadd.f32 %v1826_v25, %v1796_v37 }
 0x2f2   : > { %v1760_v40 = vadd.f32 %v1759_v61, %v1758_v9  ;;  %v1828_v58 = vrot.slane %v1827_v52, 4 }
 0x2f4   : > { %v1761_v56 = vrot.slane %v1760_v40, 2  ;;  %v1829_v45 = vadd.f32 %v1828_v58, %v1827_v52 }
 0x2f6   : > { %v1762_v10 = vadd.f32 %v1761_v56, %v1760_v40  ;;  %v1830_v36 = vrot.slane %v1829_v45, 2 }
 0x2f8   : > { %v1763_v57 = vrot.slane %v1762_v10, 1  ;;  %v1831_v30 = vadd.f32 %v1830_v36, %v1829_v45 }
 0x2fa   : > { %v1832_v27 = vrot.slane %v1831_v30, 1  ;;  %v1764_v3 = vadd.f32 %v1763_v57, %v1762_v10 }
 0x2fc   : > { %v1833_v29 = vadd.f32 %v1832_v27, %v1831_v30 }
 0x2fe   : > { %v1835_v6 = vsel %vm1834_vm2, %v1764_v3, %v1833_v29 }
 0x2ff   : > { %1836 = vst [vmem:[%s201_s10] sm:$0x3] %v1835_v6 }
 0x300 PF: > { %s14_s14 = sadd.s32 1, %s2207_s14   ;;  %s3847_s12 = smov %s2203_s13 }
 0x301   : > { %p11_p5 = scmp.ge.s32.totalorder %s14_s14, 4   ;;  %s3848_s13 = smov %s3850_s15 }
 0x303   :  { %13 = sbr.rel (!%p11_p5) target bundleno = 2 (0x2), region = 76 }

// kernel: basic_block.4
= control target key start
LH: loop header
LB: loop body
LE: loop exit
PB: predicated region body
PF: predicated region fallthrough
CT: control target
= control target key end

     0   :  { %s2779_s18 = smov 0   ;;  %s2781_s19 = smov 0   ;;  %s4397_s0 = inlined_call_operand.vmem [shape: f32[2,18,18,128], index: 0, kind: input, shape index: {}]   ;;  %s4398_s1 = inlined_call_operand.vmem [shape: f32[1152,128], index: 1, kind: input, shape index: {}]   ;;  %s4399_s2 = inlined_call_operand.vmem [shape: f32[1,128], index: 2, kind: input, shape index: {}]   ;;  %s4400_s3 = inlined_call_operand.vmem [shape: f32[1,128], index: 3, kind: input, shape index: {}]   ;;  %s4401_s4 = inlined_call_operand.vmem [shape: f32[2,16,16,128], index: 4, kind: output, shape index: {0}]   ;;  %s4402_s5 = inlined_call_operand.vmem [shape: f32[2,1,2,128], index: 5, kind: output, shape index: {1}]  }
   0x1   :  { %s2783_s20 = smov 0  }
   0x2 LB: > { %s28_s21 = sadd.s32 1, %s2742_s19  ;;  %p2592_p0 = scmp.ge.s32.totalorder %s2746_s20, 1  ;;  %s2746_s20 = sphi %s2783_s20, %s16_s20   ;;  %s2742_s19 = sphi %s2781_s19, %s4634_s19   ;;  %s2738_s18 = sphi %s2779_s18, %s4633_s18  }
   0x3   : > { %p30_p1 = scmp.ge.s32.totalorder %s28_s21, 2  ;;  %p206_p2 = scmp.lt.s32.totalorder %s2746_s20, 3 }
   0x5   : > { %s4636_s21 = smov (%p30_p1, %s28_s21), 0  ;;  %p207_p3 = pnand %p2592_p0, %p206_p2 }
   0x7   : > { %210 = sbr.rel (%p207_p3) target bundleno = 768 (0x300), region = 36 }
   0xc   : > { %v863_v0 = vld [vmem:[%s4398_s1 + $0x78] sm:$0xff]  ;;  %v862_v1 = vld [vmem:[%s4398_s1 + $0x70] sm:$0xff]  ;;  %v861_v2 = vld [vmem:[%s4398_s1 + $0x68] sm:$0xff]  ;;  %p246_p4 = scmp.lt.s32.totalorder %s2738_s18, 1  ;;  %v514_v19 = vlaneseq  ;;  %v4403_v58 = vmov 0.0   ;;  %vm1040_vm1 = vcmask 1046528  }
   0xd   : > { %2646 = vmatpush.msra.mxu1 %v863_v0  ;;  %2647 = vmatpush.msra.mxu2 %v863_v0  ;;  %v860_v3 = vld [vmem:[%s4398_s1 + $0x60] sm:$0xff]  ;;  %v859_v4 = vld [vmem:[%s4398_s1 + $0x58] sm:$0xff]  ;;  %v858_v5 = vld [vmem:[%s4398_s1 + $0x50] sm:$0xff]  ;;  %vm1153_vm3 = vcmask 1045504   ;;  %vm2423_vm4 = vcmask 1040384  }
   0xe   : > { %2648 = vmatpush.msra.mxu3 %v863_v0  ;;  %1300 = vmatpush.msra.mxu0 %v863_v0  ;;  %s4638_s18 = smov (!%p246_p4, %s2738_s18), 1  ;;  %v857_v6 = vld [vmem:[%s4398_s1 + $0x48] sm:$0xff]  ;;  %v856_v7 = vld [vmem:[%s4398_s1 + $0x40] sm:$0xff]  ;;  %v855_v8 = vld [vmem:[%s4398_s1 + $0x38] sm:$0xff]  ;;  %v2865_v25 = vshrl.u32 %v514_v19, 7 }
   0xf   : > { %2649 = vmatpush.msra.mxu1 %v862_v1  ;;  %2650 = vmatpush.msra.mxu2 %v862_v1  ;;  %s2694_s11 = smul.u32 432, %s4638_s18  ;;  %v854_v9 = vld [vmem:[%s4398_s1 + $0x30] sm:$0xff]  ;;  %v2838_v10 = vld [vmem:[%s4399_s2] ss:$0 sm:$0xff]  ;;  %v853_v13 = vld [vmem:[%s4398_s1 + $0x28] sm:$0xff]  ;;  %s2596_s24 = sshll.u32 %s4638_s18, 1 }
  0x10   : > { %2651 = vmatpush.msra.mxu3 %v862_v1  ;;  %1301 = vmatpush.msra.mxu0 %v862_v1  ;;  %v852_v15 = vld [vmem:[%s4398_s1 + $0x20] sm:$0xff]  ;;  %v851_v20 = vld [vmem:[%s4398_s1 + $0x18] sm:$0xff]  ;;  %v850_v22 = vld [vmem:[%s4398_s1 + $0x10] sm:$0xff]  ;;  %vm572_vm0 = vcmp.ge.s32.totalorder %v2865_v25, 1  ;;  %s268_s27 = scalar_lea.vmem %s4402_s5, %s2596_s24 }
  0x11   : > { %2652 = vmatpush.msra.mxu1 %v861_v2  ;;  %2653 = vmatpush.msra.mxu2 %v861_v2  ;;  %s2830_s22 = scalar_lea.vmem %s4397_s0, %s2694_s11  ;;  %v2853_v17 = vld [vmem:[%s4400_s3] ss:$0 sm:$0xff]  ;;  %v849_v28 = vld [vmem:[%s4398_s1 + $0x8] sm:$0xff]  ;;  %v895_v36 = vld [vmem:[%s4398_s1 + $0x178] sm:$0xff] }
  0x12   : > { %2654 = vmatpush.msra.mxu3 %v861_v2  ;;  %1302 = vmatpush.msra.mxu0 %v861_v2  ;;  %v284_v11 = vld [vmem:[%s2830_s22 + $0x60] sm:$0xff]  ;;  %v285_v26 = vld [vmem:[%s2830_s22 + $0x68] sm:$0xff]  ;;  %v879_v39 = vld [vmem:[%s4398_s1 + $0xf8] sm:$0xff] }
  0x13   : > { %2655 = vmatpush.msra.mxu1 %v860_v3  ;;  %2656 = vmatpush.msra.mxu2 %v860_v3  ;;  %v296_v12 = vld [vmem:[%s2830_s22 + $0xc0] sm:$0xff]  ;;  %v342_v16 = vmul.f32 %v2838_v10, %v284_v11  ;;  %v297_v27 = vld [vmem:[%s2830_s22 + $0xc8] sm:$0xff]  ;;  %v343_v34 = vmul.f32 %v2838_v10, %v285_v26  ;;  %v911_v40 = vld [vmem:[%s4398_s1 + $0x1f8] sm:$0xff] }
  0x14   : > { %2657 = vmatpush.msra.mxu3 %v860_v3  ;;  %1303 = vmatpush.msra.mxu0 %v860_v3  ;;  %v308_v14 = vld [vmem:[%s2830_s22 + $0x120] sm:$0xff]  ;;  %v354_v18 = vmul.f32 %v2838_v10, %v296_v12  ;;  %v309_v30 = vld [vmem:[%s2830_s22 + $0x128] sm:$0xff]  ;;  %v355_v35 = vmul.f32 %v2838_v10, %v297_v27  ;;  %v894_v41 = vld [vmem:[%s4398_s1 + $0x170] sm:$0xff] }
  0x15   : > { %2658 = vmatpush.msra.mxu1 %v859_v4  ;;  %2659 = vmatpush.msra.mxu2 %v859_v4  ;;  %v366_v21 = vmul.f32 %v2838_v10, %v308_v14  ;;  %v400_v23 = vadd.f32 %v2853_v17, %v342_v16  ;;  %v848_v31 = vld [vmem:[%s4398_s1] sm:$0xff]  ;;  %v367_v38 = vmul.f32 %v2838_v10, %v309_v30  ;;  %v878_v44 = vld [vmem:[%s4398_s1 + $0xf0] sm:$0xff]  ;;  %v287_v45 = vld [vmem:[%s2830_s22 + $0x78] sm:$0xff] }
  0x16   : > { %2660 = vmatpush.msra.mxu3 %v859_v4  ;;  %1304 = vmatpush.msra.mxu0 %v859_v4  ;;  %v412_v24 = vadd.f32 %v2853_v17, %v354_v18  ;;  %v401_v42 = vadd.f32 %v2853_v17, %v343_v34  ;;  %v413_v43 = vadd.f32 %v2853_v17, %v355_v35  ;;  %v299_v46 = vld [vmem:[%s2830_s22 + $0xd8] sm:$0xff]  ;;  %v910_v47 = vld [vmem:[%s4398_s1 + $0x1f0] sm:$0xff]  ;;  %v893_v48 = vld [vmem:[%s4398_s1 + $0x168] sm:$0xff] }
  0x17   : > { %2661 = vmatpush.msra.mxu1 %v858_v5  ;;  %2662 = vmatpush.msra.mxu2 %v858_v5  ;;  %v424_v29 = vadd.f32 %v2853_v17, %v366_v21  ;;  %v2877_v32 = vmax.f32 %v400_v23, 0.0  ;;  %v425_v49 = vadd.f32 %v2853_v17, %v367_v38  ;;  %v877_v50 = vld [vmem:[%s4398_s1 + $0xe8] sm:$0xff]  ;;  %v311_v51 = vld [vmem:[%s2830_s22 + $0x138] sm:$0xff]  ;;  %v345_v56 = vmul.f32 %v2838_v10, %v287_v45  ;;  %v892_v60 = vld [vmem:[%s4398_s1 + $0x160] sm:$0xff] }
  0x18   : > { %2663 = vmatpush.msra.mxu3 %v858_v5  ;;  %1305 = vmatpush.msra.mxu0 %v858_v5  ;;  %v2879_v33 = vmax.f32 %v412_v24, 0.0  ;;  %v2926_v52 = vmax.f32 %v401_v42, 0.0  ;;  %v2928_v53 = vmax.f32 %v413_v43, 0.0  ;;  %v909_v54 = vld [vmem:[%s4398_s1 + $0x1e8] sm:$0xff]  ;;  %v927_v55 = vld [vmem:[%s4398_s1 + $0x278] sm:$0xff]  ;;  %v357_v57 = vmul.f32 %v2838_v10, %v299_v46  ;;  %v908_v61 = vld [vmem:[%s4398_s1 + $0x1e0] sm:$0xff] }
  0x19   : > { %2664 = vmatpush.msra.mxu1 %v857_v6  ;;  %2665 = vmatpush.msra.mxu2 %v857_v6  ;;  %4472 = vst [vmem:[#allocation2_spill] sm:$0xff] %v2877_v32  ;;  %v2887_v37 = vmax.f32 %v424_v29, 0.0  ;;  %v2939_v59 = vmax.f32 %v425_v49, 0.0  ;;  %v369_v62 = vmul.f32 %v2838_v10, %v311_v51  ;;  %v926_v63 = vld [vmem:[%s4398_s1 + $0x270] sm:$0xff]  ;;  %v275_v0 = vld [vmem:[%s2830_s22 + $0x18] sm:$0xff]  ;;  %v403_v1 = vadd.f32 %v2853_v17, %v345_v56  ;;  %v876_v3 = vld [vmem:[%s4398_s1 + $0xe0] sm:$0xff] }
  0x1a   : > { %2666 = vmatpush.msra.mxu3 %v857_v6  ;;  %1306 = vmatpush.msra.mxu0 %v857_v6  ;;  %4473 = vst [vmem:[#allocation3_spill] sm:$0xff] %v2879_v33  ;;  %v415_v2 = vadd.f32 %v2853_v17, %v357_v57  ;;  %v891_v4 = vld [vmem:[%s4398_s1 + $0x158] sm:$0xff]  ;;  %v288_v5 = vld [vmem:[%s2830_s22 + $0x80] sm:$0xff]  ;;  %v890_v12 = vld [vmem:[%s4398_s1 + $0x150] sm:$0xff] }
  0x1b   : > { %2667 = vmatpush.msra.mxu1 %v856_v7  ;;  %2668 = vmatpush.msra.mxu2 %v856_v7  ;;  %4474 = vst [vmem:[#allocation4_spill] sm:$0xff] %v2887_v37  ;;  %v907_v6 = vld [vmem:[%s4398_s1 + $0x1d8] sm:$0xff]  ;;  %v906_v14 = vld [vmem:[%s4398_s1 + $0x1d0] sm:$0xff]  ;;  %v2983_v16 = vmax.f32 %v403_v1, 0.0  ;;  %v924_v19 = vld [vmem:[%s4398_s1 + $0x260] sm:$0xff] }
  0x1c   : > { %2669 = vmatpush.msra.mxu3 %v856_v7  ;;  %1307 = vmatpush.msra.mxu0 %v856_v7  ;;  %4475 = vst [vmem:[#allocation5_spill] sm:$0xff] %v2926_v52  ;;  %v925_v7 = vld [vmem:[%s4398_s1 + $0x268] sm:$0xff]  ;;  %v875_v11 = vld [vmem:[%s4398_s1 + $0xd8] sm:$0xff]  ;;  %v2985_v18 = vmax.f32 %v415_v2, 0.0  ;;  %v276_v30 = vld [vmem:[%s2830_s22 + $0x20] sm:$0xff] }
  0x1d   : > { %2670 = vmatpush.msra.mxu1 %v855_v8  ;;  %2671 = vmatpush.msra.mxu2 %v855_v8  ;;  %4476 = vst [vmem:[#allocation6_spill] sm:$0xff] %v2928_v53  ;;  %v889_v24 = vld [vmem:[%s4398_s1 + $0x148] sm:$0xff]  ;;  %v923_v29 = vld [vmem:[%s4398_s1 + $0x258] sm:$0xff]  ;;  %v290_v38 = vld [vmem:[%s2830_s22 + $0x90] sm:$0xff]  ;;  %v334_v46 = vmul.f32 %v2838_v10, %v276_v30 }
  0x1e   : > { %2672 = vmatpush.msra.mxu3 %v855_v8  ;;  %1308 = vmatpush.msra.mxu0 %v855_v8  ;;  %4477 = vst [vmem:[#allocation7_spill] sm:$0xff] %v2939_v59  ;;  %v300_v8 = vld [vmem:[%s2830_s22 + $0xe0] sm:$0xff]  ;;  %v873_v35 = vld [vmem:[%s4398_s1 + $0xc8] sm:$0xff]  ;;  %v887_v45 = vld [vmem:[%s4398_s1 + $0x138] sm:$0xff]  ;;  %v348_v51 = vmul.f32 %v2838_v10, %v290_v38 }
  0x1f   : > { %2673 = vmatpush.msra.mxu1 %v854_v9  ;;  %2674 = vmatpush.msra.mxu2 %v854_v9  ;;  %4478 = vst [vmem:[#allocation8_spill] sm:$0xff] %v2983_v16  ;;  %v358_v21 = vmul.f32 %v2838_v10, %v300_v8  ;;  %v871_v56 = vld [vmem:[%s4398_s1 + $0xb8] sm:$0xff]  ;;  %v278_v1 = vld [vmem:[%s2830_s22 + $0x30] sm:$0xff]  ;;  %v901_v8 = vld [vmem:[%s4398_s1 + $0x1a8] sm:$0xff] }
  0x20   : > { %2675 = vmatpush.msra.mxu3 %v854_v9  ;;  %1309 = vmatpush.msra.mxu0 %v854_v9  ;;  %v427_v9 = vadd.f32 %v2853_v17, %v369_v62  ;;  %4479 = vst [vmem:[#allocation9_spill] sm:$0xff] %v2985_v18  ;;  %v886_v62 = vld [vmem:[%s4398_s1 + $0x130] sm:$0xff]  ;;  %v406_v2 = vadd.f32 %v2853_v17, %v348_v51  ;;  %v917_v38 = vld [vmem:[%s4398_s1 + $0x228] sm:$0xff] }
  0x21   : > { %2676 = vmatpush.msra.mxu1 %v853_v13  ;;  %2677 = vmatpush.msra.mxu2 %v853_v13  ;;  %v416_v34 = vadd.f32 %v2853_v17, %v358_v21 }
  0x22   : > { %2678 = vmatpush.msra.mxu3 %v853_v13  ;;  %1310 = vmatpush.msra.mxu0 %v853_v13  ;;  %v333_v13 = vmul.f32 %v2838_v10, %v275_v0  ;;  %v2996_v23 = vmax.f32 %v427_v9, 0.0  ;;  %v920_v0 = vld [vmem:[%s4398_s1 + $0x240] sm:$0xff]  ;;  %v919_v9 = vld [vmem:[%s4398_s1 + $0x238] sm:$0xff]  ;;  %v3111_v21 = vmax.f32 %v406_v2, 0.0 }
  0x23   : > { %2679 = vmatpush.msra.mxu1 %v852_v15  ;;  %2680 = vmatpush.msra.mxu2 %v852_v15  ;;  %v915_v2 = vld [vmem:[%s4398_s1 + $0x218] sm:$0xff] }
  0x24   : > { %2681 = vmatpush.msra.mxu3 %v852_v15  ;;  %1311 = vmatpush.msra.mxu0 %v852_v15  ;;  %v312_v15 = vld [vmem:[%s2830_s22 + $0x140] sm:$0xff]  ;;  %4480 = vst [vmem:[#allocation10_spill] sm:$0xff] %v2996_v23  ;;  %v391_v26 = vadd.f32 %v2853_v17, %v333_v13  ;;  %v336_v13 = vmul.f32 %v2838_v10, %v278_v1 }
  0x25   : > { %2682 = vmatpush.msra.mxu1 %v851_v20  ;;  %2683 = vmatpush.msra.mxu2 %v851_v20  ;;  %v370_v27 = vmul.f32 %v2838_v10, %v312_v15  ;;  %v884_v15 = vld [vmem:[%s4398_s1 + $0x120] sm:$0xff]  ;;  %4484 = vst [vmem:[#allocation14_spill] sm:$0xff] %v3111_v21 }
  0x26   : > { %2684 = vmatpush.msra.mxu3 %v851_v20  ;;  %1312 = vmatpush.msra.mxu0 %v851_v20  ;;  %v346_v20 = vmul.f32 %v2838_v10, %v288_v5  ;;  %v3035_v42 = vmax.f32 %v391_v26, 0.0  ;;  %v870_v5 = vld [vmem:[%s4398_s1 + $0xb0] sm:$0xff]  ;;  %v394_v30 = vadd.f32 %v2853_v17, %v336_v13 }
  0x27   : > { %2685 = vmatpush.msra.mxu1 %v850_v22  ;;  %2686 = vmatpush.msra.mxu2 %v850_v22  ;;  %v428_v43 = vadd.f32 %v2853_v17, %v370_v27  ;;  %v918_v27 = vld [vmem:[%s4398_s1 + $0x230] sm:$0xff] }
  0x28   : > { %2687 = vmatpush.msra.mxu3 %v850_v22  ;;  %1313 = vmatpush.msra.mxu0 %v850_v22  ;;  %v874_v22 = vld [vmem:[%s4398_s1 + $0xd0] sm:$0xff] }
  0x29   : > { %2688 = vmatpush.msra.mxu1 %v849_v28  ;;  %2689 = vmatpush.msra.mxu2 %v849_v28  ;;  %v3064_v57 = vmax.f32 %v428_v43, 0.0  ;;  %v867_v43 = vld [vmem:[%s4398_s1 + $0x98] sm:$0xff] }
  0x2a   : > { %2690 = vmatpush.msra.mxu3 %v849_v28  ;;  %1314 = vmatpush.msra.mxu0 %v849_v28  ;;  %v905_v28 = vld [vmem:[%s4398_s1 + $0x1c8] sm:$0xff] }
  0x2b   : > { %2691 = vmatpush.msra.mxu1 %v848_v31  ;;  %2692 = vmatpush.msra.mxu2 %v848_v31  ;;  %4483 = vst [vmem:[#allocation13_spill] sm:$0xff] %v3064_v57 }
  0x2c   : > { %2600 = vmatmul.msk.f32.vlgmr.msra.gmra.mxu1 %vm572_vm0, %v2877_v32  ;;  %2604 = vmatmul.msk.f32.vlgmr.msra.gmra.mxu2 %vm572_vm0, %v2879_v33 }
  0x2d   : > { %1526 = vmatpush.msrb.mxu2 %v895_v36  ;;  %2693 = vmatpush.msra.mxu3 %v848_v31  ;;  %v888_v36 = vld [vmem:[%s4398_s1 + $0x140] sm:$0xff] }
  0x2e   : > { %2608 = vmatmul.msk.f32.vlgmr.msra.gmra.mxu3 %vm572_vm0, %v2887_v37  ;;  %1413 = vmatpush.msrb.mxu1 %v879_v39  ;;  %v904_v39 = vld [vmem:[%s4398_s1 + $0x1c0] sm:$0xff] }
  0x2f   : > { %1639 = vmatpush.msrb.mxu3 %v911_v40  ;;  %1527 = vmatpush.msrb.mxu2 %v894_v41  ;;  %v922_v40 = vld [vmem:[%s4398_s1 + $0x250] sm:$0xff] }
  0x30   : > { %1414 = vmatpush.msrb.mxu1 %v878_v44  ;;  %1315 = vmatpush.msra.mxu0 %v848_v31  ;;  %v404_v31 = vadd.f32 %v2853_v17, %v346_v20  ;;  %v302_v41 = vld [vmem:[%s2830_s22 + $0xf0] sm:$0xff]  ;;  %v872_v44 = vld [vmem:[%s4398_s1 + $0xc0] sm:$0xff] }
  0x31   : > { %1640 = vmatpush.msrb.mxu3 %v910_v47  ;;  %1528 = vmatpush.msrb.mxu2 %v893_v48  ;;  %v314_v47 = vld [vmem:[%s2830_s22 + $0x150] sm:$0xff]  ;;  %v903_v48 = vld [vmem:[%s4398_s1 + $0x1b8] sm:$0xff]  ;;  %v900_v20 = vld [vmem:[%s4398_s1 + $0x1a0] sm:$0xff] }
  0x32   : > { %1316 = vmatmul.f32.vlgmr.msra.gmra.mxu0 %v4403_v58  ;;  %1415 = vmatpush.msrb.mxu1 %v877_v50  ;;  %v3049_v49 = vmax.f32 %v404_v31, 0.0  ;;  %v3051_v50 = vmax.f32 %v416_v34, 0.0  ;;  %v883_v34 = vld [vmem:[%s4398_s1 + $0x118] sm:$0xff] }
  0x33   : > { %1641 = vmatpush.msrb.mxu3 %v909_v54  ;;  %1752 = vmatpush.msrb.mxu0 %v927_v55  ;;  %v360_v54 = vmul.f32 %v2838_v10, %v302_v41  ;;  %v921_v55 = vld [vmem:[%s4398_s1 + $0x248] sm:$0xff] }
  0x34   : > { %1343 = vmatmul.f32.gmra.mxu1 %v2926_v52  ;;  %1367 = vmatmul.f32.gmra.mxu2 %v2928_v53  ;;  %4481 = vst [vmem:[#allocation11_spill] sm:$0xff] %v3049_v49  ;;  %v293_v41 = vld [vmem:[%s2830_s22 + $0xa8] sm:$0xff] }
  0x35   : > { %1529 = vmatpush.msrb.mxu2 %v892_v60  ;;  %1642 = vmatpush.msrb.mxu3 %v908_v61  ;;  %4482 = vst [vmem:[#allocation12_spill] sm:$0xff] %v3051_v50  ;;  %v392_v60 = vadd.f32 %v2853_v17, %v334_v46  ;;  %v372_v61 = vmul.f32 %v2838_v10, %v314_v47  ;;  %v898_v46 = vld [vmem:[%s4398_s1 + $0x190] sm:$0xff]  ;;  %v916_v47 = vld [vmem:[%s4398_s1 + $0x220] sm:$0xff] }
  0x36   : > { %1391 = vmatmul.f32.gmra.mxu3 %v2939_v59  ;;  %1753 = vmatpush.msrb.mxu0 %v926_v63  ;;  %v902_v63 = vld [vmem:[%s4398_s1 + $0x1b0] sm:$0xff] }
  0x37   : > { %1416 = vmatpush.msrb.mxu1 %v876_v3  ;;  %1530 = vmatpush.msrb.mxu2 %v891_v4  ;;  %v418_v3 = vadd.f32 %v2853_v17, %v360_v54  ;;  %v291_v4 = vld [vmem:[%s2830_s22 + $0x98] sm:$0xff] }
  0x38   : > { %1643 = vmatpush.msrb.mxu3 %v907_v6  ;;  %1754 = vmatpush.msrb.mxu0 %v925_v7  ;;  %v885_v6 = vld [vmem:[%s4398_s1 + $0x128] sm:$0xff]  ;;  %v303_v7 = vld [vmem:[%s2830_s22 + $0xf8] sm:$0xff] }
  0x39   : > { %1417 = vmatpush.msrb.mxu1 %v875_v11  ;;  %1531 = vmatpush.msrb.mxu2 %v890_v12  ;;  %v3097_v11 = vmax.f32 %v392_v60, 0.0  ;;  %v430_v12 = vadd.f32 %v2853_v17, %v372_v61  ;;  %v361_v26 = vmul.f32 %v2838_v10, %v303_v7  ;;  %v317_v60 = vld [vmem:[%s2830_s22 + $0x168] sm:$0xff]  ;;  %v880_v7 = vld [vmem:[%s4398_s1 + $0x100] sm:$0xff] }
  0x3a   : > { %1319 = vmatmul.f32.gmra.mxu0 %v4403_v58  ;;  %1644 = vmatpush.msrb.mxu3 %v906_v14  ;;  %v869_v14 = vld [vmem:[%s4398_s1 + $0xa8] sm:$0xff] }
  0x3b   : > { %1755 = vmatpush.msrb.mxu0 %v924_v19  ;;  %1418 = vmatpush.msrb.mxu1 %v874_v22  ;;  %v315_v19 = vld [vmem:[%s2830_s22 + $0x158] sm:$0xff]  ;;  %v3113_v22 = vmax.f32 %v418_v3, 0.0  ;;  %v897_v61 = vld [vmem:[%s4398_s1 + $0x188] sm:$0xff] }
  0x3c   : > { %2601 = vmatmul.msk.f32.gmra.mxu1 %vm572_vm0, %v2983_v16  ;;  %2605 = vmatmul.msk.f32.gmra.mxu2 %vm572_vm0, %v2985_v18  ;;  %v373_v31 = vmul.f32 %v2838_v10, %v315_v19  ;;  %v865_v3 = vld [vmem:[%s4398_s1 + $0x88] sm:$0xff]  ;;  %v864_v19 = vld [vmem:[%s4398_s1 + $0x80] sm:$0xff] }
  0x3d   : > { %1532 = vmatpush.msrb.mxu2 %v889_v24  ;;  %1645 = vmatpush.msrb.mxu3 %v905_v28  ;;  %4485 = vst [vmem:[#allocation15_spill] sm:$0xff] %v3113_v22  ;;  %v349_v24 = vmul.f32 %v2838_v10, %v291_v4  ;;  %v868_v28 = vld [vmem:[%s4398_s1 + $0xa0] sm:$0xff] }
  0x3e   : > { %2609 = vmatmul.msk.f32.gmra.mxu3 %vm572_vm0, %v2996_v23  ;;  %1756 = vmatpush.msrb.mxu0 %v923_v29  ;;  %v3124_v29 = vmax.f32 %v430_v12, 0.0  ;;  %v431_v51 = vadd.f32 %v2853_v17, %v373_v31  ;;  %v914_v12 = vld [vmem:[%s4398_s1 + $0x210] sm:$0xff] }
  0x3f   : > { %1419 = vmatpush.msrb.mxu1 %v873_v35  ;;  %1533 = vmatpush.msrb.mxu2 %v888_v36  ;;  %v899_v35 = vld [vmem:[%s4398_s1 + $0x198] sm:$0xff] }
  0x40   : > { %1646 = vmatpush.msrb.mxu3 %v904_v39  ;;  %1757 = vmatpush.msrb.mxu0 %v922_v40  ;;  %4486 = vst [vmem:[#allocation16_spill] sm:$0xff] %v3124_v29  ;;  %v279_v36 = vld [vmem:[%s2830_s22 + $0x38] sm:$0xff]  ;;  %v407_v39 = vadd.f32 %v2853_v17, %v349_v24  ;;  %v419_v40 = vadd.f32 %v2853_v17, %v361_v26  ;;  %v3192_v4 = vmax.f32 %v431_v51, 0.0  ;;  %v306_v24 = vld [vmem:[%s2830_s22 + $0x110] sm:$0xff]  ;;  %v913_v26 = vld [vmem:[%s4398_s1 + $0x208] sm:$0xff] }
  0x41   : > { %1420 = vmatpush.msrb.mxu1 %v872_v44  ;;  %1534 = vmatpush.msrb.mxu2 %v887_v45  ;;  %v882_v44 = vld [vmem:[%s4398_s1 + $0x110] sm:$0xff]  ;;  %v305_v45 = vld [vmem:[%s2830_s22 + $0x108] sm:$0xff]  ;;  %v337_v54 = vmul.f32 %v2838_v10, %v279_v36 }
  0x42   : > { %2597 = vmatmul.msk.f32.gmra.mxu0 %vm572_vm0, %v3035_v42  ;;  %1647 = vmatpush.msrb.mxu3 %v903_v48  ;;  %v3163_v48 = vmax.f32 %v394_v30, 0.0  ;;  %v363_v1 = vmul.f32 %v2838_v10, %v305_v45  ;;  %4489 = vst [vmem:[#allocation19_spill] sm:$0xff] %v3192_v4 }
  0x43   : > { %1758 = vmatpush.msrb.mxu0 %v921_v55  ;;  %1421 = vmatpush.msrb.mxu1 %v871_v56  ;;  %v866_v55 = vld [vmem:[%s4398_s1 + $0x90] sm:$0xff]  ;;  %v881_v56 = vld [vmem:[%s4398_s1 + $0x108] sm:$0xff] }
  0x44   : > { %1349 = vmatmul.f32.gmra.mxu1 %v3049_v49  ;;  %1373 = vmatmul.f32.gmra.mxu2 %v3051_v50 }
  0x45   : > { %1535 = vmatpush.msrb.mxu2 %v886_v62  ;;  %1648 = vmatpush.msrb.mxu3 %v902_v63  ;;  %v3177_v62 = vmax.f32 %v407_v39, 0.0  ;;  %v3179_v63 = vmax.f32 %v419_v40, 0.0  ;;  %v364_v40 = vmul.f32 %v2838_v10, %v306_v24 }
  0x46   : > { %1397 = vmatmul.f32.gmra.mxu3 %v3064_v57  ;;  %1759 = vmatpush.msrb.mxu0 %v920_v0  ;;  %v351_v0 = vmul.f32 %v2838_v10, %v293_v41  ;;  %v912_v41 = vld [vmem:[%s4398_s1 + $0x200] sm:$0xff] }
  0x47   : > { %1422 = vmatpush.msrb.mxu1 %v870_v5  ;;  %1536 = vmatpush.msrb.mxu2 %v885_v6  ;;  %4487 = vst [vmem:[#allocation17_spill] sm:$0xff] %v3177_v62  ;;  %v395_v5 = vadd.f32 %v2853_v17, %v337_v54  ;;  %v375_v6 = vmul.f32 %v2838_v10, %v317_v60 }
  0x48   : > { %1649 = vmatpush.msrb.mxu3 %v901_v8  ;;  %1760 = vmatpush.msrb.mxu0 %v919_v9  ;;  %4488 = vst [vmem:[#allocation18_spill] sm:$0xff] %v3179_v63  ;;  %v896_v8 = vld [vmem:[%s4398_s1 + $0x180] sm:$0xff]  ;;  %v281_v9 = vld [vmem:[%s2830_s22 + $0x48] sm:$0xff]  ;;  %v409_v13 = vadd.f32 %v2853_v17, %v351_v0  ;;  %v422_v54 = vadd.f32 %v2853_v17, %v364_v40  ;;  %v974_v0 = vld [vmem:[%s4398_s1 + $0x3f0] sm:$0xff] }
  0x49   : > { %1423 = vmatpush.msrb.mxu1 %v869_v14  ;;  %1537 = vmatpush.msrb.mxu2 %v884_v15  ;;  %v421_v14 = vadd.f32 %v2853_v17, %v363_v1  ;;  %v294_v15 = vld [vmem:[%s2830_s22 + $0xb0] sm:$0xff]  ;;  %v433_v30 = vadd.f32 %v2853_v17, %v375_v6  ;;  %v339_v31 = vmul.f32 %v2838_v10, %v281_v9  ;;  %v280_v40 = vld [vmem:[%s2830_s22 + $0x40] sm:$0x3] }
  0x4a   : > { %1325 = vmatmul.f32.gmra.mxu0 %v3097_v11  ;;  %1650 = vmatpush.msrb.mxu3 %v900_v20  ;;  %v959_v20 = vld [vmem:[%s4398_s1 + $0x378] sm:$0xff]  ;;  %v3233_v36 = vmax.f32 %v409_v13, 0.0  ;;  %v352_v39 = vmul.f32 %v2838_v10, %v294_v15  ;;  %v942_v1 = vld [vmem:[%s4398_s1 + $0x2f0] sm:$0xff]  ;;  %v3296_v13 = vrot.slane %v4403_v58, 1  ;;  %v797_v15 = vsel %vm572_vm0, %v3035_v42, 0.0 }
  0x4b   : > { %1761 = vmatpush.msrb.mxu0 %v918_v27  ;;  %1424 = vmatpush.msrb.mxu1 %v868_v28  ;;  %v975_v27 = vld [vmem:[%s4398_s1 + $0x3f8] sm:$0xff]  ;;  %v3225_v28 = vmax.f32 %v395_v5, 0.0  ;;  %v277_v5 = vld [vmem:[%s2830_s22 + $0x28] sm:$0x3]  ;;  %v1046_v24 = vrot.slane %v797_v15, 1 }
  0x4c   : > { %2602 = vmatmul.msk.f32.gmra.mxu1 %vm572_vm0, %v3111_v21  ;;  %2606 = vmatmul.msk.f32.gmra.mxu2 %vm572_vm0, %v3113_v22  ;;  %4490 = vst [vmem:[#allocation20_spill] sm:$0xff] %v3233_v36  ;;  %v410_v51 = vadd.f32 %v2853_v17, %v352_v39 }
  0x4d   : > { %1538 = vmatpush.msrb.mxu2 %v883_v34  ;;  %1651 = vmatpush.msrb.mxu3 %v899_v35  ;;  %v943_v34 = vld [vmem:[%s4398_s1 + $0x2f8] sm:$0xff]  ;;  %v318_v35 = vld [vmem:[%s2830_s22 + $0x170] sm:$0xff]  ;;  %4496 = vst [vmem:[#allocation26_spill] sm:$0xff] %v3296_v13 }
  0x4e   : > { %2610 = vmatmul.msk.f32.gmra.mxu3 %vm572_vm0, %v3124_v29  ;;  %1762 = vmatpush.msrb.mxu0 %v917_v38  ;;  %v3235_v38 = vmax.f32 %v421_v14, 0.0  ;;  %v376_v45 = vmul.f32 %v2838_v10, %v318_v35  ;;  %v3299_v14 = vrot.slane %v4403_v58, 2  ;;  %v292_v58 = vld [vmem:[%s2830_s22 + $0xa0] sm:$0x3] }
  0x4f   : > { %1425 = vmatpush.msrb.mxu1 %v867_v43  ;;  %1539 = vmatpush.msrb.mxu2 %v882_v44  ;;  %v3243_v43 = vmax.f32 %v433_v30, 0.0  ;;  %v397_v44 = vadd.f32 %v2853_v17, %v339_v31  ;;  %v957_v30 = vld [vmem:[%s4398_s1 + $0x368] sm:$0xff] }
  0x50   : > { %1652 = vmatpush.msrb.mxu3 %v898_v46  ;;  %1763 = vmatpush.msrb.mxu0 %v916_v47  ;;  %4491 = vst [vmem:[#allocation21_spill] sm:$0xff] %v3235_v38  ;;  %v991_v46 = vld [vmem:[%s4398_s1 + $0x478] sm:$0xff]  ;;  %v282_v47 = vld [vmem:[%s2830_s22 + $0x50] sm:$0xff]  ;;  %v434_v60 = vadd.f32 %v2853_v17, %v376_v45  ;;  %v973_v31 = vld [vmem:[%s4398_s1 + $0x3e8] sm:$0xff]  ;;  %v1160_v45 = vrot.slane %v3097_v11, 2 }
  0x51   : > { %1426 = vmatpush.msrb.mxu1 %v866_v55  ;;  %1540 = vmatpush.msrb.mxu2 %v881_v56  ;;  %4492 = vst [vmem:[#allocation22_spill] sm:$0xff] %v3243_v43  ;;  %v958_v55 = vld [vmem:[%s4398_s1 + $0x370] sm:$0xff]  ;;  %v3265_v56 = vmax.f32 %v397_v44, 0.0  ;;  %v1159_v44 = vrot.slane %v797_v15, 2 }
  0x52   : > { %2598 = vmatmul.msk.f32.gmra.mxu0 %vm572_vm0, %v3163_v48  ;;  %1653 = vmatpush.msrb.mxu3 %v897_v61  ;;  %v340_v61 = vmul.f32 %v2838_v10, %v282_v47  ;;  %v3283_v6 = vmax.f32 %v434_v60, 0.0  ;;  %4497 = vst [vmem:[#allocation27_spill] sm:$0xff] %v3299_v14 }
  0x53   : > { %1764 = vmatpush.msrb.mxu0 %v915_v2  ;;  %1427 = vmatpush.msrb.mxu1 %v865_v3  ;;  %v3275_v2 = vmax.f32 %v410_v51, 0.0  ;;  %v3277_v3 = vmax.f32 %v422_v54, 0.0  ;;  %v800_v51 = vsel %vm572_vm0, %v3163_v48, 0.0 }
  0x54   : > { %1355 = vmatmul.f32.gmra.mxu1 %v3177_v62  ;;  %1379 = vmatmul.f32.gmra.mxu2 %v3179_v63  ;;  %v1051_v60 = vrot.slane %v800_v51, 1 }
  0x55   : > { %1541 = vmatpush.msrb.mxu2 %v880_v7  ;;  %1654 = vmatpush.msrb.mxu3 %v896_v8  ;;  %4493 = vst [vmem:[#allocation23_spill] sm:$0xff] %v3275_v2  ;;  %v398_v7 = vadd.f32 %v2853_v17, %v340_v61  ;;  %v335_v8 = vmul.f32 %v2838_v10, %v277_v5  ;;  %v972_v5 = vld [vmem:[%s4398_s1 + $0x3e0] sm:$0xff] }
  0x56   : > { %1403 = vmatmul.f32.gmra.mxu3 %v3192_v4  ;;  %1765 = vmatpush.msrb.mxu0 %v914_v12  ;;  %4494 = vst [vmem:[#allocation24_spill] sm:$0xff] %v3277_v3  ;;  %v990_v12 = vld [vmem:[%s4398_s1 + $0x470] sm:$0xff] }
  0x57   : > { %1428 = vmatpush.msrb.mxu1 %v864_v19  ;;  %1978 = vmatpush.msra.mxu2 %v959_v20  ;;  %v3290_v9 = vmax.f32 %v398_v7, 0.0  ;;  %v393_v19 = vadd.f32 %v2853_v17, %v335_v8  ;;  %v3306_v20 = vadd.s32 16, %v2865_v25  ;;  %v940_v7 = vld [vmem:[%s4398_s1 + $0x2e0] sm:$0xff] }
  0x58   : > { %1766 = vmatpush.msrb.mxu0 %v913_v26  ;;  %2091 = vmatpush.msra.mxu3 %v975_v27  ;;  %v1047_v26 = vrot.slane %v3097_v11, 1 }
  0x59   : > { %1865 = vmatpush.msra.mxu1 %v943_v34  ;;  %1979 = vmatpush.msra.mxu2 %v958_v55  ;;  %4495 = vst [vmem:[#allocation25_spill] sm:$0xff] %v3290_v9  ;;  %v447_v27 = vmax.f32 %v393_v19, 0.0  ;;  %vm631_vm2 = vcmp.le.s32.totalorder %v3306_v20, 16  ;;  %v941_v34 = vld [vmem:[%s4398_s1 + $0x2e8] sm:$0xff]  ;;  %v3343_v55 = vsel %vm1153_vm3, %v1159_v44, %v1160_v45  ;;  %v283_v19 = vld [vmem:[%s2830_s22 + $0x58] sm:$0x3] }
  0x5a   : > { %1331 = vmatmul.f32.gmra.mxu0 %v3225_v28  ;;  %2092 = vmatpush.msra.mxu3 %v974_v0  ;;  %v1048_v35 = vsel %vm1040_vm1, %v1046_v24, %v1047_v26  ;;  %v956_v0 = vld [vmem:[%s4398_s1 + $0x360] sm:$0xff] }
  0x5b   : > { %1767 = vmatpush.msrb.mxu0 %v912_v41  ;;  %1866 = vmatpush.msra.mxu1 %v942_v1  ;;  %v799_v39 = vsel %vm631_vm2, %v447_v27, 0.0  ;;  %v1164_v27 = vrot.slane %v800_v51, 2 }
  0x5c   : > { %2603 = vmatmul.msk.f32.gmra.mxu1 %vm572_vm0, %v3233_v36  ;;  %2607 = vmatmul.msk.f32.gmra.mxu2 %vm572_vm0, %v3235_v38  ;;  %v1049_v41 = vrot.slane %v799_v39, 1  ;;  %v1162_v1 = vrot.slane %v799_v39, 2 }
  0x5d   : > { %2204 = vmatpush.msra.mxu0 %v991_v46  ;;  %1980 = vmatpush.msra.mxu2 %v957_v30  ;;  %v989_v46 = vld [vmem:[%s4398_s1 + $0x468] sm:$0xff]  ;;  %v1165_v30 = vrot.slane %v3225_v28, 2 }
  0x5e   : > { %2611 = vmatmul.msk.f32.gmra.mxu3 %vm572_vm0, %v3243_v43  ;;  %1867 = vmatpush.msra.mxu1 %v941_v34  ;;  %v1050_v47 = vsel %vm1040_vm1, %v1047_v26, %v1049_v41  ;;  %v3365_v15 = vsel %vm1153_vm3, %v1160_v45, %v1162_v1  ;;  %v341_v26 = vmul.f32 %v2838_v10, %v283_v19  ;;  %v955_v45 = vld [vmem:[%s4398_s1 + $0x358] sm:$0xff] }
  0x5f   : > { %2205 = vmatpush.msra.mxu0 %v990_v12  ;;  %2093 = vmatpush.msra.mxu3 %v973_v31  ;;  %v988_v31 = vld [vmem:[%s4398_s1 + $0x460] sm:$0xff] }
  0x60   : > { %1981 = vmatpush.msra.mxu2 %v956_v0  ;;  %1868 = vmatpush.msra.mxu1 %v940_v7  ;;  %v399_v39 = vadd.f32 %v2853_v17, %v341_v26  ;;  %v1170_v7 = vrot.slane %v3290_v9, 2 }
  0x61   : > { %2206 = vmatpush.msra.mxu0 %v989_v46  ;;  %2094 = vmatpush.msra.mxu3 %v972_v5 }
  0x62   : > { %2599 = vmatmul.msk.f32.gmra.mxu0 %vm572_vm0, %v3265_v56  ;;  %v453_v44 = vmax.f32 %v399_v39, 0.0  ;;  %1982 = vmatpush.msra.mxu2 %v955_v45  ;;  %v954_v39 = vld [vmem:[%s4398_s1 + $0x350] sm:$0xff] }
  0x63   : > { %2207 = vmatpush.msra.mxu0 %v988_v31  ;;  %v1062_v31 = vrot.slane %v2926_v52, 1  ;;  %v938_v45 = vld [vmem:[%s4398_s1 + $0x2d0] sm:$0xff] }
  0x64   : > { %1361 = vmatmul.f32.gmra.mxu1 %v3275_v2  ;;  %1385 = vmatmul.f32.gmra.mxu2 %v3277_v3 }
  0x65   : > { %1983 = vmatpush.msra.mxu2 %v954_v39  ;;  %v1067_v39 = vrot.slane %v3049_v49, 1 }
  0x66   : > { %1409 = vmatmul.f32.gmra.mxu3 %v3283_v6 }
  0x6a   : > { %1337 = vmatmul.f32.gmra.mxu0 %v3290_v9 }
  0x6c   : > { %1429 = vmatmul.f32.vlgmr.msrb.gmra.mxu1 %v3296_v13  ;;  %1542 = vmatmul.f32.vlgmr.msrb.gmra.mxu2 %v3299_v14 }
  0x6e   : > { %2612 = vmatmul.msk.f32.vlgmr.msrb.gmra.mxu3 %vm572_vm0, %v3035_v42  ;;  %v338_v42 = vmul.f32 %v2838_v10, %v280_v40  ;;  %v3384_v40 = vsel %vm1153_vm3, %v1164_v27, %v1165_v30 }
  0x70   : > { %v396_v54 = vadd.f32 %v2853_v17, %v338_v42  ;;  %v1057_v42 = vrot.slane %v3290_v9, 1 }
  0x72   : > { %1768 = vmatmul.f32.vlgmr.msrb.gmra.mxu0 %v1048_v35  ;;  %v450_v61 = vmax.f32 %v396_v54, 0.0  ;;  %v939_v54 = vld [vmem:[%s4398_s1 + $0x2d8] sm:$0xff] }
  0x73   : > { %1869 = vmatpush.msra.mxu1 %v939_v54  ;;  %v289_v54 = vld [vmem:[%s2830_s22 + $0x88] sm:$0x3] }
  0x74   : > { %1432 = vmatmul.f32.gmra.mxu1 %v3296_v13  ;;  %1545 = vmatmul.f32.gmra.mxu2 %v3299_v14  ;;  %v802_v12 = vsel %vm631_vm2, %v450_v61, 0.0  ;;  %v286_v61 = vld [vmem:[%s2830_s22 + $0x70] sm:$0x3] }
  0x75   : > { %v1054_v24 = vrot.slane %v802_v12, 1  ;;  %v1167_v46 = vrot.slane %v802_v12, 2  ;;  %v344_v1 = vmul.f32 %v2838_v10, %v286_v61  ;;  %v987_v12 = vld [vmem:[%s4398_s1 + $0x458] sm:$0xff]  ;;  %1870 = vmatpush.msra.mxu1 %v938_v45  ;;  %v347_v61 = vmul.f32 %v2838_v10, %v289_v54  ;;  %v969_v45 = vld [vmem:[%s4398_s1 + $0x3c8] sm:$0xff] }
  0x76   : > { %1658 = vmatmul.f32.gmra.mxu3 %v3097_v11  ;;  %v1052_v11 = vrot.slane %v3225_v28, 1  ;;  %2208 = vmatpush.msra.mxu0 %v987_v12  ;;  %v809_v12 = vsel %vm572_vm0, %v2983_v16, 0.0 }
  0x77   : > { %v402_v26 = vadd.f32 %v2853_v17, %v344_v1  ;;  %v1175_v1 = vrot.slane %v2926_v52, 2  ;;  %v1179_v14 = vrot.slane %v809_v12, 2 }
  0x78   : > { %v3360_v8 = vsel %vm1040_vm1, %v1051_v60, %v1052_v11  ;;  %v3377_v34 = vsel %vm1040_vm1, %v1052_v11, %v1054_v24  ;;  %v805_v60 = vsel %vm631_vm2, %v453_v44, 0.0  ;;  %v3408_v11 = vsel %vm1153_vm3, %v1165_v30, %v1167_v46 }
  0x79   : > { %v1059_v0 = vrot.slane %v805_v60, 1  ;;  %v806_v24 = vsel %vm572_vm0, %v2877_v32, 0.0 }
  0x7a   : > { %1771 = vmatmul.f32.gmra.mxu0 %v1050_v47  ;;  %v1061_v30 = vrot.slane %v806_v24, 1 }
  0x7b   : > { %v3421_v19 = vsel %vm1040_vm1, %v1057_v42, %v1059_v0  ;;  %v1174_v0 = vrot.slane %v806_v24, 2 }
  0x7c   : > { %1435 = vmatmul.f32.gmra.mxu1 %v1048_v35  ;;  %1548 = vmatmul.f32.gmra.mxu2 %v3343_v55  ;;  %v803_v35 = vsel %vm572_vm0, %v3265_v56, 0.0  ;;  %4499 = vst [vmem:[#allocation29_spill] sm:$0xff] %v3421_v19  ;;  %v3444_v44 = vsel %vm1040_vm1, %v1061_v30, %v1062_v31 }
  0x7d   : > { %v1056_v41 = vrot.slane %v803_v35, 1  ;;  %v1169_v5 = vrot.slane %v803_v35, 2  ;;  %v456_v35 = vmax.f32 %v402_v26, 0.0  ;;  %4501 = vst [vmem:[#allocation31_spill] sm:$0xff] %v3444_v44  ;;  %v405_v26 = vadd.f32 %v2853_v17, %v347_v61 }
  0x7e   : > { %2613 = vmatmul.msk.f32.gmra.mxu3 %vm572_vm0, %v3163_v48  ;;  %v3474_v24 = vsel %vm1153_vm3, %v1174_v0, %v1175_v1 }
  0x7f   : > { %v3400_v51 = vsel %vm1040_vm1, %v1056_v41, %v1057_v42  ;;  %v3428_v27 = vsel %vm1153_vm3, %v1169_v5, %v1170_v7  ;;  %v1172_v41 = vrot.slane %v805_v60, 2  ;;  %v970_v42 = vld [vmem:[%s4398_s1 + $0x3d0] sm:$0xff]  ;;  %v808_v46 = vsel %vm631_vm2, %v456_v35, 0.0  ;;  %4504 = vst [vmem:[#allocation34_spill] sm:$0xff] %v3474_v24 }
  0x80   : > { %4498 = vst [vmem:[#allocation28_spill] sm:$0xff] %v3400_v51  ;;  %v1064_v60 = vrot.slane %v808_v46, 1  ;;  %v986_v5 = vld [vmem:[%s4398_s1 + $0x450] sm:$0xff]  ;;  %v1066_v35 = vrot.slane %v809_v12, 1 }
  0x81   : > { %4500 = vst [vmem:[#allocation30_spill] sm:$0xff] %v3428_v27  ;;  %2209 = vmatpush.msra.mxu0 %v986_v5 }
  0x82   : > { %1774 = vmatmul.f32.gmra.mxu0 %v3360_v8  ;;  %v3494_v61 = vsel %vm1040_vm1, %v1066_v35, %v1067_v39 }
  0x83   : > { %4505 = vst [vmem:[#allocation35_spill] sm:$0xff] %v3494_v61 }
  0x84   : > { %1438 = vmatmul.f32.gmra.mxu1 %v1050_v47  ;;  %1551 = vmatmul.f32.gmra.mxu2 %v3365_v15  ;;  %v971_v47 = vld [vmem:[%s4398_s1 + $0x3d8] sm:$0xff] }
  0x85   : > { %2095 = vmatpush.msra.mxu3 %v971_v47  ;;  %v3452_v47 = vsel %vm1153_vm3, %v1170_v7, %v1172_v41  ;;  %v3465_v7 = vsel %vm1040_vm1, %v1062_v31, %v1064_v60  ;;  %v459_v31 = vmax.f32 %v405_v26, 0.0  ;;  %v953_v41 = vld [vmem:[%s4398_s1 + $0x348] sm:$0xff] }
  0x86   : > { %1664 = vmatmul.f32.gmra.mxu3 %v3225_v28  ;;  %4502 = vst [vmem:[#allocation32_spill] sm:$0xff] %v3452_v47  ;;  %1984 = vmatpush.msra.mxu2 %v953_v41 }
  0x87   : > { %2096 = vmatpush.msra.mxu3 %v970_v42  ;;  %4503 = vst [vmem:[#allocation33_spill] sm:$0xff] %v3465_v7  ;;  %v1177_v42 = vrot.slane %v808_v46, 2  ;;  %v937_v46 = vld [vmem:[%s4398_s1 + $0x2c8] sm:$0xff]  ;;  %v811_v0 = vsel %vm631_vm2, %v459_v31, 0.0  ;;  %v1180_v31 = vrot.slane %v3049_v49, 2 }
  0x88   : > { %1871 = vmatpush.msra.mxu1 %v937_v46  ;;  %v1069_v35 = vrot.slane %v811_v0, 1 }
  0x89   : > { %2097 = vmatpush.msra.mxu3 %v969_v45  ;;  %v3506_v41 = vsel %vm1153_vm3, %v1175_v1, %v1177_v42  ;;  %v350_v45 = vmul.f32 %v2838_v10, %v292_v58  ;;  %v985_v1 = vld [vmem:[%s4398_s1 + $0x448] sm:$0xff]  ;;  %v812_v10 = vsel %vm572_vm0, %v3111_v21, 0.0 }
  0x8a   : > { %1777 = vmatmul.f32.gmra.mxu0 %v3377_v34  ;;  %4507 = vst [vmem:[#allocation37_spill] sm:$0xff] %v3506_v41  ;;  %v3523_v13 = vsel %vm1040_vm1, %v1067_v39, %v1069_v35  ;;  %v1072_v39 = vrot.slane %v3177_v62, 1 }
  0x8b   : > { %4508 = vst [vmem:[#allocation38_spill] sm:$0xff] %v3523_v13  ;;  %2210 = vmatpush.msra.mxu0 %v985_v1  ;;  %v408_v58 = vadd.f32 %v2853_v17, %v350_v45  ;;  %v952_v17 = vld [vmem:[%s4398_s1 + $0x340] sm:$0xff]  ;;  %v1182_v45 = vrot.slane %v811_v0, 2 }
  0x8c   : > { %1441 = vmatmul.f32.gmra.mxu1 %v3360_v8  ;;  %1554 = vmatmul.f32.gmra.mxu2 %v3384_v40  ;;  %v936_v0 = vld [vmem:[%s4398_s1 + $0x2c0] sm:$0xff] }
  0x8d   : > { %v462_v35 = vmax.f32 %v408_v58, 0.0  ;;  %1985 = vmatpush.msra.mxu2 %v952_v17  ;;  %1872 = vmatpush.msra.mxu1 %v936_v0  ;;  %v1184_v0 = vrot.slane %v812_v10, 2 }
  0x8e   : > { %2614 = vmatmul.msk.f32.gmra.mxu3 %vm572_vm0, %v3265_v56 }
  0x8f   : > { %v814_v17 = vsel %vm631_vm2, %v462_v35, 0.0  ;;  %v3575_v35 = vld [vmem:[%s4399_s2] ss:$0 sm:$0xff] }
  0x92   : > { %1780 = vmatmul.f32.gmra.mxu0 %v3400_v51 }
  0x94   : > { %1444 = vmatmul.f32.gmra.mxu1 %v3377_v34  ;;  %1557 = vmatmul.f32.gmra.mxu2 %v3408_v11 }
  0x96   : > { %1670 = vmatmul.f32.gmra.mxu3 %v3290_v9  ;;  %v1087_v9 = vrot.slane %v3051_v50, 1 }
  0x9a   : > { %1783 = vmatmul.f32.gmra.mxu0 %v3421_v19 }
  0x9c   : > { %1447 = vmatmul.f32.gmra.mxu1 %v3400_v51  ;;  %1560 = vmatmul.f32.gmra.mxu2 %v3428_v27  ;;  %v304_v27 = vld [vmem:[%s2830_s22 + $0x100] sm:$0x3] }
  0x9e   : > { %2615 = vmatmul.msk.f32.gmra.mxu3 %vm572_vm0, %v2877_v32 }
  0xa2   : > { %1786 = vmatmul.f32.gmra.mxu0 %v3444_v44 }
  0xa4   : > { %1450 = vmatmul.f32.gmra.mxu1 %v3421_v19  ;;  %1563 = vmatmul.f32.gmra.mxu2 %v3452_v47  ;;  %v1190_v47 = vrot.slane %v3275_v2, 2 }
  0xa6   : > { %1676 = vmatmul.f32.gmra.mxu3 %v2926_v52 }
  0xa9   : > { %v3471_v30 = vpop.f32.mrf.mxu1 }
  0xaa   : > { %1789 = vmatmul.f32.gmra.mxu0 %v3465_v7 }
  0xac   : > { %1453 = vmatmul.f32.gmra.mxu1 %v3444_v44  ;;  %1566 = vmatmul.f32.gmra.mxu2 %v3474_v24  ;;  %v1187_v44 = vrot.slane %v814_v17, 2 }
  0xae   : > { %2616 = vmatmul.msk.f32.gmra.mxu3 %vm572_vm0, %v2983_v16  ;;  %v1071_v16 = vrot.slane %v812_v10, 1  ;;  %v3596_v10 = vld [vmem:[%s4400_s3] ss:$0 sm:$0xff] }
  0xaf   : > { %v3489_v54 = vpop.f32.mrf.mxu2  ;;  %v3491_v60 = vpop.f32.mrf.mxu0 }
  0xb0   : > { %v3554_v58 = vsel %vm1040_vm1, %v1071_v16, %v1072_v39  ;;  %v1074_v16 = vrot.slane %v814_v17, 1 }
  0xb1   : > { %v3501_v5 = vpop.f32.mrf.mxu1  ;;  %v3503_v26 = vpop.f32.mrf.mxu3  ;;  %4511 = vst [vmem:[#allocation41_spill] sm:$0xff] %v3554_v58 }
  0xb2   : > { %4506 = vst [vmem:[#allocation36_spill] sm:$0xff] %v3503_v26  ;;  %1792 = vmatmul.f32.gmra.mxu0 %v3494_v61 }
  0xb4   : > { %1456 = vmatmul.f32.gmra.mxu1 %v3465_v7  ;;  %1569 = vmatmul.f32.gmra.mxu2 %v3506_v41  ;;  %v295_v41 = vld [vmem:[%s2830_s22 + $0xb8] sm:$0x3] }
  0xb6   : > { %1682 = vmatmul.f32.gmra.mxu3 %v3049_v49  ;;  %v3534_v49 = vsel %vm1153_vm3, %v1179_v14, %v1180_v31  ;;  %v968_v14 = vld [vmem:[%s4398_s1 + $0x3c0] sm:$0xff] }
  0xb7   : > { %v3518_v42 = vpop.f32.mrf.mxu2  ;;  %v3520_v46 = vpop.f32.mrf.mxu0  ;;  %4510 = vst [vmem:[#allocation40_spill] sm:$0xff] %v3534_v49  ;;  %2098 = vmatpush.msra.mxu3 %v968_v14  ;;  %v353_v14 = vmul.f32 %v3575_v35, %v295_v41  ;;  %v815_v41 = vsel %vm572_vm0, %v3233_v36, 0.0 }
  0xb9   : > { %v3529_v12 = vpop.f32.mrf.mxu1  ;;  %v3531_v26 = vpop.f32.mrf.mxu3 }
  0xba   : > { %4509 = vst [vmem:[#allocation39_spill] sm:$0xff] %v3531_v26  ;;  %1795 = vmatmul.f32.gmra.mxu0 %v3523_v13 }
  0xbc   : > { %1459 = vmatmul.f32.gmra.mxu1 %v3494_v61  ;;  %1572 = vmatmul.f32.gmra.mxu2 %v3534_v49  ;;  %v3566_v61 = vsel %vm1153_vm3, %v1180_v31, %v1182_v45  ;;  %v984_v31 = vld [vmem:[%s4398_s1 + $0x440] sm:$0xff] }
  0xbd   : > { %4513 = vst [vmem:[#allocation43_spill] sm:$0xff] %v3566_v61  ;;  %2211 = vmatpush.msra.mxu0 %v984_v31 }
  0xbe   : > { %2617 = vmatmul.msk.f32.gmra.mxu3 %vm572_vm0, %v3111_v21 }
  0xbf   : > { %v3549_v1 = vpop.f32.mrf.mxu2  ;;  %v3551_v26 = vpop.f32.mrf.mxu0 }
  0xc1   : > { %v3561_v21 = vpop.f32.mrf.mxu1  ;;  %v3563_v49 = vpop.f32.mrf.mxu3 }
  0xc2   : > { %4512 = vst [vmem:[#allocation42_spill] sm:$0xff] %v3563_v49  ;;  %1798 = vmatmul.f32.gmra.mxu0 %v3554_v58  ;;  %v1185_v49 = vrot.slane %v3177_v62, 2 }
  0xc4   : > { %1462 = vmatmul.f32.gmra.mxu1 %v3523_v13  ;;  %1575 = vmatmul.f32.gmra.mxu2 %v3566_v61  ;;  %v3588_v61 = vsel %vm1040_vm1, %v1072_v39, %v1074_v16  ;;  %v3604_v24 = vsel %vm1153_vm3, %v1184_v0, %v1185_v49  ;;  %v1076_v39 = vrot.slane %v815_v41, 1  ;;  %v1077_v16 = vrot.slane %v3275_v2, 1  ;;  %v967_v0 = vld [vmem:[%s4398_s1 + $0x3b8] sm:$0xff] }
  0xc5   : > { %4515 = vst [vmem:[#allocation45_spill] sm:$0xff] %v3588_v61  ;;  %2099 = vmatpush.msra.mxu3 %v967_v0  ;;  %v3636_v32 = vsel %vm1153_vm3, %v1185_v49, %v1187_v44  ;;  %v1189_v0 = vrot.slane %v815_v41, 2  ;;  %v983_v49 = vld [vmem:[%s4398_s1 + $0x438] sm:$0xff] }
  0xc6   : > { %1688 = vmatmul.f32.gmra.mxu3 %v3177_v62  ;;  %v411_v62 = vadd.f32 %v3596_v10, %v353_v14  ;;  %4517 = vst [vmem:[#allocation47_spill] sm:$0xff] %v3604_v24  ;;  %v951_v14 = vld [vmem:[%s4398_s1 + $0x338] sm:$0xff]  ;;  %2212 = vmatpush.msra.mxu0 %v983_v49 }
  0xc7   : > { %v3583_v45 = vpop.f32.mrf.mxu2  ;;  %v3585_v13 = vpop.f32.mrf.mxu0  ;;  %1986 = vmatpush.msra.mxu2 %v951_v14  ;;  %v935_v14 = vld [vmem:[%s4398_s1 + $0x2b8] sm:$0xff]  ;;  %4521 = vst [vmem:[#allocation51_spill] sm:$0xff] %v3636_v32 }
  0xc8   : > { %4514 = vst [vmem:[#allocation44_spill] sm:$0xff] %v3583_v45  ;;  %v465_v31 = vmax.f32 %v411_v62, 0.0  ;;  %v3624_v62 = vsel %vm1040_vm1, %v1076_v39, %v1077_v16  ;;  %1873 = vmatpush.msra.mxu1 %v935_v14  ;;  %v1195_v45 = vrot.slane %v2928_v53, 2 }
  0xc9   : > { %v3599_v7 = vpop.f32.mrf.mxu1  ;;  %v3601_v52 = vpop.f32.mrf.mxu3  ;;  %4519 = vst [vmem:[#allocation49_spill] sm:$0xff] %v3624_v62 }
  0xca   : > { %4516 = vst [vmem:[#allocation46_spill] sm:$0xff] %v3601_v52  ;;  %1801 = vmatmul.f32.gmra.mxu0 %v3588_v61  ;;  %v817_v17 = vsel %vm631_vm2, %v465_v31, 0.0 }
  0xcb   : > { %v1079_v39 = vrot.slane %v817_v17, 1  ;;  %v1192_v49 = vrot.slane %v817_v17, 2 }
  0xcc   : > { %1465 = vmatmul.f32.gmra.mxu1 %v3554_v58  ;;  %1578 = vmatmul.f32.gmra.mxu2 %v3604_v24 }
  0xcd   : > { %v3696_v19 = vsel %vm1153_vm3, %v1190_v47, %v1192_v49 }
  0xce   : > { %2618 = vmatmul.msk.f32.gmra.mxu3 %vm572_vm0, %v3233_v36  ;;  %4529 = vst [vmem:[#allocation59_spill] sm:$0xff] %v3696_v19 }
  0xcf   : > { %v3619_v52 = vpop.f32.mrf.mxu2  ;;  %v3621_v58 = vpop.f32.mrf.mxu0 }
  0xd0   : > { %4518 = vst [vmem:[#allocation48_spill] sm:$0xff] %v3619_v52  ;;  %v298_v52 = vld [vmem:[%s2830_s22 + $0xd0] sm:$0x3] }
  0xd1   : > { %v3631_v36 = vpop.f32.mrf.mxu1  ;;  %v3633_v24 = vpop.f32.mrf.mxu3  ;;  %v356_v31 = vmul.f32 %v3575_v35, %v298_v52  ;;  %v818_v52 = vsel %vm572_vm0, %v2879_v33, 0.0 }
  0xd2   : > { %4520 = vst [vmem:[#allocation50_spill] sm:$0xff] %v3633_v24  ;;  %1804 = vmatmul.f32.gmra.mxu0 %v3624_v62  ;;  %v3653_v24 = vsel %vm1040_vm1, %v1077_v16, %v1079_v39  ;;  %v1082_v16 = vrot.slane %v2928_v53, 1 }
  0xd3   : > { %4523 = vst [vmem:[#allocation53_spill] sm:$0xff] %v3653_v24  ;;  %v414_v41 = vadd.f32 %v3596_v10, %v356_v31  ;;  %v950_v31 = vld [vmem:[%s4398_s1 + $0x330] sm:$0xff] }
  0xd4   : > { %1468 = vmatmul.f32.gmra.mxu1 %v3588_v61  ;;  %1581 = vmatmul.f32.gmra.mxu2 %v3636_v32  ;;  %v3664_v61 = vsel %vm1153_vm3, %v1189_v0, %v1190_v47  ;;  %v966_v0 = vld [vmem:[%s4398_s1 + $0x3b0] sm:$0xff] }
  0xd5   : > { %4525 = vst [vmem:[#allocation55_spill] sm:$0xff] %v3664_v61  ;;  %v468_v39 = vmax.f32 %v414_v41, 0.0  ;;  %1987 = vmatpush.msra.mxu2 %v950_v31  ;;  %2100 = vmatpush.msra.mxu3 %v966_v0  ;;  %v934_v31 = vld [vmem:[%s4398_s1 + $0x2b0] sm:$0xff]  ;;  %v1194_v0 = vrot.slane %v818_v52, 2 }
  0xd6   : > { %1694 = vmatmul.f32.gmra.mxu3 %v3275_v2  ;;  %1874 = vmatpush.msra.mxu1 %v934_v31  ;;  %v982_v47 = vld [vmem:[%s4398_s1 + $0x430] sm:$0xff] }
  0xd7   : > { %v3648_v44 = vpop.f32.mrf.mxu2  ;;  %v3650_v14 = vpop.f32.mrf.mxu0  ;;  %v820_v17 = vsel %vm631_vm2, %v468_v39, 0.0  ;;  %2213 = vmatpush.msra.mxu0 %v982_v47  ;;  %v965_v47 = vld [vmem:[%s4398_s1 + $0x3a8] sm:$0xff] }
  0xd8   : > { %4522 = vst [vmem:[#allocation52_spill] sm:$0xff] %v3648_v44  ;;  %v1081_v44 = vrot.slane %v818_v52, 1  ;;  %2101 = vmatpush.msra.mxu3 %v965_v47 }
  0xd9   : > { %v3659_v32 = vpop.f32.mrf.mxu1  ;;  %v3661_v2 = vpop.f32.mrf.mxu3 }
  0xda   : > { %4524 = vst [vmem:[#allocation54_spill] sm:$0xff] %v3661_v2  ;;  %1807 = vmatmul.f32.gmra.mxu0 %v3653_v24  ;;  %v3684_v41 = vsel %vm1040_vm1, %v1081_v44, %v1082_v16  ;;  %v1084_v44 = vrot.slane %v820_v17, 1 }
  0xdb   : > { %4527 = vst [vmem:[#allocation57_spill] sm:$0xff] %v3684_v41 }
  0xdc   : > { %1471 = vmatmul.f32.gmra.mxu1 %v3624_v62  ;;  %1584 = vmatmul.f32.gmra.mxu2 %v3664_v61 }
  0xde   : > { %2619 = vmatmul.msk.f32.gmra.mxu3 %vm572_vm0, %v2879_v33 }
  0xdf   : > { %v3679_v2 = vpop.f32.mrf.mxu2  ;;  %v3681_v62 = vpop.f32.mrf.mxu0 }
  0xe0   : > { %4526 = vst [vmem:[#allocation56_spill] sm:$0xff] %v3679_v2  ;;  %v301_v2 = vld [vmem:[%s2830_s22 + $0xe8] sm:$0x3] }
  0xe1   : > { %v3691_v33 = vpop.f32.mrf.mxu1  ;;  %v3693_v61 = vpop.f32.mrf.mxu3  ;;  %v359_v39 = vmul.f32 %v3575_v35, %v301_v2  ;;  %v821_v2 = vsel %vm572_vm0, %v2985_v18, 0.0 }
  0xe2   : > { %4528 = vst [vmem:[#allocation58_spill] sm:$0xff] %v3693_v61  ;;  %1810 = vmatmul.f32.gmra.mxu0 %v3684_v41  ;;  %v3713_v61 = vsel %vm1040_vm1, %v1082_v16, %v1084_v44  ;;  %v949_v44 = vld [vmem:[%s4398_s1 + $0x328] sm:$0xff] }
  0xe3   : > { %v417_v52 = vadd.f32 %v3596_v10, %v359_v39  ;;  %v1197_v39 = vrot.slane %v820_v17, 2  ;;  %1988 = vmatpush.msra.mxu2 %v949_v44 }
  0xe4   : > { %1474 = vmatmul.f32.gmra.mxu1 %v3653_v24  ;;  %1587 = vmatmul.f32.gmra.mxu2 %v3696_v19  ;;  %v3722_v24 = vsel %vm1153_vm3, %v1194_v0, %v1195_v45 }
  0xe5   : > { %4532 = vst [vmem:[#allocation62_spill] sm:$0xff] %v3722_v24  ;;  %v471_v16 = vmax.f32 %v417_v52, 0.0 }
  0xe6   : > { %1700 = vmatmul.f32.gmra.mxu3 %v2928_v53 }
  0xe7   : > { %v3708_v49 = vpop.f32.mrf.mxu2  ;;  %v3710_v31 = vpop.f32.mrf.mxu0  ;;  %v823_v17 = vsel %vm631_vm2, %v471_v16, 0.0  ;;  %v1199_v16 = vrot.slane %v821_v2, 2 }
  0xe8   : > { %4530 = vst [vmem:[#allocation60_spill] sm:$0xff] %v3708_v49  ;;  %v1086_v49 = vrot.slane %v821_v2, 1 }
  0xe9   : > { %v3719_v19 = vpop.f32.mrf.mxu3  ;;  %v1430_v53 = vpop.f32.mrf.mxu1 }
  0xea   : > { %4531 = vst [vmem:[#allocation61_spill] sm:$0xff] %v3719_v19  ;;  %1813 = vmatmul.f32.gmra.mxu0 %v3713_v61  ;;  %v1431_v0 = vadd.f32 %v1430_v53, %v3491_v60  ;;  %v3739_v52 = vsel %vm1040_vm1, %v1086_v49, %v1087_v9  ;;  %v933_v53 = vld [vmem:[%s4398_s1 + $0x2a8] sm:$0xff]  ;;  %v1089_v49 = vrot.slane %v823_v17, 1 }
  0xeb   : > { %1875 = vmatpush.msra.mxu1 %v933_v53 }
  0xec   : > { %1477 = vmatmul.f32.gmra.mxu1 %v3684_v41  ;;  %1590 = vmatmul.f32.gmra.mxu2 %v3722_v24 }
  0xee   : > { %2620 = vmatmul.msk.f32.gmra.mxu3 %vm572_vm0, %v2985_v18  ;;  %v3747_v18 = vsel %vm1153_vm3, %v1195_v45, %v1197_v39 }
  0xef   : > { %v1543_v19 = vpop.f32.mrf.mxu2  ;;  %v1769_v24 = vpop.f32.mrf.mxu0 }
  0xf0   : > { %v1544_v41 = vadd.f32 %v1543_v19, %v1431_v0  ;;  %v362_v19 = vmul.f32 %v3575_v35, %v304_v27  ;;  %v1200_v0 = vrot.slane %v3051_v50, 2  ;;  %v824_v27 = vsel %vm572_vm0, %v3113_v22, 0.0 }
  0xf1   : > { %v1433_v60 = vpop.f32.mrf.mxu1  ;;  %v1656_v44 = vpop.f32.mrf.mxu3 }
  0xf2   : > { %v1657_v51 = vadd.f32 %v1656_v44, %v1544_v41  ;;  %1816 = vmatmul.f32.gmra.mxu0 %v3739_v52  ;;  %v1434_v45 = vadd.f32 %v1433_v60, %v3520_v46  ;;  %v981_v41 = vld [vmem:[%s4398_s1 + $0x428] sm:$0xff]  ;;  %v420_v2 = vadd.f32 %v3596_v10, %v362_v19  ;;  %v3770_v44 = vsel %vm1153_vm3, %v1199_v16, %v1200_v0  ;;  %v948_v19 = vld [vmem:[%s4398_s1 + $0x320] sm:$0xff] }
  0xf3   : > { %2214 = vmatpush.msra.mxu0 %v981_v41  ;;  %v1202_v16 = vrot.slane %v823_v17, 2  ;;  %1989 = vmatpush.msra.mxu2 %v948_v19 }
  0xf4   : > { %v3751_v47 = vadd.f32 %v1769_v24, %v1657_v51  ;;  %1480 = vmatmul.f32.gmra.mxu1 %v3713_v61  ;;  %1593 = vmatmul.f32.gmra.mxu2 %v3747_v18  ;;  %v3763_v24 = vsel %vm1040_vm1, %v1087_v9, %v1089_v49  ;;  %v1092_v9 = vrot.slane %v3179_v63, 1 }
  0xf5   : > { %v3797_v19 = vsel %vm1153_vm3, %v1200_v0, %v1202_v16  ;;  %v980_v16 = vld [vmem:[%s4398_s1 + $0x420] sm:$0xff] }
  0xf6   : > { %4533 = vst [vmem:[#allocation63_spill] sm:$0xff] %v3751_v47  ;;  %1706 = vmatmul.f32.gmra.mxu3 %v3051_v50  ;;  %v1091_v50 = vrot.slane %v824_v27, 1  ;;  %2215 = vmatpush.msra.mxu0 %v980_v16 }
  0xf7   : > { %v1546_v39 = vpop.f32.mrf.mxu2  ;;  %v1772_v51 = vpop.f32.mrf.mxu0 }
  0xf8   : > { %v1547_v53 = vadd.f32 %v1546_v39, %v1434_v45  ;;  %v474_v45 = vmax.f32 %v420_v2, 0.0 }
  0xf9   : > { %v1436_v46 = vpop.f32.mrf.mxu1  ;;  %v1659_v60 = vpop.f32.mrf.mxu3 }
  0xfa   : > { %v1660_v47 = vadd.f32 %v1659_v60, %v1547_v53  ;;  %1819 = vmatmul.f32.gmra.mxu0 %v3763_v24  ;;  %v1437_v41 = vadd.f32 %v1436_v46, %v3551_v26  ;;  %v3789_v53 = vsel %vm1040_vm1, %v1091_v50, %v1092_v9  ;;  %v826_v17 = vsel %vm631_vm2, %v474_v45, 0.0  ;;  %v932_v26 = vld [vmem:[%s4398_s1 + $0x2a0] sm:$0xff] }
  0xfb   : > { %1876 = vmatpush.msra.mxu1 %v932_v26  ;;  %v1094_v50 = vrot.slane %v826_v17, 1 }
  0xfc   : > { %v3774_v49 = vadd.f32 %v1772_v51, %v1660_v47  ;;  %1483 = vmatmul.f32.gmra.mxu1 %v3739_v52  ;;  %1596 = vmatmul.f32.gmra.mxu2 %v3770_v44  ;;  %v964_v47 = vld [vmem:[%s4398_s1 + $0x3a0] sm:$0xff] }
  0xfd   : > { %2102 = vmatpush.msra.mxu3 %v964_v47 }
  0xfe   : > { %4534 = vst [vmem:[#allocation64_spill] sm:$0xff] %v3774_v49  ;;  %2621 = vmatmul.msk.f32.gmra.mxu3 %vm572_vm0, %v3113_v22  ;;  %v307_v49 = vld [vmem:[%s2830_s22 + $0x118] sm:$0x3] }
  0xff   : > { %v1549_v39 = vpop.f32.mrf.mxu2  ;;  %v1775_v51 = vpop.f32.mrf.mxu0  ;;  %v365_v45 = vmul.f32 %v3575_v35, %v307_v49 }
 0x100   : > { %v1550_v2 = vadd.f32 %v1549_v39, %v1437_v41  ;;  %v1204_v41 = vrot.slane %v824_v27, 2  ;;  %v1205_v39 = vrot.slane %v3179_v63, 2  ;;  %v827_v27 = vsel %vm572_vm0, %v3235_v38, 0.0 }
 0x101   : > { %v1439_v46 = vpop.f32.mrf.mxu1  ;;  %v1662_v60 = vpop.f32.mrf.mxu3  ;;  %v423_v49 = vadd.f32 %v3596_v10, %v365_v45  ;;  %v947_v45 = vld [vmem:[%s4398_s1 + $0x318] sm:$0xff] }
 0x102   : > { %v1663_v22 = vadd.f32 %v1662_v60, %v1550_v2  ;;  %1822 = vmatmul.f32.gmra.mxu0 %v3789_v53  ;;  %v1440_v0 = vadd.f32 %v1439_v46, %v3585_v13  ;;  %v3820_v60 = vsel %vm1153_vm3, %v1204_v41, %v1205_v39  ;;  %v1207_v41 = vrot.slane %v826_v17, 2  ;;  %1990 = vmatpush.msra.mxu2 %v947_v45 }
 0x104   : > { %v3801_v47 = vadd.f32 %v1775_v51, %v1663_v22  ;;  %1486 = vmatmul.f32.gmra.mxu1 %v3763_v24  ;;  %1599 = vmatmul.f32.gmra.mxu2 %v3797_v19  ;;  %v3813_v51 = vsel %vm1040_vm1, %v1092_v9, %v1094_v50  ;;  %v1097_v9 = vrot.slane %v3277_v3, 1  ;;  %v3847_v45 = vsel %vm1153_vm3, %v1205_v39, %v1207_v41  ;;  %v979_v41 = vld [vmem:[%s4398_s1 + $0x418] sm:$0xff] }
 0x105   : > { %2216 = vmatpush.msra.mxu0 %v979_v41 }
 0x106   : > { %4535 = vst [vmem:[#allocation65_spill] sm:$0xff] %v3801_v47  ;;  %1712 = vmatmul.f32.gmra.mxu3 %v3179_v63  ;;  %v1096_v63 = vrot.slane %v827_v27, 1 }
 0x107   : > { %v1552_v2 = vpop.f32.mrf.mxu2  ;;  %v1778_v22 = vpop.f32.mrf.mxu0 }
 0x108   : > { %v1553_v26 = vadd.f32 %v1552_v2, %v1440_v0  ;;  %v477_v0 = vmax.f32 %v423_v49, 0.0 }
 0x109   : > { %v1442_v13 = vpop.f32.mrf.mxu1  ;;  %v1665_v46 = vpop.f32.mrf.mxu3 }
 0x10a   : > { %v1666_v47 = vadd.f32 %v1665_v46, %v1553_v26  ;;  %1825 = vmatmul.f32.gmra.mxu0 %v3813_v51  ;;  %v1443_v16 = vadd.f32 %v1442_v13, %v3621_v58  ;;  %v3839_v26 = vsel %vm1040_vm1, %v1096_v63, %v1097_v9  ;;  %v829_v17 = vsel %vm631_vm2, %v477_v0, 0.0  ;;  %v931_v58 = vld [vmem:[%s4398_s1 + $0x298] sm:$0xff] }
 0x10b   : > { %1877 = vmatpush.msra.mxu1 %v931_v58  ;;  %v1099_v63 = vrot.slane %v829_v17, 1 }
 0x10c   : > { %v3824_v50 = vadd.f32 %v1778_v22, %v1666_v47  ;;  %1489 = vmatmul.f32.gmra.mxu1 %v3789_v53  ;;  %1602 = vmatmul.f32.gmra.mxu2 %v3820_v60  ;;  %v963_v47 = vld [vmem:[%s4398_s1 + $0x398] sm:$0xff] }
 0x10d   : > { %2103 = vmatpush.msra.mxu3 %v963_v47 }
 0x10e   : > { %4536 = vst [vmem:[#allocation66_spill] sm:$0xff] %v3824_v50  ;;  %2622 = vmatmul.msk.f32.gmra.mxu3 %vm572_vm0, %v3235_v38  ;;  %v310_v50 = vld [vmem:[%s2830_s22 + $0x130] sm:$0x3] }
 0x10f   : > { %v1555_v2 = vpop.f32.mrf.mxu2  ;;  %v1781_v22 = vpop.f32.mrf.mxu0  ;;  %v368_v0 = vmul.f32 %v3575_v35, %v310_v50 }
 0x110   : > { %v1556_v49 = vadd.f32 %v1555_v2, %v1443_v16  ;;  %v1209_v16 = vrot.slane %v827_v27, 2  ;;  %v1210_v2 = vrot.slane %v3277_v3, 2  ;;  %v830_v27 = vsel %vm572_vm0, %v2887_v37, 0.0 }
 0x111   : > { %v1445_v13 = vpop.f32.mrf.mxu1  ;;  %v1668_v46 = vpop.f32.mrf.mxu3  ;;  %v426_v50 = vadd.f32 %v3596_v10, %v368_v0  ;;  %v946_v0 = vld [vmem:[%s4398_s1 + $0x310] sm:$0xff] }
 0x112   : > { %v1669_v38 = vadd.f32 %v1668_v46, %v1556_v49  ;;  %1828 = vmatmul.f32.gmra.mxu0 %v3839_v26  ;;  %v1446_v39 = vadd.f32 %v1445_v13, %v3650_v14  ;;  %v3870_v46 = vsel %vm1153_vm3, %v1209_v16, %v1210_v2  ;;  %v1212_v16 = vrot.slane %v829_v17, 2  ;;  %1991 = vmatpush.msra.mxu2 %v946_v0 }
 0x114   : > { %v3851_v47 = vadd.f32 %v1781_v22, %v1669_v38  ;;  %1492 = vmatmul.f32.gmra.mxu1 %v3813_v51  ;;  %1605 = vmatmul.f32.gmra.mxu2 %v3847_v45  ;;  %v3863_v22 = vsel %vm1040_vm1, %v1097_v9, %v1099_v63  ;;  %v1102_v9 = vrot.slane %v2939_v59, 1  ;;  %v3897_v0 = vsel %vm1153_vm3, %v1210_v2, %v1212_v16  ;;  %v978_v16 = vld [vmem:[%s4398_s1 + $0x410] sm:$0xff] }
 0x115   : > { %2217 = vmatpush.msra.mxu0 %v978_v16 }
 0x116   : > { %4537 = vst [vmem:[#allocation67_spill] sm:$0xff] %v3851_v47  ;;  %1718 = vmatmul.f32.gmra.mxu3 %v3277_v3  ;;  %v1101_v3 = vrot.slane %v830_v27, 1 }
 0x117   : > { %v1558_v49 = vpop.f32.mrf.mxu2  ;;  %v1784_v38 = vpop.f32.mrf.mxu0 }
 0x118   : > { %v1559_v58 = vadd.f32 %v1558_v49, %v1446_v39  ;;  %v480_v39 = vmax.f32 %v426_v50, 0.0 }
 0x119   : > { %v1448_v14 = vpop.f32.mrf.mxu1  ;;  %v1671_v13 = vpop.f32.mrf.mxu3 }
 0x11a   : > { %v1672_v47 = vadd.f32 %v1671_v13, %v1559_v58  ;;  %1831 = vmatmul.f32.gmra.mxu0 %v3863_v22  ;;  %v1449_v41 = vadd.f32 %v1448_v14, %v3681_v62  ;;  %v3889_v58 = vsel %vm1040_vm1, %v1101_v3, %v1102_v9  ;;  %v832_v17 = vsel %vm631_vm2, %v480_v39, 0.0  ;;  %v930_v62 = vld [vmem:[%s4398_s1 + $0x290] sm:$0xff] }
 0x11b   : > { %1878 = vmatpush.msra.mxu1 %v930_v62  ;;  %v1104_v3 = vrot.slane %v832_v17, 1 }
 0x11c   : > { %v3874_v63 = vadd.f32 %v1784_v38, %v1672_v47  ;;  %1495 = vmatmul.f32.gmra.mxu1 %v3839_v26  ;;  %1608 = vmatmul.f32.gmra.mxu2 %v3870_v46  ;;  %v962_v47 = vld [vmem:[%s4398_s1 + $0x390] sm:$0xff] }
 0x11d   : > { %2104 = vmatpush.msra.mxu3 %v962_v47 }
 0x11e   : > { %4538 = vst [vmem:[#allocation68_spill] sm:$0xff] %v3874_v63  ;;  %2623 = vmatmul.msk.f32.gmra.mxu3 %vm572_vm0, %v2887_v37  ;;  %v313_v63 = vld [vmem:[%s2830_s22 + $0x148] sm:$0x3] }
 0x11f   : > { %v1561_v49 = vpop.f32.mrf.mxu2  ;;  %v1787_v38 = vpop.f32.mrf.mxu0  ;;  %v371_v39 = vmul.f32 %v3575_v35, %v313_v63 }
 0x120   : > { %v1562_v50 = vadd.f32 %v1561_v49, %v1449_v41  ;;  %v1214_v41 = vrot.slane %v830_v27, 2  ;;  %v1215_v49 = vrot.slane %v2939_v59, 2  ;;  %v833_v27 = vsel %vm572_vm0, %v2996_v23, 0.0 }
 0x121   : > { %v1451_v14 = vpop.f32.mrf.mxu1  ;;  %v1674_v13 = vpop.f32.mrf.mxu3  ;;  %v429_v63 = vadd.f32 %v3596_v10, %v371_v39  ;;  %v945_v39 = vld [vmem:[%s4398_s1 + $0x308] sm:$0xff] }
 0x122   : > { %v1675_v37 = vadd.f32 %v1674_v13, %v1562_v50  ;;  %1834 = vmatmul.f32.gmra.mxu0 %v3889_v58  ;;  %v1452_v2 = vadd.f32 %v1451_v14, %v3710_v31  ;;  %v3920_v13 = vsel %vm1153_vm3, %v1214_v41, %v1215_v49  ;;  %v1217_v41 = vrot.slane %v832_v17, 2  ;;  %1992 = vmatpush.msra.mxu2 %v945_v39 }
 0x124   : > { %v3901_v47 = vadd.f32 %v1787_v38, %v1675_v37  ;;  %1498 = vmatmul.f32.gmra.mxu1 %v3863_v22  ;;  %1611 = vmatmul.f32.gmra.mxu2 %v3897_v0  ;;  %v3913_v38 = vsel %vm1040_vm1, %v1102_v9, %v1104_v3  ;;  %v1107_v9 = vrot.slane %v3064_v57, 1  ;;  %v3947_v39 = vsel %vm1153_vm3, %v1215_v49, %v1217_v41  ;;  %v977_v41 = vld [vmem:[%s4398_s1 + $0x408] sm:$0xff] }
 0x125   : > { %2218 = vmatpush.msra.mxu0 %v977_v41 }
 0x126   : > { %4539 = vst [vmem:[#allocation69_spill] sm:$0xff] %v3901_v47  ;;  %1724 = vmatmul.f32.gmra.mxu3 %v2939_v59  ;;  %v1106_v59 = vrot.slane %v833_v27, 1 }
 0x127   : > { %v1564_v50 = vpop.f32.mrf.mxu2  ;;  %v1790_v37 = vpop.f32.mrf.mxu0 }
 0x128   : > { %v1565_v62 = vadd.f32 %v1564_v50, %v1452_v2  ;;  %v483_v2 = vmax.f32 %v429_v63, 0.0 }
 0x129   : > { %v1454_v31 = vpop.f32.mrf.mxu1  ;;  %v1677_v14 = vpop.f32.mrf.mxu3 }
 0x12a   : > { %v1678_v47 = vadd.f32 %v1677_v14, %v1565_v62  ;;  %1837 = vmatmul.f32.gmra.mxu0 %v3913_v38  ;;  %v1455_v16 = vadd.f32 %v1454_v31, %v3471_v30  ;;  %v3939_v62 = vsel %vm1040_vm1, %v1106_v59, %v1107_v9  ;;  %v835_v17 = vsel %vm631_vm2, %v483_v2, 0.0  ;;  %v929_v30 = vld [vmem:[%s4398_s1 + $0x288] sm:$0xff] }
 0x12b   : > { %1879 = vmatpush.msra.mxu1 %v929_v30  ;;  %v1109_v59 = vrot.slane %v835_v17, 1 }
 0x12c   : > { %v3924_v3 = vadd.f32 %v1790_v37, %v1678_v47  ;;  %1501 = vmatmul.f32.gmra.mxu1 %v3889_v58  ;;  %1614 = vmatmul.f32.gmra.mxu2 %v3920_v13  ;;  %v961_v47 = vld [vmem:[%s4398_s1 + $0x388] sm:$0xff] }
 0x12d   : > { %2105 = vmatpush.msra.mxu3 %v961_v47 }
 0x12e   : > { %4540 = vst [vmem:[#allocation70_spill] sm:$0xff] %v3924_v3  ;;  %2624 = vmatmul.msk.f32.gmra.mxu3 %vm572_vm0, %v2996_v23  ;;  %v316_v3 = vld [vmem:[%s2830_s22 + $0x160] sm:$0x3] }
 0x12f   : > { %v1567_v50 = vpop.f32.mrf.mxu2  ;;  %v1793_v37 = vpop.f32.mrf.mxu0  ;;  %v374_v2 = vmul.f32 %v3575_v35, %v316_v3 }
 0x130   : > { %v1568_v63 = vadd.f32 %v1567_v50, %v1455_v16  ;;  %v1219_v16 = vrot.slane %v833_v27, 2  ;;  %v1220_v50 = vrot.slane %v3064_v57, 2  ;;  %v836_v27 = vsel %vm572_vm0, %v3124_v29, 0.0 }
 0x131   : > { %v1457_v31 = vpop.f32.mrf.mxu1  ;;  %v1680_v14 = vpop.f32.mrf.mxu3  ;;  %v432_v3 = vadd.f32 %v3596_v10, %v374_v2  ;;  %v944_v2 = vld [vmem:[%s4398_s1 + $0x300] sm:$0xff] }
 0x132   : > { %v1681_v23 = vadd.f32 %v1680_v14, %v1568_v63  ;;  %1840 = vmatmul.f32.gmra.mxu0 %v3939_v62  ;;  %v1458_v49 = vadd.f32 %v1457_v31, %v3501_v5  ;;  %v3970_v14 = vsel %vm1153_vm3, %v1219_v16, %v1220_v50  ;;  %v1222_v16 = vrot.slane %v835_v17, 2  ;;  %1993 = vmatpush.msra.mxu2 %v944_v2 }
 0x134   : > { %v3951_v47 = vadd.f32 %v1793_v37, %v1681_v23  ;;  %1504 = vmatmul.f32.gmra.mxu1 %v3913_v38  ;;  %1617 = vmatmul.f32.gmra.mxu2 %v3947_v39  ;;  %v3963_v37 = vsel %vm1040_vm1, %v1107_v9, %v1109_v59  ;;  %v1112_v9 = vrot.slane %v3192_v4, 1  ;;  %v3997_v2 = vsel %vm1153_vm3, %v1220_v50, %v1222_v16  ;;  %v976_v16 = vld [vmem:[%s4398_s1 + $0x400] sm:$0xff] }
 0x135   : > { %4542 = vst [vmem:[#allocation72_spill] sm:$0xff] %v3963_v37  ;;  %2219 = vmatpush.msra.mxu0 %v976_v16 }
 0x136   : > { %4541 = vst [vmem:[#allocation71_spill] sm:$0xff] %v3951_v47  ;;  %1730 = vmatmul.f32.gmra.mxu3 %v3064_v57  ;;  %v1111_v57 = vrot.slane %v836_v27, 1 }
 0x137   : > { %v1570_v63 = vpop.f32.mrf.mxu2  ;;  %v1796_v23 = vpop.f32.mrf.mxu0  ;;  %4545 = vst [vmem:[#allocation75_spill] sm:$0xff] %v3997_v2 }
 0x138   : > { %v1571_v30 = vadd.f32 %v1570_v63, %v1458_v49  ;;  %v486_v49 = vmax.f32 %v432_v3, 0.0 }
 0x139   : > { %v1460_v5 = vpop.f32.mrf.mxu1  ;;  %v1683_v31 = vpop.f32.mrf.mxu3 }
 0x13a   : > { %v1684_v47 = vadd.f32 %v1683_v31, %v1571_v30  ;;  %1843 = vmatmul.f32.gmra.mxu0 %v3963_v37  ;;  %v1461_v41 = vadd.f32 %v1460_v5, %v3529_v12  ;;  %v3989_v30 = vsel %vm1040_vm1, %v1111_v57, %v1112_v9  ;;  %v838_v17 = vsel %vm631_vm2, %v486_v49, 0.0  ;;  %v928_v12 = vld [vmem:[%s4398_s1 + $0x280] sm:$0xff] }
 0x13b   : > { %4544 = vst [vmem:[#allocation74_spill] sm:$0xff] %v3989_v30  ;;  %1880 = vmatpush.msra.mxu1 %v928_v12  ;;  %v1114_v57 = vrot.slane %v838_v17, 1 }
 0x13c   : > { %v3974_v59 = vadd.f32 %v1796_v23, %v1684_v47  ;;  %1507 = vmatmul.f32.gmra.mxu1 %v3939_v62  ;;  %1620 = vmatmul.f32.gmra.mxu2 %v3970_v14  ;;  %v960_v47 = vld [vmem:[%s4398_s1 + $0x380] sm:$0xff] }
 0x13d   : > { %2106 = vmatpush.msra.mxu3 %v960_v47 }
 0x13e   : > { %4543 = vst [vmem:[#allocation73_spill] sm:$0xff] %v3974_v59  ;;  %2625 = vmatmul.msk.f32.gmra.mxu3 %vm572_vm0, %v3124_v29  ;;  %v319_v59 = vld [vmem:[%s2830_s22 + $0x178] sm:$0x3] }
 0x13f   : > { %v1573_v63 = vpop.f32.mrf.mxu2  ;;  %v1799_v23 = vpop.f32.mrf.mxu0  ;;  %v377_v49 = vmul.f32 %v3575_v35, %v319_v59 }
 0x140   : > { %v1574_v3 = vadd.f32 %v1573_v63, %v1461_v41  ;;  %v1224_v41 = vrot.slane %v836_v27, 2  ;;  %v1225_v63 = vrot.slane %v3192_v4, 2  ;;  %v839_v27 = vsel %vm572_vm0, %v3243_v43, 0.0 }
 0x141   : > { %v1463_v5 = vpop.f32.mrf.mxu1  ;;  %v1686_v31 = vpop.f32.mrf.mxu3 }
 0x142   : > { %v1687_v29 = vadd.f32 %v1686_v31, %v1574_v3  ;;  %1846 = vmatmul.f32.gmra.mxu0 %v3989_v30  ;;  %v1464_v50 = vadd.f32 %v1463_v5, %v3561_v21  ;;  %v4013_v3 = vsel %vm1040_vm1, %v1112_v9, %v1114_v57  ;;  %v435_v21 = vadd.f32 %v3596_v10, %v377_v49  ;;  %v320_v57 = vld [vmem:[%s2830_s22 + $0x180] sm:$0xff] }
 0x143   : > { %v4020_v31 = vsel %vm1153_vm3, %v1224_v41, %v1225_v63  ;;  %v1117_v9 = vrot.slane %v3283_v6, 1 }
 0x144   : > { %v4001_v47 = vadd.f32 %v1799_v23, %v1687_v29  ;;  %1510 = vmatmul.f32.gmra.mxu1 %v3963_v37  ;;  %1623 = vmatmul.f32.gmra.mxu2 %v3997_v2  ;;  %4547 = vst [vmem:[#allocation77_spill] sm:$0xff] %v4020_v31  ;;  %v489_v49 = vmax.f32 %v435_v21, 0.0 }
 0x146   : > { %4546 = vst [vmem:[#allocation76_spill] sm:$0xff] %v4001_v47  ;;  %1736 = vmatmul.f32.gmra.mxu3 %v3192_v4  ;;  %v1116_v4 = vrot.slane %v839_v27, 1  ;;  %v841_v21 = vsel %vm631_vm2, %v489_v49, 0.0 }
 0x147   : > { %v1576_v29 = vpop.f32.mrf.mxu2  ;;  %v1802_v23 = vpop.f32.mrf.mxu0 }
 0x148   : > { %v1577_v59 = vadd.f32 %v1576_v29, %v1464_v50  ;;  %v321_v50 = vld [vmem:[%s2830_s22 + $0x188] sm:$0xff]  ;;  %v1227_v29 = vrot.slane %v838_v17, 2 }
 0x149   : > { %v1466_v12 = vpop.f32.mrf.mxu1  ;;  %v1689_v5 = vpop.f32.mrf.mxu3 }
 0x14a   : > { %v1690_v47 = vadd.f32 %v1689_v5, %v1577_v59  ;;  %1849 = vmatmul.f32.gmra.mxu0 %v4013_v3  ;;  %v1467_v41 = vadd.f32 %v1466_v12, %v3599_v7  ;;  %v378_v59 = vmul.f32 %v3575_v35, %v320_v57  ;;  %v4042_v7 = vsel %vm1153_vm3, %v1225_v63, %v1227_v29  ;;  %v322_v12 = vld [vmem:[%s2830_s22 + $0x190] sm:$0x3]  ;;  %s2645_s22 = sshll.u32 %s4638_s18, 8 }
 0x14b   : > { %v380_v49 = vmul.f32 %v3575_v35, %v322_v12  ;;  %v1230_v63 = vrot.slane %v3283_v6, 2  ;;  %s4246_s23 = scalar_lea.vmem %s4401_s4, %s2645_s22 }
 0x14c   : > { %v4025_v16 = vadd.f32 %v1802_v23, %v1690_v47  ;;  %1513 = vmatmul.f32.gmra.mxu1 %v3989_v30  ;;  %1626 = vmatmul.f32.gmra.mxu2 %v4020_v31  ;;  %v4036_v47 = vsel %vm1040_vm1, %v1116_v4, %v1117_v9  ;;  %v379_v23 = vmul.f32 %v3575_v35, %v321_v50  ;;  %v1119_v30 = vrot.slane %v841_v21, 1 }
 0x14d   : > { %v436_v57 = vadd.f32 %v3596_v10, %v378_v59  ;;  %v1229_v50 = vrot.slane %v839_v27, 2  ;;  %v438_v27 = vadd.f32 %v3596_v10, %v380_v49 }
 0x14e   : > { %4548 = vst [vmem:[#allocation78_spill] sm:$0xff] %v4025_v16  ;;  %2626 = vmatmul.msk.f32.gmra.mxu3 %vm572_vm0, %v3243_v43  ;;  %v437_v4 = vadd.f32 %v3596_v10, %v379_v23  ;;  %v1232_v10 = vrot.slane %v841_v21, 2 }
 0x14f   : > { %v1579_v5 = vpop.f32.mrf.mxu2  ;;  %v1805_v2 = vpop.f32.mrf.mxu0  ;;  %v4070_v23 = vsel %vm1153_vm3, %v1229_v50, %v1230_v63 }
 0x150   : > { %v1580_v16 = vadd.f32 %v1579_v5, %v1467_v41  ;;  %v4091_v21 = vsel %vm1153_vm3, %v1230_v63, %v1232_v10 }
 0x151   : > { %v1469_v17 = vpop.f32.mrf.mxu1  ;;  %v1692_v31 = vpop.f32.mrf.mxu3 }
 0x152   : > { %v1693_v43 = vadd.f32 %v1692_v31, %v1580_v16  ;;  %1852 = vmatmul.f32.gmra.mxu0 %v4036_v47  ;;  %v1470_v31 = vadd.f32 %v1469_v17, %v3631_v36  ;;  %v4056_v16 = vmax.f32 %v436_v57, 0.0  ;;  %v492_v57 = vmax.f32 %v438_v27, 0.0 }
 0x154   : > { %v4048_v37 = vadd.f32 %v1805_v2, %v1693_v43  ;;  %1516 = vmatmul.f32.gmra.mxu1 %v4013_v3  ;;  %1629 = vmatmul.f32.gmra.mxu2 %v4042_v7  ;;  %v4059_v43 = vsel %vm1040_vm1, %v1117_v9, %v1119_v30  ;;  %v4061_v2 = vmax.f32 %v437_v4, 0.0  ;;  %v4066_v35 = vsel %vm572_vm0, %v4056_v16, 0.0 }
 0x155   : > { %v1269_v30 = vrot.slane %v4066_v35, 1 }
 0x156   : > { %1742 = vmatmul.f32.gmra.mxu3 %v3283_v6  ;;  %v1270_v9 = vrot.slane %v4061_v2, 1 }
 0x157   : > { %v1582_v29 = vpop.f32.mrf.mxu2  ;;  %v1808_v41 = vpop.f32.mrf.mxu0 }
 0x158   : > { %v1583_v59 = vadd.f32 %v1582_v29, %v1470_v31  ;;  %v4084_v31 = vsel %vm1040_vm1, %v1269_v30, %v1270_v9 }
 0x159   : > { %v1472_v36 = vpop.f32.mrf.mxu1  ;;  %v1695_v5 = vpop.f32.mrf.mxu3 }
 0x15a   : > { %v1696_v17 = vadd.f32 %v1695_v5, %v1583_v59  ;;  %1855 = vmatmul.f32.gmra.mxu0 %v4059_v43  ;;  %v1473_v4 = vadd.f32 %v1472_v36, %v3659_v32 }
 0x15c   : > { %v4075_v12 = vadd.f32 %v1808_v41, %v1696_v17  ;;  %1519 = vmatmul.f32.gmra.mxu1 %v4036_v47  ;;  %1632 = vmatmul.f32.gmra.mxu2 %v4070_v23  ;;  %v4088_v41 = vsel %vm631_vm2, %v492_v57, 0.0 }
 0x15d   : > { %v1272_v27 = vrot.slane %v4088_v41, 1  ;;  %v1279_v25 = vrot.slane %v4088_v41, 2 }
 0x15e   : > { %2627 = vmatmul.msk.f32.gmra.mxu3 %vm572_vm0, %v4056_v16 }
 0x15f   : > { %v1585_v49 = vpop.f32.mrf.mxu2  ;;  %v1811_v50 = vpop.f32.mrf.mxu0  ;;  %v4102_v63 = vsel %vm1040_vm1, %v1270_v9, %v1272_v27 }
 0x160   : > { %v1586_v29 = vadd.f32 %v1585_v49, %v1473_v4 }
 0x161   : > { %v1475_v59 = vpop.f32.mrf.mxu1  ;;  %v1698_v5 = vpop.f32.mrf.mxu3 }
 0x162   : > { %v1699_v32 = vadd.f32 %v1698_v5, %v1586_v29  ;;  %1858 = vmatmul.f32.gmra.mxu0 %v4084_v31  ;;  %v1476_v20 = vadd.f32 %v1475_v59, %v3691_v33 }
 0x164   : > { %v4095_v36 = vadd.f32 %v1811_v50, %v1699_v32  ;;  %1522 = vmatmul.f32.gmra.mxu1 %v4059_v43  ;;  %1635 = vmatmul.f32.gmra.mxu2 %v4091_v21 }
 0x166   : > { %1748 = vmatmul.f32.gmra.mxu3 %v4061_v2 }
 0x167   : > { %v1588_v17 = vpop.f32.mrf.mxu2  ;;  %v1814_v30 = vpop.f32.mrf.mxu0 }
 0x168   : > { %v1589_v57 = vadd.f32 %v1588_v17, %v1476_v20 }
 0x169   : > { %v1478_v10 = vpop.f32.mrf.mxu1  ;;  %v1701_v4 = vpop.f32.mrf.mxu3 }
 0x16a   : > { %v1702_v49 = vadd.f32 %v1701_v4, %v1589_v57  ;;  %1861 = vmatmul.f32.gmra.mxu0 %v4102_v63  ;;  %v1479_v33 = vadd.f32 %v1478_v10, %v3489_v54 }
 0x16c   : > { %v4105_v50 = vadd.f32 %v1814_v30, %v1702_v49  ;;  %1881 = vmatmul.f32.vlgmr.msra.gmra.mxu1 %v3343_v55  ;;  %2628 = vmatmul.msk.f32.vlgmr.msra.gmra.mxu2 %vm572_vm0, %v3163_v48 }
 0x16e   : > { %2107 = vmatmul.f32.vlgmr.msra.gmra.mxu3 %v3360_v8 }
 0x16f   : > { %v1591_v9 = vpop.f32.mrf.mxu2  ;;  %v1817_v29 = vpop.f32.mrf.mxu0 }
 0x170   : > { %v1592_v59 = vadd.f32 %v1591_v9, %v1479_v33 }
 0x171   : > { %v1481_v5 = vpop.f32.mrf.mxu1  ;;  %v1704_v32 = vpop.f32.mrf.mxu3 }
 0x172   : > { %v1705_v27 = vadd.f32 %v1704_v32, %v1592_v59  ;;  %2220 = vmatmul.f32.vlgmr.msra.gmra.mxu0 %v3384_v40  ;;  %v1482_v48 = vadd.f32 %v1481_v5, %v3518_v42  ;;  %v4552_v5 = vld [vmem:[#allocation44_spill] sm:$0xff]  ;;  %v4553_v32 = vld [vmem:[#allocation29_spill] sm:$0xff] }
 0x174   : > { %v4114_v20 = vadd.f32 %v1817_v29, %v1705_v27  ;;  %1884 = vmatmul.f32.gmra.mxu1 %v3365_v15  ;;  %1997 = vmatmul.f32.gmra.mxu2 %v3225_v28  ;;  %v4549_v15 = vld [vmem:[#allocation28_spill] sm:$0xff]  ;;  %v4550_v29 = vld [vmem:[#allocation30_spill] sm:$0xff] }
 0x176   : > { %2110 = vmatmul.f32.gmra.mxu3 %v3377_v34 }
 0x177   : > { %v1594_v55 = vpop.f32.mrf.mxu2  ;;  %v1820_v8 = vpop.f32.mrf.mxu0 }
 0x178   : > { %v1595_v54 = vadd.f32 %v1594_v55, %v1482_v48 }
 0x179   : > { %v1484_v17 = vpop.f32.mrf.mxu1  ;;  %v1707_v30 = vpop.f32.mrf.mxu3 }
 0x17a   : > { %v1708_v57 = vadd.f32 %v1707_v30, %v1595_v54  ;;  %2223 = vmatmul.f32.gmra.mxu0 %v3408_v11  ;;  %v1485_v28 = vadd.f32 %v1484_v17, %v3549_v1  ;;  %v4554_v17 = vld [vmem:[#allocation32_spill] sm:$0xff] }
 0x17c   : > { %v4121_v10 = vadd.f32 %v1820_v8, %v1708_v57  ;;  %1887 = vmatmul.f32.gmra.mxu1 %v3384_v40  ;;  %2629 = vmatmul.msk.f32.gmra.mxu2 %vm572_vm0, %v3265_v56  ;;  %v4551_v40 = vld [vmem:[#allocation25_spill] sm:$0xff]  ;;  %v4555_v57 = vld [vmem:[#allocation2_spill] sm:$0xff] }
 0x17e   : > { %2113 = vmatmul.f32.gmra.mxu3 %v4549_v15  ;;  %v4557_v15 = vld [vmem:[#allocation31_spill] sm:$0xff] }
 0x17f   : > { %v1597_v34 = vpop.f32.mrf.mxu2  ;;  %v1823_v42 = vpop.f32.mrf.mxu0 }
 0x180   : > { %v1598_v4 = vadd.f32 %v1597_v34, %v1485_v28 }
 0x181   : > { %v1487_v49 = vpop.f32.mrf.mxu1  ;;  %v1710_v33 = vpop.f32.mrf.mxu3 }
 0x182   : > { %v1711_v9 = vadd.f32 %v1710_v33, %v1598_v4  ;;  %2226 = vmatmul.f32.gmra.mxu0 %v4550_v29  ;;  %v1488_v56 = vadd.f32 %v1487_v49, %v4552_v5 }
 0x184   : > { %v4130_v59 = vadd.f32 %v1823_v42, %v1711_v9  ;;  %1890 = vmatmul.f32.gmra.mxu1 %v3408_v11  ;;  %2003 = vmatmul.f32.gmra.mxu2 %v4551_v40  ;;  %v4556_v11 = vld [vmem:[#allocation48_spill] sm:$0xff]  ;;  %v4558_v40 = vld [vmem:[#allocation34_spill] sm:$0xff] }
 0x186   : > { %2116 = vmatmul.f32.gmra.mxu3 %v4553_v32 }
 0x187   : > { %v1600_v1 = vpop.f32.mrf.mxu2  ;;  %v1826_v27 = vpop.f32.mrf.mxu0 }
 0x188   : > { %v1601_v48 = vadd.f32 %v1600_v1, %v1488_v56  ;;  %v4560_v56 = vld [vmem:[#allocation52_spill] sm:$0xff]  ;;  %v4561_v1 = vld [vmem:[#allocation33_spill] sm:$0xff] }
 0x189   : > { %v1490_v55 = vpop.f32.mrf.mxu1  ;;  %v1713_v8 = vpop.f32.mrf.mxu3 }
 0x18a   : > { %v1714_v54 = vadd.f32 %v1713_v8, %v1601_v48  ;;  %2229 = vmatmul.f32.gmra.mxu0 %v4554_v17  ;;  %v1491_v28 = vadd.f32 %v1490_v55, %v4556_v11  ;;  %v4562_v11 = vld [vmem:[#allocation37_spill] sm:$0xff] }
 0x18c   : > { %v4137_v30 = vadd.f32 %v1826_v27, %v1714_v54  ;;  %1893 = vmatmul.f32.gmra.mxu1 %v4550_v29  ;;  %2630 = vmatmul.msk.f32.gmra.mxu2 %vm572_vm0, %v4555_v57  ;;  %v4559_v29 = vld [vmem:[#allocation5_spill] sm:$0xff] }
 0x18e   : > { %2119 = vmatmul.f32.gmra.mxu3 %v4557_v15  ;;  %v4563_v15 = vld [vmem:[#allocation8_spill] sm:$0xff] }
 0x18f   : > { %v1603_v34 = vpop.f32.mrf.mxu2  ;;  %v1829_v42 = vpop.f32.mrf.mxu0 }
 0x190   : > { %v1604_v4 = vadd.f32 %v1603_v34, %v1491_v28 }
 0x191   : > { %v1493_v49 = vpop.f32.mrf.mxu1  ;;  %v1716_v33 = vpop.f32.mrf.mxu3 }
 0x192   : > { %v1717_v9 = vadd.f32 %v1716_v33, %v1604_v4  ;;  %2232 = vmatmul.f32.gmra.mxu0 %v4558_v40  ;;  %v1494_v32 = vadd.f32 %v1493_v49, %v4560_v56 }
 0x194   : > { %v4146_v5 = vadd.f32 %v1829_v42, %v1717_v9  ;;  %1896 = vmatmul.f32.gmra.mxu1 %v4554_v17  ;;  %2009 = vmatmul.f32.gmra.mxu2 %v4559_v29  ;;  %v4564_v17 = vld [vmem:[#allocation56_spill] sm:$0xff]  ;;  %v4565_v42 = vld [vmem:[#allocation35_spill] sm:$0xff] }
 0x196   : > { %2122 = vmatmul.f32.gmra.mxu3 %v4561_v1 }
 0x197   : > { %v1606_v27 = vpop.f32.mrf.mxu2  ;;  %v1832_v48 = vpop.f32.mrf.mxu0 }
 0x198   : > { %v1607_v55 = vadd.f32 %v1606_v27, %v1494_v32  ;;  %v4566_v32 = vld [vmem:[#allocation40_spill] sm:$0xff] }
 0x199   : > { %v1496_v8 = vpop.f32.mrf.mxu1  ;;  %v1719_v54 = vpop.f32.mrf.mxu3  ;;  %v4568_v27 = vld [vmem:[#allocation60_spill] sm:$0xff] }
 0x19a   : > { %v1720_v57 = vadd.f32 %v1719_v54, %v1607_v55  ;;  %2235 = vmatmul.f32.gmra.mxu0 %v4562_v11  ;;  %v1497_v34 = vadd.f32 %v1496_v8, %v4564_v17  ;;  %v4569_v55 = vld [vmem:[#allocation38_spill] sm:$0xff] }
 0x19c   : > { %v4153_v28 = vadd.f32 %v1832_v48, %v1720_v57  ;;  %1899 = vmatmul.f32.gmra.mxu1 %v4558_v40  ;;  %2631 = vmatmul.msk.f32.gmra.mxu2 %vm572_vm0, %v4563_v15  ;;  %v4567_v40 = vld [vmem:[#allocation11_spill] sm:$0xff] }
 0x19e   : > { %2125 = vmatmul.f32.gmra.mxu3 %v4565_v42  ;;  %v4570_v42 = vld [vmem:[#allocation43_spill] sm:$0xff] }
 0x19f   : > { %v1609_v4 = vpop.f32.mrf.mxu2  ;;  %v1835_v49 = vpop.f32.mrf.mxu0 }
 0x1a0   : > { %v1610_v33 = vadd.f32 %v1609_v4, %v1497_v34 }
 0x1a1   : > { %v1499_v9 = vpop.f32.mrf.mxu1  ;;  %v1722_v29 = vpop.f32.mrf.mxu3 }
 0x1a2   : > { %v1723_v56 = vadd.f32 %v1722_v29, %v1610_v33  ;;  %2238 = vmatmul.f32.gmra.mxu0 %v4566_v32  ;;  %v1500_v48 = vadd.f32 %v1499_v9, %v4568_v27  ;;  %v4574_v9 = vld [vmem:[#allocation41_spill] sm:$0xff] }
 0x1a4   : > { %v4162_v1 = vadd.f32 %v1835_v49, %v1723_v56  ;;  %1902 = vmatmul.f32.gmra.mxu1 %v4562_v11  ;;  %2015 = vmatmul.f32.gmra.mxu2 %v4567_v40  ;;  %v4572_v49 = vld [vmem:[#allocation14_spill] sm:$0xff]  ;;  %v4573_v11 = vld [vmem:[#allocation36_spill] sm:$0xff] }
 0x1a6   : > { %2128 = vmatmul.f32.gmra.mxu3 %v4569_v55 }
 0x1a7   : > { %v1612_v8 = vpop.f32.mrf.mxu2  ;;  %v1838_v54 = vpop.f32.mrf.mxu0 }
 0x1a8   : > { %v1613_v57 = vadd.f32 %v1612_v8, %v1500_v48  ;;  %v4575_v8 = vld [vmem:[#allocation47_spill] sm:$0xff] }
 0x1a9   : > { %v1502_v15 = vpop.f32.mrf.mxu1  ;;  %v1725_v17 = vpop.f32.mrf.mxu3 }
 0x1aa   : > { %v1726_v34 = vadd.f32 %v1725_v17, %v1613_v57  ;;  %2241 = vmatmul.f32.gmra.mxu0 %v4570_v42  ;;  %v1503_v33 = vadd.f32 %v1502_v15, %v4573_v11  ;;  %v4578_v57 = vld [vmem:[#allocation39_spill] sm:$0xff] }
 0x1ac   : > { %v4169_v4 = vadd.f32 %v1838_v54, %v1726_v34  ;;  %1905 = vmatmul.f32.gmra.mxu1 %v4566_v32  ;;  %2632 = vmatmul.msk.f32.gmra.mxu2 %vm572_vm0, %v4572_v49  ;;  %v4577_v32 = vld [vmem:[#allocation17_spill] sm:$0xff] }
 0x1ad   : > { %v4579_v34 = vld [vmem:[#allocation45_spill] sm:$0xff] }
 0x1ae   : > { %4571 = vst [vmem:[#allocation28_spill] sm:$0xff] %v4169_v4  ;;  %2131 = vmatmul.f32.gmra.mxu3 %v4574_v9  ;;  %v4580_v4 = vld [vmem:[#allocation51_spill] sm:$0xff] }
 0x1af   : > { %v1615_v29 = vpop.f32.mrf.mxu2  ;;  %v1841_v56 = vpop.f32.mrf.mxu0 }
 0x1b0   : > { %v1616_v40 = vadd.f32 %v1615_v29, %v1503_v33 }
 0x1b1   : > { %v1505_v27 = vpop.f32.mrf.mxu1  ;;  %v1728_v48 = vpop.f32.mrf.mxu3 }
 0x1b2   : > { %v1729_v55 = vadd.f32 %v1728_v48, %v1616_v40  ;;  %2244 = vmatmul.f32.gmra.mxu0 %v4575_v8  ;;  %v1506_v17 = vadd.f32 %v1505_v27, %v4578_v57  ;;  %v4584_v48 = vld [vmem:[#allocation49_spill] sm:$0xff] }
 0x1b4   : > { %v4178_v54 = vadd.f32 %v1841_v56, %v1729_v55  ;;  %1908 = vmatmul.f32.gmra.mxu1 %v4570_v42  ;;  %2021 = vmatmul.f32.gmra.mxu2 %v4577_v32  ;;  %v4582_v56 = vld [vmem:[#allocation20_spill] sm:$0xff]  ;;  %v4583_v42 = vld [vmem:[#allocation42_spill] sm:$0xff] }
 0x1b6   : > { %4576 = vst [vmem:[#allocation30_spill] sm:$0xff] %v4178_v54  ;;  %2134 = vmatmul.f32.gmra.mxu3 %v4579_v34  ;;  %v4589_v54 = vld [vmem:[#allocation59_spill] sm:$0xff] }
 0x1b7   : > { %v1618_v15 = vpop.f32.mrf.mxu2  ;;  %v1844_v49 = vpop.f32.mrf.mxu0 }
 0x1b8   : > { %v1619_v11 = vadd.f32 %v1618_v15, %v1506_v17 }
 0x1b9   : > { %v1508_v9 = vpop.f32.mrf.mxu1  ;;  %v1731_v33 = vpop.f32.mrf.mxu3 }
 0x1ba   : > { %v1732_v29 = vadd.f32 %v1731_v33, %v1619_v11  ;;  %2247 = vmatmul.f32.gmra.mxu0 %v4580_v4  ;;  %v1509_v27 = vadd.f32 %v1508_v9, %v4583_v42  ;;  %v4585_v11 = vld [vmem:[#allocation55_spill] sm:$0xff]  ;;  %v4587_v33 = vld [vmem:[#allocation46_spill] sm:$0xff] }
 0x1bc   : > { %v4185_v40 = vadd.f32 %v1844_v49, %v1732_v29  ;;  %1911 = vmatmul.f32.gmra.mxu1 %v4575_v8  ;;  %2633 = vmatmul.msk.f32.gmra.mxu2 %vm572_vm0, %v4582_v56  ;;  %v4586_v8 = vld [vmem:[#allocation23_spill] sm:$0xff]  ;;  %v4588_v56 = vld [vmem:[#allocation53_spill] sm:$0xff] }
 0x1be   : > { %4581 = vst [vmem:[#allocation25_spill] sm:$0xff] %v4185_v40  ;;  %2137 = vmatmul.f32.gmra.mxu3 %v4584_v48 }
 0x1bf   : > { %v1621_v55 = vpop.f32.mrf.mxu2  ;;  %v1847_v32 = vpop.f32.mrf.mxu0 }
 0x1c0   : > { %v1622_v57 = vadd.f32 %v1621_v55, %v1509_v27 }
 0x1c1   : > { %v1511_v17 = vpop.f32.mrf.mxu1  ;;  %v1734_v34 = vpop.f32.mrf.mxu3 }
 0x1c2   : > { %v1735_v15 = vadd.f32 %v1734_v34, %v1622_v57  ;;  %2250 = vmatmul.f32.gmra.mxu0 %v4585_v11  ;;  %v1512_v29 = vadd.f32 %v1511_v17, %v4587_v33  ;;  %v4592_v34 = vld [vmem:[#allocation57_spill] sm:$0xff] }
 0x1c4   : > { %v4194_v49 = vadd.f32 %v1847_v32, %v1735_v15  ;;  %1914 = vmatmul.f32.gmra.mxu1 %v4580_v4  ;;  %2027 = vmatmul.f32.gmra.mxu2 %v4586_v8  ;;  %v4590_v32 = vld [vmem:[#allocation3_spill] sm:$0xff]  ;;  %v4591_v4 = vld [vmem:[#allocation50_spill] sm:$0xff] }
 0x1c6   : > { %2140 = vmatmul.f32.gmra.mxu3 %v4588_v56 }
 0x1c7   : > { %v1624_v9 = vpop.f32.mrf.mxu2  ;;  %v1850_v42 = vpop.f32.mrf.mxu0 }
 0x1c8   : > { %v1625_v48 = vadd.f32 %v1624_v9, %v1512_v29 }
 0x1c9   : > { %v1514_v40 = vpop.f32.mrf.mxu1  ;;  %v1737_v27 = vpop.f32.mrf.mxu3 }
 0x1ca   : > { %v1738_v55 = vadd.f32 %v1737_v27, %v1625_v48  ;;  %2253 = vmatmul.f32.gmra.mxu0 %v4589_v54  ;;  %v1515_v17 = vadd.f32 %v1514_v40, %v4591_v4  ;;  %v4593_v48 = vld [vmem:[#allocation62_spill] sm:$0xff] }
 0x1cb   : > { %v4595_v27 = vld [vmem:[#allocation54_spill] sm:$0xff] }
 0x1cc   : > { %v4201_v57 = vadd.f32 %v1850_v42, %v1738_v55  ;;  %1917 = vmatmul.f32.gmra.mxu1 %v4585_v11  ;;  %2634 = vmatmul.msk.f32.gmra.mxu2 %vm572_vm0, %v4590_v32  ;;  %v4594_v11 = vld [vmem:[#allocation6_spill] sm:$0xff] }
 0x1ce   : > { %2143 = vmatmul.f32.gmra.mxu3 %v4592_v34 }
 0x1cf   : > { %v1627_v15 = vpop.f32.mrf.mxu2  ;;  %v1853_v8 = vpop.f32.mrf.mxu0 }
 0x1d0   : > { %v1628_v33 = vadd.f32 %v1627_v15, %v1515_v17 }
 0x1d1   : > { %v1517_v29 = vpop.f32.mrf.mxu1  ;;  %v1740_v56 = vpop.f32.mrf.mxu3 }
 0x1d2   : > { %v1741_v9 = vadd.f32 %v1740_v56, %v1628_v33  ;;  %2256 = vmatmul.f32.gmra.mxu0 %v4593_v48  ;;  %v1518_v55 = vadd.f32 %v1517_v29, %v4595_v27 }
 0x1d4   : > { %v4210_v42 = vadd.f32 %v1853_v8, %v1741_v9  ;;  %1920 = vmatmul.f32.gmra.mxu1 %v4589_v54  ;;  %2033 = vmatmul.f32.gmra.mxu2 %v4594_v11  ;;  %v4596_v8 = vld [vmem:[#allocation9_spill] sm:$0xff]  ;;  %v4597_v54 = vld [vmem:[#allocation58_spill] sm:$0xff] }
 0x1d6   : > { %2146 = vmatmul.f32.gmra.mxu3 %v3713_v61 }
 0x1d7   : > { %v1630_v40 = vpop.f32.mrf.mxu2  ;;  %v1856_v32 = vpop.f32.mrf.mxu0 }
 0x1d8   : > { %v1631_v4 = vadd.f32 %v1630_v40, %v1518_v55 }
 0x1d9   : > { %v1520_v34 = vpop.f32.mrf.mxu1  ;;  %v1743_v17 = vpop.f32.mrf.mxu3 }
 0x1da   : > { %v1744_v15 = vadd.f32 %v1743_v17, %v1631_v4  ;;  %2259 = vmatmul.f32.gmra.mxu0 %v3747_v18  ;;  %v1521_v29 = vadd.f32 %v1520_v34, %v4597_v54 }
 0x1dc   : > { %v4217_v33 = vadd.f32 %v1856_v32, %v1744_v15  ;;  %1923 = vmatmul.f32.gmra.mxu1 %v4593_v48  ;;  %2635 = vmatmul.msk.f32.gmra.mxu2 %vm572_vm0, %v4596_v8  ;;  %v4598_v48 = vld [vmem:[#allocation12_spill] sm:$0xff]  ;;  %v4599_v32 = vld [vmem:[#allocation61_spill] sm:$0xff] }
 0x1de   : > { %2149 = vmatmul.f32.gmra.mxu3 %v3739_v52 }
 0x1df   : > { %v1633_v61 = vpop.f32.mrf.mxu2  ;;  %v1859_v56 = vpop.f32.mrf.mxu0 }
 0x1e0   : > { %v1634_v9 = vadd.f32 %v1633_v61, %v1521_v29  ;;  %v4601_v61 = vld [vmem:[#allocation63_spill] sm:$0xff] }
 0x1e1   : > { %v1523_v11 = vpop.f32.mrf.mxu1  ;;  %v1746_v27 = vpop.f32.mrf.mxu3 }
 0x1e2   : > { %v1747_v55 = vadd.f32 %v1746_v27, %v1634_v9  ;;  %2262 = vmatmul.f32.gmra.mxu0 %v3770_v44  ;;  %v1524_v4 = vadd.f32 %v1523_v11, %v4599_v32  ;;  %v4602_v32 = vld [vmem:[#allocation18_spill] sm:$0xff] }
 0x1e4   : > { %v4226_v40 = vadd.f32 %v1859_v56, %v1747_v55  ;;  %1926 = vmatmul.f32.gmra.mxu1 %v3747_v18  ;;  %2039 = vmatmul.f32.gmra.mxu2 %v4598_v48  ;;  %v4600_v18 = vld [vmem:[#allocation15_spill] sm:$0xff] }
 0x1e6   : > { %2152 = vmatmul.f32.gmra.mxu3 %v3763_v24 }
 0x1e7   : > { %v1636_v52 = vpop.f32.mrf.mxu2  ;;  %v1862_v34 = vpop.f32.mrf.mxu0 }
 0x1e8   : > { %v1637_v17 = vadd.f32 %v1636_v52, %v1524_v4 }
 0x1e9   : > { %v1749_v15 = vpop.f32.mrf.mxu3  ;;  %v1882_v8 = vpop.f32.mrf.mxu1 }
 0x1ea   : > { %v1750_v54 = vadd.f32 %v1749_v15, %v1637_v17  ;;  %2265 = vmatmul.f32.gmra.mxu0 %v3797_v19  ;;  %v1883_v56 = vadd.f32 %v1882_v8, %v4601_v61 }
 0x1ec   : > { %v4233_v29 = vadd.f32 %v1862_v34, %v1750_v54  ;;  %1929 = vmatmul.f32.gmra.mxu1 %v3770_v44  ;;  %2636 = vmatmul.msk.f32.gmra.mxu2 %vm572_vm0, %v4600_v18 }
 0x1ee   : > { %2155 = vmatmul.f32.gmra.mxu3 %v3789_v53  ;;  %v4603_v53 = vld [vmem:[#allocation64_spill] sm:$0xff] }
 0x1ef   : > { %v1995_v24 = vpop.f32.mrf.mxu2  ;;  %v2221_v9 = vpop.f32.mrf.mxu0 }
 0x1f0   : > { %v1996_v11 = vadd.f32 %v1995_v24, %v1883_v56  ;;  %v4605_v56 = vld [vmem:[#allocation65_spill] sm:$0xff] }
 0x1f1   : > { %v1885_v27 = vpop.f32.mrf.mxu1  ;;  %v2108_v55 = vpop.f32.mrf.mxu3 }
 0x1f2   : > { %v2109_v48 = vadd.f32 %v2108_v55, %v1996_v11  ;;  %2268 = vmatmul.f32.gmra.mxu0 %v3820_v60  ;;  %v1886_v4 = vadd.f32 %v1885_v27, %v4603_v53 }
 0x1f4   : > { %v2222_v44 = vadd.f32 %v2221_v9, %v2109_v48  ;;  %1932 = vmatmul.f32.gmra.mxu1 %v3797_v19  ;;  %2045 = vmatmul.f32.gmra.mxu2 %v4602_v32  ;;  %v4604_v19 = vld [vmem:[#allocation21_spill] sm:$0xff] }
 0x1f6   : > { %2426 = vst [vmem:[%s4246_s23] sm:$0xff] %v2222_v44  ;;  %2158 = vmatmul.f32.gmra.mxu3 %v3813_v51  ;;  %v2354_v61 = vmul.f32 %v2222_v44, %v2222_v44 }
 0x1f7   : > { %v1998_v52 = vpop.f32.mrf.mxu2  ;;  %v2224_v34 = vpop.f32.mrf.mxu0 }
 0x1f8   : > { %v1999_v17 = vadd.f32 %v1998_v52, %v1886_v4  ;;  %v4606_v52 = vld [vmem:[#allocation24_spill] sm:$0xff] }
 0x1f9   : > { %v1888_v15 = vpop.f32.mrf.mxu1  ;;  %v2111_v8 = vpop.f32.mrf.mxu3 }
 0x1fa   : > { %v2112_v54 = vadd.f32 %v2111_v8, %v1999_v17  ;;  %2271 = vmatmul.f32.gmra.mxu0 %v3847_v45  ;;  %v1889_v24 = vadd.f32 %v1888_v15, %v4605_v56 }
 0x1fc   : > { %v2225_v18 = vadd.f32 %v2224_v34, %v2112_v54  ;;  %1935 = vmatmul.f32.gmra.mxu1 %v3820_v60  ;;  %2637 = vmatmul.msk.f32.gmra.mxu2 %vm572_vm0, %v4604_v19 }
 0x1fe   : > { %v2317_v9 = vadd.f32 %v2225_v18, %v2222_v44  ;;  %v2355_v51 = vmul.f32 %v2225_v18, %v2225_v18  ;;  %2427 = vst [vmem:[%s4246_s23 + $0x8] sm:$0xff] %v2225_v18  ;;  %2161 = vmatmul.f32.gmra.mxu3 %v3839_v26  ;;  %v4607_v44 = vld [vmem:[#allocation66_spill] sm:$0xff] }
 0x1ff   : > { %v2001_v11 = vpop.f32.mrf.mxu2  ;;  %v2227_v27 = vpop.f32.mrf.mxu0 }
 0x200   : > { %v2386_v55 = vadd.f32 %v2355_v51, %v2354_v61  ;;  %v2002_v48 = vadd.f32 %v2001_v11, %v1889_v24  ;;  %v4608_v24 = vld [vmem:[#allocation4_spill] sm:$0xff] }
 0x201   : > { %v1891_v32 = vpop.f32.mrf.mxu1  ;;  %v2114_v53 = vpop.f32.mrf.mxu3 }
 0x202   : > { %v2115_v60 = vadd.f32 %v2114_v53, %v2002_v48  ;;  %2274 = vmatmul.f32.gmra.mxu0 %v3870_v46  ;;  %v1892_v34 = vadd.f32 %v1891_v32, %v4607_v44  ;;  %v4611_v44 = vld [vmem:[#allocation68_spill] sm:$0xff] }
 0x204   : > { %v2228_v4 = vadd.f32 %v2227_v27, %v2115_v60  ;;  %1938 = vmatmul.f32.gmra.mxu1 %v3847_v45  ;;  %2051 = vmatmul.f32.gmra.mxu2 %v4606_v52  ;;  %v4610_v52 = vld [vmem:[#allocation7_spill] sm:$0xff] }
 0x206   : > { %v2318_v17 = vadd.f32 %v2317_v9, %v2228_v4  ;;  %v2356_v15 = vmul.f32 %v2228_v4, %v2228_v4  ;;  %2428 = vst [vmem:[%s4246_s23 + $0x10] sm:$0xff] %v2228_v4  ;;  %2164 = vmatmul.f32.gmra.mxu3 %v3863_v22  ;;  %v4609_v9 = vld [vmem:[#allocation67_spill] sm:$0xff] }
 0x207   : > { %v2004_v26 = vpop.f32.mrf.mxu2  ;;  %v2230_v8 = vpop.f32.mrf.mxu0 }
 0x208   : > { %v2387_v54 = vadd.f32 %v2386_v55, %v2356_v15  ;;  %v2005_v18 = vadd.f32 %v2004_v26, %v1892_v34 }
 0x209   : > { %v1894_v19 = vpop.f32.mrf.mxu1  ;;  %v2117_v61 = vpop.f32.mrf.mxu3 }
 0x20a   : > { %v2118_v56 = vadd.f32 %v2117_v61, %v2005_v18  ;;  %2277 = vmatmul.f32.gmra.mxu0 %v3897_v0  ;;  %v1895_v51 = vadd.f32 %v1894_v19, %v4609_v9 }
 0x20c   : > { %v2231_v45 = vadd.f32 %v2230_v8, %v2118_v56  ;;  %1941 = vmatmul.f32.gmra.mxu1 %v3870_v46  ;;  %2638 = vmatmul.msk.f32.gmra.mxu2 %vm572_vm0, %v4608_v24  ;;  %v4612_v56 = vld [vmem:[#allocation10_spill] sm:$0xff] }
 0x20e   : > { %v2319_v11 = vadd.f32 %v2318_v17, %v2231_v45  ;;  %v2357_v22 = vmul.f32 %v2231_v45, %v2231_v45  ;;  %2429 = vst [vmem:[%s4246_s23 + $0x18] sm:$0xff] %v2231_v45  ;;  %2167 = vmatmul.f32.gmra.mxu3 %v3889_v58  ;;  %v4613_v45 = vld [vmem:[#allocation69_spill] sm:$0xff] }
 0x20f   : > { %v2007_v27 = vpop.f32.mrf.mxu2  ;;  %v2233_v55 = vpop.f32.mrf.mxu0 }
 0x210   : > { %v2388_v48 = vadd.f32 %v2387_v54, %v2357_v22  ;;  %v2008_v32 = vadd.f32 %v2007_v27, %v1895_v51 }
 0x211   : > { %v1897_v53 = vpop.f32.mrf.mxu1  ;;  %v2120_v60 = vpop.f32.mrf.mxu3 }
 0x212   : > { %v2121_v4 = vadd.f32 %v2120_v60, %v2008_v32  ;;  %2280 = vmatmul.f32.gmra.mxu0 %v3920_v13  ;;  %v1898_v34 = vadd.f32 %v1897_v53, %v4611_v44  ;;  %v4614_v53 = vld [vmem:[#allocation13_spill] sm:$0xff]  ;;  %v4615_v60 = vld [vmem:[#allocation70_spill] sm:$0xff] }
 0x214   : > { %v2234_v46 = vadd.f32 %v2233_v55, %v2121_v4  ;;  %1944 = vmatmul.f32.gmra.mxu1 %v3897_v0  ;;  %2057 = vmatmul.f32.gmra.mxu2 %v4610_v52 }
 0x216   : > { %v2320_v17 = vadd.f32 %v2319_v11, %v2234_v46  ;;  %v2358_v15 = vmul.f32 %v2234_v46, %v2234_v46  ;;  %2430 = vst [vmem:[%s4246_s23 + $0x20] sm:$0xff] %v2234_v46  ;;  %2170 = vmatmul.f32.gmra.mxu3 %v3913_v38 }
 0x217   : > { %v2010_v58 = vpop.f32.mrf.mxu2  ;;  %v2236_v26 = vpop.f32.mrf.mxu0 }
 0x218   : > { %v2389_v8 = vadd.f32 %v2388_v48, %v2358_v15  ;;  %v2011_v54 = vadd.f32 %v2010_v58, %v1898_v34 }
 0x219   : > { %v1900_v18 = vpop.f32.mrf.mxu1  ;;  %v2123_v19 = vpop.f32.mrf.mxu3 }
 0x21a   : > { %v2124_v61 = vadd.f32 %v2123_v19, %v2011_v54  ;;  %2283 = vmatmul.f32.gmra.mxu0 %v3947_v39  ;;  %v1901_v24 = vadd.f32 %v1900_v18, %v4613_v45  ;;  %v4617_v54 = vld [vmem:[#allocation75_spill] sm:$0xff]  ;;  %v4618_v18 = vld [vmem:[#allocation16_spill] sm:$0xff]  ;;  %v4620_v45 = vld [vmem:[#allocation74_spill] sm:$0xff] }
 0x21b   : > { %v4619_v19 = vld [vmem:[#allocation71_spill] sm:$0xff] }
 0x21c   : > { %v2237_v0 = vadd.f32 %v2236_v26, %v2124_v61  ;;  %1947 = vmatmul.f32.gmra.mxu1 %v3920_v13  ;;  %2639 = vmatmul.msk.f32.gmra.mxu2 %vm572_vm0, %v4612_v56 }
 0x21e   : > { %v2321_v9 = vadd.f32 %v2320_v17, %v2237_v0  ;;  %v2359_v38 = vmul.f32 %v2237_v0, %v2237_v0  ;;  %2431 = vst [vmem:[%s4246_s23 + $0x28] sm:$0xff] %v2237_v0  ;;  %2173 = vmatmul.f32.gmra.mxu3 %v3939_v62  ;;  %v4616_v62 = vld [vmem:[#allocation72_spill] sm:$0xff] }
 0x21f   : > { %v2013_v51 = vpop.f32.mrf.mxu2  ;;  %v2239_v11 = vpop.f32.mrf.mxu0 }
 0x220   : > { %v2390_v22 = vadd.f32 %v2389_v8, %v2359_v38  ;;  %v2014_v27 = vadd.f32 %v2013_v51, %v1901_v24 }
 0x221   : > { %v1903_v55 = vpop.f32.mrf.mxu1  ;;  %v2126_v48 = vpop.f32.mrf.mxu3 }
 0x222   : > { %v2127_v32 = vadd.f32 %v2126_v48, %v2014_v27  ;;  %2286 = vmatmul.f32.gmra.mxu0 %v3970_v14  ;;  %v1904_v4 = vadd.f32 %v1903_v55, %v4615_v60  ;;  %v4622_v48 = vld [vmem:[#allocation19_spill] sm:$0xff] }
 0x224   : > { %v2240_v13 = vadd.f32 %v2239_v11, %v2127_v32  ;;  %1950 = vmatmul.f32.gmra.mxu1 %v3947_v39  ;;  %2063 = vmatmul.f32.gmra.mxu2 %v4614_v53  ;;  %v4623_v32 = vld [vmem:[#allocation73_spill] sm:$0xff] }
 0x226   : > { %v2322_v46 = vadd.f32 %v2321_v9, %v2240_v13  ;;  %v2360_v52 = vmul.f32 %v2240_v13, %v2240_v13  ;;  %2432 = vst [vmem:[%s4246_s23 + $0x30] sm:$0xff] %v2240_v13  ;;  %2176 = vmatmul.f32.gmra.mxu3 %v4616_v62 }
 0x227   : > { %v2016_v44 = vpop.f32.mrf.mxu2  ;;  %v2242_v34 = vpop.f32.mrf.mxu0 }
 0x228   : > { %v2391_v17 = vadd.f32 %v2390_v22, %v2360_v52  ;;  %v2017_v15 = vadd.f32 %v2016_v44, %v1904_v4 }
 0x229   : > { %v1906_v58 = vpop.f32.mrf.mxu1  ;;  %v2129_v26 = vpop.f32.mrf.mxu3 }
 0x22a   : > { %v2130_v8 = vadd.f32 %v2129_v26, %v2017_v15  ;;  %2289 = vmatmul.f32.gmra.mxu0 %v4617_v54  ;;  %v1907_v61 = vadd.f32 %v1906_v58, %v4619_v19  ;;  %v4624_v58 = vld [vmem:[#allocation22_spill] sm:$0xff]  ;;  %v4625_v26 = vld [vmem:[#allocation76_spill] sm:$0xff] }
 0x22c   : > { %v2243_v39 = vadd.f32 %v2242_v34, %v2130_v8  ;;  %1953 = vmatmul.f32.gmra.mxu1 %v3970_v14  ;;  %2640 = vmatmul.msk.f32.gmra.mxu2 %vm572_vm0, %v4618_v18  ;;  %v4621_v14 = vld [vmem:[#allocation77_spill] sm:$0xff] }
 0x22e   : > { %v2323_v0 = vadd.f32 %v2322_v46, %v2243_v39  ;;  %v2361_v56 = vmul.f32 %v2243_v39, %v2243_v39  ;;  %2433 = vst [vmem:[%s4246_s23 + $0x38] sm:$0xff] %v2243_v39  ;;  %2179 = vmatmul.f32.gmra.mxu3 %v4620_v45 }
 0x22f   : > { %v2019_v24 = vpop.f32.mrf.mxu2  ;;  %v2245_v9 = vpop.f32.mrf.mxu0 }
 0x230   : > { %v2392_v38 = vadd.f32 %v2391_v17, %v2361_v56  ;;  %v2020_v51 = vadd.f32 %v2019_v24, %v1907_v61 }
 0x231   : > { %v1909_v11 = vpop.f32.mrf.mxu1  ;;  %v2132_v22 = vpop.f32.mrf.mxu3 }
 0x232   : > { %v2133_v27 = vadd.f32 %v2132_v22, %v2020_v51  ;;  %2292 = vmatmul.f32.gmra.mxu0 %v4621_v14  ;;  %v1910_v13 = vadd.f32 %v1909_v11, %v4623_v32 }
 0x234   : > { %v2246_v55 = vadd.f32 %v2245_v9, %v2133_v27  ;;  %1956 = vmatmul.f32.gmra.mxu1 %v4617_v54  ;;  %2069 = vmatmul.f32.gmra.mxu2 %v4622_v48  ;;  %v4626_v9 = vld [vmem:[#allocation78_spill] sm:$0xff] }
 0x236   : > { %v2324_v53 = vadd.f32 %v2323_v0, %v2246_v55  ;;  %v2362_v60 = vmul.f32 %v2246_v55, %v2246_v55  ;;  %2434 = vst [vmem:[%s4246_s23 + $0x40] sm:$0xff] %v2246_v55  ;;  %2182 = vmatmul.f32.gmra.mxu3 %v4013_v3 }
 0x237   : > { %v2022_v4 = vpop.f32.mrf.mxu2  ;;  %v2248_v46 = vpop.f32.mrf.mxu0 }
 0x238   : > { %v2393_v52 = vadd.f32 %v2392_v38, %v2362_v60  ;;  %v2023_v62 = vadd.f32 %v2022_v4, %v1910_v13 }
 0x239   : > { %v1912_v44 = vpop.f32.mrf.mxu1  ;;  %v2135_v34 = vpop.f32.mrf.mxu3 }
 0x23a   : > { %v2136_v17 = vadd.f32 %v2135_v34, %v2023_v62  ;;  %2295 = vmatmul.f32.gmra.mxu0 %v4042_v7  ;;  %v1913_v8 = vadd.f32 %v1912_v44, %v4625_v26 }
 0x23c   : > { %v2249_v15 = vadd.f32 %v2248_v46, %v2136_v17  ;;  %1959 = vmatmul.f32.gmra.mxu1 %v4621_v14  ;;  %2641 = vmatmul.msk.f32.gmra.mxu2 %vm572_vm0, %v4624_v58 }
 0x23e   : > { %v2325_v54 = vadd.f32 %v2324_v53, %v2249_v15  ;;  %v2363_v3 = vmul.f32 %v2249_v15, %v2249_v15  ;;  %2435 = vst [vmem:[%s4246_s23 + $0x48] sm:$0xff] %v2249_v15  ;;  %2185 = vmatmul.f32.gmra.mxu3 %v4036_v47 }
 0x23f   : > { %v2025_v39 = vpop.f32.mrf.mxu2  ;;  %v2251_v18 = vpop.f32.mrf.mxu0 }
 0x240   : > { %v2394_v19 = vadd.f32 %v2393_v52, %v2363_v3  ;;  %v2026_v61 = vadd.f32 %v2025_v39, %v1913_v8 }
 0x241   : > { %v1915_v0 = vpop.f32.mrf.mxu1  ;;  %v2138_v56 = vpop.f32.mrf.mxu3 }
 0x242   : > { %v2139_v45 = vadd.f32 %v2138_v56, %v2026_v61  ;;  %2298 = vmatmul.f32.gmra.mxu0 %v4070_v23  ;;  %v1916_v38 = vadd.f32 %v1915_v0, %v4626_v9 }
 0x244   : > { %v2252_v24 = vadd.f32 %v2251_v18, %v2139_v45  ;;  %1962 = vmatmul.f32.gmra.mxu1 %v4042_v7  ;;  %2075 = vmatmul.f32.gmra.mxu2 %v3283_v6  ;;  %v1276_v7 = vrot.slane %v4066_v35, 2  ;;  %v1277_v6 = vrot.slane %v4061_v2, 2 }
 0x246   : > { %v2326_v51 = vadd.f32 %v2325_v54, %v2252_v24  ;;  %v2364_v11 = vmul.f32 %v2252_v24, %v2252_v24  ;;  %2436 = vst [vmem:[%s4246_s23 + $0x50] sm:$0xff] %v2252_v24  ;;  %2188 = vmatmul.f32.gmra.mxu3 %v4059_v43  ;;  %v1278_v35 = vsel %vm1153_vm3, %v1276_v7, %v1277_v6 }
 0x247   : > { %v2028_v47 = vpop.f32.mrf.mxu2  ;;  %v2254_v22 = vpop.f32.mrf.mxu0  ;;  %v1280_v26 = vsel %vm1153_vm3, %v1277_v6, %v1279_v25 }
 0x248   : > { %v2395_v27 = vadd.f32 %v2394_v19, %v2364_v11  ;;  %v2029_v14 = vadd.f32 %v2028_v47, %v1916_v38 }
 0x249   : > { %v1918_v55 = vpop.f32.mrf.mxu1  ;;  %v2141_v48 = vpop.f32.mrf.mxu3 }
 0x24a   : > { %v2142_v32 = vadd.f32 %v2141_v48, %v2029_v14  ;;  %2301 = vmatmul.f32.gmra.mxu0 %v4091_v21  ;;  %v1919_v43 = vadd.f32 %v1918_v55, %v4048_v37 }
 0x24c   : > { %v2255_v13 = vadd.f32 %v2254_v22, %v2142_v32  ;;  %1965 = vmatmul.f32.gmra.mxu1 %v4070_v23  ;;  %2642 = vmatmul.msk.f32.gmra.mxu2 %vm572_vm0, %v4056_v16 }
 0x24e   : > { %v2327_v53 = vadd.f32 %v2326_v51, %v2255_v13  ;;  %v2365_v60 = vmul.f32 %v2255_v13, %v2255_v13  ;;  %2437 = vst [vmem:[%s4246_s23 + $0x58] sm:$0xff] %v2255_v13  ;;  %2191 = vmatmul.f32.gmra.mxu3 %v4084_v31  ;;  %v4629_v51 = vld [vmem:[#allocation27_spill] sm:$0xff] }
 0x24f   : > { %v2031_v4 = vpop.f32.mrf.mxu2  ;;  %v2257_v46 = vpop.f32.mrf.mxu0 }
 0x250   : > { %v2396_v52 = vadd.f32 %v2395_v27, %v2365_v60  ;;  %v2032_v62 = vadd.f32 %v2031_v4, %v1919_v43 }
 0x251   : > { %v1921_v44 = vpop.f32.mrf.mxu1  ;;  %v2144_v23 = vpop.f32.mrf.mxu3 }
 0x252   : > { %v2145_v34 = vadd.f32 %v2144_v23, %v2032_v62  ;;  %2304 = vmatmul.f32.gmra.mxu0 %v1278_v35  ;;  %v1922_v37 = vadd.f32 %v1921_v44, %v4075_v12 }
 0x254   : > { %v2258_v16 = vadd.f32 %v2257_v46, %v2145_v34  ;;  %1968 = vmatmul.f32.gmra.mxu1 %v4091_v21  ;;  %2081 = vmatmul.f32.gmra.mxu2 %v4061_v2  ;;  %v4627_v2 = vmov 0.0  }
 0x256   : > { %v2328_v31 = vadd.f32 %v2327_v53, %v2258_v16  ;;  %v2366_v17 = vmul.f32 %v2258_v16, %v2258_v16  ;;  %2438 = vst [vmem:[%s4246_s23 + $0x60] sm:$0xff] %v2258_v16  ;;  %2194 = vmatmul.f32.gmra.mxu3 %v4102_v63  ;;  %v4628_v63 = vld [vmem:[#allocation26_spill] sm:$0xff] }
 0x257   : > { %v2034_v15 = vpop.f32.mrf.mxu2  ;;  %v2260_v58 = vpop.f32.mrf.mxu0 }
 0x258   : > { %v2397_v8 = vadd.f32 %v2396_v52, %v2366_v17  ;;  %v2035_v54 = vadd.f32 %v2034_v15, %v1922_v37 }
 0x259   : > { %v1924_v41 = vpop.f32.mrf.mxu1  ;;  %v2147_v3 = vpop.f32.mrf.mxu3 }
 0x25a   : > { %v2148_v39 = vadd.f32 %v2147_v3, %v2035_v54  ;;  %2307 = vmatmul.f32.gmra.mxu0 %v1280_v26  ;;  %v1925_v12 = vadd.f32 %v1924_v41, %v4095_v36 }
 0x25c   : > { %v2261_v21 = vadd.f32 %v2260_v58, %v2148_v39  ;;  %1971 = vmatmul.f32.gmra.mxu1 %v1278_v35  ;;  %2084 = vmatmul.f32.gmra.mxu2 %v4627_v2 }
 0x25e   : > { %v2329_v18 = vadd.f32 %v2328_v31, %v2261_v21  ;;  %v2367_v19 = vmul.f32 %v2261_v21, %v2261_v21  ;;  %2439 = vst [vmem:[%s4246_s23 + $0x68] sm:$0xff] %v2261_v21  ;;  %2197 = vmatmul.f32.gmra.mxu3 %v4628_v63 }
 0x25f   : > { %v2037_v61 = vpop.f32.mrf.mxu2  ;;  %v2263_v0 = vpop.f32.mrf.mxu0 }
 0x260   : > { %v2398_v56 = vadd.f32 %v2397_v8, %v2367_v19  ;;  %v2038_v45 = vadd.f32 %v2037_v61, %v1925_v12 }
 0x261   : > { %v1927_v24 = vpop.f32.mrf.mxu1  ;;  %v2150_v9 = vpop.f32.mrf.mxu3 }
 0x262   : > { %v2151_v38 = vadd.f32 %v2150_v9, %v2038_v45  ;;  %2310 = vmatmul.f32.gmra.mxu0 %v4629_v51  ;;  %v1928_v36 = vadd.f32 %v1927_v24, %v4105_v50 }
 0x264   : > { %v2264_v11 = vadd.f32 %v2263_v0, %v2151_v38  ;;  %1974 = vmatmul.f32.gmra.mxu1 %v1280_v26  ;;  %2087 = vmatmul.f32.gmra.mxu2 %v4627_v2 }
 0x266   : > { %v2330_v47 = vadd.f32 %v2329_v18, %v2264_v11  ;;  %v2368_v22 = vmul.f32 %v2264_v11, %v2264_v11  ;;  %2440 = vst [vmem:[%s4246_s23 + $0x70] sm:$0xff] %v2264_v11  ;;  %2200 = vmatmul.f32.gmra.mxu3 %v4628_v63 }
 0x267   : > { %v2040_v27 = vpop.f32.mrf.mxu2  ;;  %v2266_v14 = vpop.f32.mrf.mxu0 }
 0x268   : > { %v2399_v55 = vadd.f32 %v2398_v56, %v2368_v22  ;;  %v2041_v48 = vadd.f32 %v2040_v27, %v1928_v36 }
 0x269   : > { %v1930_v32 = vpop.f32.mrf.mxu1  ;;  %v2153_v7 = vpop.f32.mrf.mxu3 }
 0x26a   : > { %v2154_v6 = vadd.f32 %v2153_v7, %v2041_v48  ;;  %2313 = vmatmul.f32.gmra.mxu0 %v4629_v51  ;;  %v1931_v43 = vadd.f32 %v1930_v32, %v4114_v20 }
 0x26c   : > { %v2267_v13 = vadd.f32 %v2266_v14, %v2154_v6 }
 0x26e   : > { %v2331_v50 = vadd.f32 %v2330_v47, %v2267_v13  ;;  %v2369_v53 = vmul.f32 %v2267_v13, %v2267_v13  ;;  %2441 = vst [vmem:[%s4246_s23 + $0x78] sm:$0xff] %v2267_v13 }
 0x26f   : > { %v2043_v60 = vpop.f32.mrf.mxu2  ;;  %v2269_v4 = vpop.f32.mrf.mxu0 }
 0x270   : > { %v2400_v46 = vadd.f32 %v2399_v55, %v2369_v53  ;;  %v2044_v35 = vadd.f32 %v2043_v60, %v1931_v43 }
 0x271   : > { %v1933_v52 = vpop.f32.mrf.mxu1  ;;  %v2156_v62 = vpop.f32.mrf.mxu3 }
 0x272   : > { %v2157_v44 = vadd.f32 %v2156_v62, %v2044_v35  ;;  %v1934_v34 = vadd.f32 %v1933_v52, %v4121_v10 }
 0x274   : > { %v2270_v23 = vadd.f32 %v2269_v4, %v2157_v44 }
 0x276   : > { %v2332_v25 = vadd.f32 %v2331_v50, %v2270_v23  ;;  %v2370_v16 = vmul.f32 %v2270_v23, %v2270_v23  ;;  %2442 = vst [vmem:[%s4246_s23 + $0x80] sm:$0xff] %v2270_v23 }
 0x277   : > { %v2046_v37 = vpop.f32.mrf.mxu2  ;;  %v2272_v31 = vpop.f32.mrf.mxu0 }
 0x278   : > { %v2401_v20 = vadd.f32 %v2400_v46, %v2370_v16  ;;  %v2047_v17 = vadd.f32 %v2046_v37, %v1934_v34 }
 0x279   : > { %v1936_v15 = vpop.f32.mrf.mxu1  ;;  %v2159_v58 = vpop.f32.mrf.mxu3 }
 0x27a   : > { %v2160_v26 = vadd.f32 %v2159_v58, %v2047_v17  ;;  %v1937_v54 = vadd.f32 %v1936_v15, %v4130_v59 }
 0x27c   : > { %v2273_v8 = vadd.f32 %v2272_v31, %v2160_v26  ;;  %v4630_v26 = vld [vmem:[#allocation28_spill] sm:$0xff] }
 0x27e   : > { %v2333_v41 = vadd.f32 %v2332_v25, %v2273_v8  ;;  %v2371_v3 = vmul.f32 %v2273_v8, %v2273_v8  ;;  %2443 = vst [vmem:[%s4246_s23 + $0x88] sm:$0xff] %v2273_v8 }
 0x27f   : > { %v2049_v39 = vpop.f32.mrf.mxu2  ;;  %v2275_v21 = vpop.f32.mrf.mxu0 }
 0x280   : > { %v2402_v10 = vadd.f32 %v2401_v20, %v2371_v3  ;;  %v2050_v2 = vadd.f32 %v2049_v39, %v1937_v54 }
 0x281   : > { %v1939_v12 = vpop.f32.mrf.mxu1  ;;  %v2162_v18 = vpop.f32.mrf.mxu3 }
 0x282   : > { %v2163_v19 = vadd.f32 %v2162_v18, %v2050_v2  ;;  %v1940_v61 = vadd.f32 %v1939_v12, %v4137_v30 }
 0x284   : > { %v2276_v63 = vadd.f32 %v2275_v21, %v2163_v19  ;;  %v4631_v19 = vld [vmem:[#allocation30_spill] sm:$0xff] }
 0x286   : > { %v2334_v0 = vadd.f32 %v2333_v41, %v2276_v63  ;;  %v2372_v56 = vmul.f32 %v2276_v63, %v2276_v63  ;;  %2444 = vst [vmem:[%s4246_s23 + $0x90] sm:$0xff] %v2276_v63 }
 0x287   : > { %v2052_v45 = vpop.f32.mrf.mxu2  ;;  %v2278_v24 = vpop.f32.mrf.mxu0 }
 0x288   : > { %v2403_v59 = vadd.f32 %v2402_v10, %v2372_v56  ;;  %v2053_v9 = vadd.f32 %v2052_v45, %v1940_v61 }
 0x289   : > { %v1942_v38 = vpop.f32.mrf.mxu1  ;;  %v2165_v51 = vpop.f32.mrf.mxu3 }
 0x28a   : > { %v2166_v11 = vadd.f32 %v2165_v51, %v2053_v9  ;;  %v1943_v47 = vadd.f32 %v1942_v38, %v4146_v5 }
 0x28c   : > { %v2279_v36 = vadd.f32 %v2278_v24, %v2166_v11 }
 0x28e   : > { %v2335_v22 = vadd.f32 %v2334_v0, %v2279_v36  ;;  %v2373_v27 = vmul.f32 %v2279_v36, %v2279_v36  ;;  %2445 = vst [vmem:[%s4246_s23 + $0x98] sm:$0xff] %v2279_v36  ;;  %v4632_v36 = vld [vmem:[#allocation25_spill] sm:$0xff] }
 0x28f   : > { %v2055_v14 = vpop.f32.mrf.mxu2  ;;  %v2281_v55 = vpop.f32.mrf.mxu0 }
 0x290   : > { %v2404_v30 = vadd.f32 %v2403_v59, %v2373_v27  ;;  %v2056_v48 = vadd.f32 %v2055_v14, %v1943_v47 }
 0x291   : > { %v1945_v32 = vpop.f32.mrf.mxu1  ;;  %v2168_v7 = vpop.f32.mrf.mxu3 }
 0x292   : > { %v2169_v6 = vadd.f32 %v2168_v7, %v2056_v48  ;;  %v1946_v43 = vadd.f32 %v1945_v32, %v4153_v28 }
 0x294   : > { %v2282_v13 = vadd.f32 %v2281_v55, %v2169_v6 }
 0x296   : > { %v2336_v50 = vadd.f32 %v2335_v22, %v2282_v13  ;;  %v2374_v53 = vmul.f32 %v2282_v13, %v2282_v13  ;;  %2446 = vst [vmem:[%s4246_s23 + $0xa0] sm:$0xff] %v2282_v13 }
 0x297   : > { %v2058_v60 = vpop.f32.mrf.mxu2  ;;  %v2284_v4 = vpop.f32.mrf.mxu0 }
 0x298   : > { %v2405_v5 = vadd.f32 %v2404_v30, %v2374_v53  ;;  %v2059_v46 = vadd.f32 %v2058_v60, %v1946_v43 }
 0x299   : > { %v1948_v35 = vpop.f32.mrf.mxu1  ;;  %v2171_v52 = vpop.f32.mrf.mxu3 }
 0x29a   : > { %v2172_v62 = vadd.f32 %v2171_v52, %v2059_v46  ;;  %v1949_v23 = vadd.f32 %v1948_v35, %v4162_v1 }
 0x29c   : > { %v2285_v44 = vadd.f32 %v2284_v4, %v2172_v62 }
 0x29e   : > { %v2337_v34 = vadd.f32 %v2336_v50, %v2285_v44  ;;  %v2375_v25 = vmul.f32 %v2285_v44, %v2285_v44  ;;  %2447 = vst [vmem:[%s4246_s23 + $0xa8] sm:$0xff] %v2285_v44 }
 0x29f   : > { %v2061_v16 = vpop.f32.mrf.mxu2  ;;  %v2287_v37 = vpop.f32.mrf.mxu0 }
 0x2a0   : > { %v2406_v28 = vadd.f32 %v2405_v5, %v2375_v25  ;;  %v2062_v31 = vadd.f32 %v2061_v16, %v1949_v23 }
 0x2a1   : > { %v1951_v20 = vpop.f32.mrf.mxu1  ;;  %v2174_v17 = vpop.f32.mrf.mxu3 }
 0x2a2   : > { %v2175_v15 = vadd.f32 %v2174_v17, %v2062_v31  ;;  %v1952_v8 = vadd.f32 %v1951_v20, %v4630_v26 }
 0x2a4   : > { %v2288_v58 = vadd.f32 %v2287_v37, %v2175_v15 }
 0x2a6   : > { %v2338_v54 = vadd.f32 %v2337_v34, %v2288_v58  ;;  %v2376_v41 = vmul.f32 %v2288_v58, %v2288_v58  ;;  %2448 = vst [vmem:[%s4246_s23 + $0xb0] sm:$0xff] %v2288_v58 }
 0x2a7   : > { %v2064_v3 = vpop.f32.mrf.mxu2  ;;  %v2290_v39 = vpop.f32.mrf.mxu0 }
 0x2a8   : > { %v2407_v1 = vadd.f32 %v2406_v28, %v2376_v41  ;;  %v2065_v21 = vadd.f32 %v2064_v3, %v1952_v8 }
 0x2a9   : > { %v1954_v10 = vpop.f32.mrf.mxu1  ;;  %v2177_v2 = vpop.f32.mrf.mxu3 }
 0x2aa   : > { %v2178_v12 = vadd.f32 %v2177_v2, %v2065_v21  ;;  %v1955_v63 = vadd.f32 %v1954_v10, %v4631_v19 }
 0x2ac   : > { %v2291_v18 = vadd.f32 %v2290_v39, %v2178_v12 }
 0x2ae   : > { %v2339_v61 = vadd.f32 %v2338_v54, %v2291_v18  ;;  %v2377_v0 = vmul.f32 %v2291_v18, %v2291_v18  ;;  %2449 = vst [vmem:[%s4246_s23 + $0xb8] sm:$0xff] %v2291_v18 }
 0x2af   : > { %v2067_v56 = vpop.f32.mrf.mxu2  ;;  %v2293_v45 = vpop.f32.mrf.mxu0 }
 0x2b0   : > { %v2408_v24 = vadd.f32 %v2407_v1, %v2377_v0  ;;  %v2068_v59 = vadd.f32 %v2067_v56, %v1955_v63 }
 0x2b1   : > { %v1957_v9 = vpop.f32.mrf.mxu1  ;;  %v2180_v38 = vpop.f32.mrf.mxu3 }
 0x2b2   : > { %v2181_v51 = vadd.f32 %v2180_v38, %v2068_v59  ;;  %v1958_v47 = vadd.f32 %v1957_v9, %v4632_v36 }
 0x2b4   : > { %v2294_v11 = vadd.f32 %v2293_v45, %v2181_v51 }
 0x2b6   : > { %v2340_v22 = vadd.f32 %v2339_v61, %v2294_v11  ;;  %v2378_v27 = vmul.f32 %v2294_v11, %v2294_v11  ;;  %2450 = vst [vmem:[%s4246_s23 + $0xc0] sm:$0xff] %v2294_v11 }
 0x2b7   : > { %v2070_v14 = vpop.f32.mrf.mxu2  ;;  %v2296_v55 = vpop.f32.mrf.mxu0 }
 0x2b8   : > { %v2409_v30 = vadd.f32 %v2408_v24, %v2378_v27  ;;  %v2071_v48 = vadd.f32 %v2070_v14, %v1958_v47 }
 0x2b9   : > { %v1960_v32 = vpop.f32.mrf.mxu1  ;;  %v2183_v7 = vpop.f32.mrf.mxu3 }
 0x2ba   : > { %v2184_v6 = vadd.f32 %v2183_v7, %v2071_v48  ;;  %v1961_v43 = vadd.f32 %v1960_v32, %v4194_v49 }
 0x2bc   : > { %v2297_v13 = vadd.f32 %v2296_v55, %v2184_v6 }
 0x2be   : > { %v2341_v50 = vadd.f32 %v2340_v22, %v2297_v13  ;;  %v2379_v53 = vmul.f32 %v2297_v13, %v2297_v13  ;;  %2451 = vst [vmem:[%s4246_s23 + $0xc8] sm:$0xff] %v2297_v13 }
 0x2bf   : > { %v2073_v60 = vpop.f32.mrf.mxu2  ;;  %v2299_v4 = vpop.f32.mrf.mxu0 }
 0x2c0   : > { %v2410_v5 = vadd.f32 %v2409_v30, %v2379_v53  ;;  %v2074_v46 = vadd.f32 %v2073_v60, %v1961_v43 }
 0x2c1   : > { %v1963_v35 = vpop.f32.mrf.mxu1  ;;  %v2186_v52 = vpop.f32.mrf.mxu3 }
 0x2c2   : > { %v2187_v62 = vadd.f32 %v2186_v52, %v2074_v46  ;;  %v1964_v23 = vadd.f32 %v1963_v35, %v4201_v57 }
 0x2c4   : > { %v2300_v44 = vadd.f32 %v2299_v4, %v2187_v62 }
 0x2c6   : > { %v2342_v34 = vadd.f32 %v2341_v50, %v2300_v44  ;;  %v2380_v25 = vmul.f32 %v2300_v44, %v2300_v44  ;;  %2452 = vst [vmem:[%s4246_s23 + $0xd0] sm:$0xff] %v2300_v44 }
 0x2c7   : > { %v2076_v16 = vpop.f32.mrf.mxu2  ;;  %v2302_v37 = vpop.f32.mrf.mxu0 }
 0x2c8   : > { %v2411_v49 = vadd.f32 %v2410_v5, %v2380_v25  ;;  %v2077_v28 = vadd.f32 %v2076_v16, %v1964_v23 }
 0x2c9   : > { %v1966_v31 = vpop.f32.mrf.mxu1  ;;  %v2189_v20 = vpop.f32.mrf.mxu3 }
 0x2ca   : > { %v2190_v17 = vadd.f32 %v2189_v20, %v2077_v28  ;;  %v1967_v58 = vadd.f32 %v1966_v31, %v4210_v42 }
 0x2cc   : > { %v2303_v15 = vadd.f32 %v2302_v37, %v2190_v17 }
 0x2ce   : > { %v2343_v26 = vadd.f32 %v2342_v34, %v2303_v15  ;;  %v2381_v8 = vmul.f32 %v2303_v15, %v2303_v15  ;;  %2453 = vst [vmem:[%s4246_s23 + $0xd8] sm:$0xff] %v2303_v15 }
 0x2cf   : > { %v2079_v54 = vpop.f32.mrf.mxu2  ;;  %v2305_v41 = vpop.f32.mrf.mxu0 }
 0x2d0   : > { %v2412_v57 = vadd.f32 %v2411_v49, %v2381_v8  ;;  %v2080_v3 = vadd.f32 %v2079_v54, %v1967_v58 }
 0x2d1   : > { %v1969_v39 = vpop.f32.mrf.mxu1  ;;  %v2192_v1 = vpop.f32.mrf.mxu3 }
 0x2d2   : > { %v2193_v21 = vadd.f32 %v2192_v1, %v2080_v3  ;;  %v1970_v2 = vadd.f32 %v1969_v39, %v4217_v33 }
 0x2d4   : > { %v2306_v10 = vadd.f32 %v2305_v41, %v2193_v21 }
 0x2d6   : > { %v2344_v12 = vadd.f32 %v2343_v26, %v2306_v10  ;;  %v2382_v18 = vmul.f32 %v2306_v10, %v2306_v10  ;;  %2454 = vst [vmem:[%s4246_s23 + $0xe0] sm:$0xff] %v2306_v10 }
 0x2d7   : > { %v2082_v19 = vpop.f32.mrf.mxu2  ;;  %v2308_v63 = vpop.f32.mrf.mxu0 }
 0x2d8   : > { %v2413_v42 = vadd.f32 %v2412_v57, %v2382_v18  ;;  %v2083_v61 = vadd.f32 %v2082_v19, %v1970_v2 }
 0x2d9   : > { %v1972_v0 = vpop.f32.mrf.mxu1  ;;  %v2195_v56 = vpop.f32.mrf.mxu3 }
 0x2da   : > { %v2196_v45 = vadd.f32 %v2195_v56, %v2083_v61  ;;  %v1973_v59 = vadd.f32 %v1972_v0, %v4226_v40 }
 0x2dc   : > { %v2309_v24 = vadd.f32 %v2308_v63, %v2196_v45 }
 0x2de   : > { %v2345_v9 = vadd.f32 %v2344_v12, %v2309_v24  ;;  %v2383_v38 = vmul.f32 %v2309_v24, %v2309_v24  ;;  %2455 = vst [vmem:[%s4246_s23 + $0xe8] sm:$0xff] %v2309_v24 }
 0x2df   : > { %v2085_v51 = vpop.f32.mrf.mxu2  ;;  %v2311_v11 = vpop.f32.mrf.mxu0 }
 0x2e0   : > { %v2414_v33 = vadd.f32 %v2413_v42, %v2383_v38  ;;  %v2086_v36 = vadd.f32 %v2085_v51, %v1973_v59 }
 0x2e1   : > { %v2198_v47 = vpop.f32.mrf.mxu3  ;;  %v1975_v27 = vpop.f32.mrf.mxu1 }
 0x2e2   : > { %v2199_v22 = vadd.f32 %v2198_v47, %v2086_v36  ;;  %v1976_v55 = vadd.f32 %v1975_v27, %v4233_v29 }
 0x2e4   : > { %v2312_v14 = vadd.f32 %v2311_v11, %v2199_v22 }
 0x2e6   : > { %v2346_v30 = vadd.f32 %v2345_v9, %v2312_v14  ;;  %v2384_v48 = vmul.f32 %v2312_v14, %v2312_v14  ;;  %2456 = vst [vmem:[%s4246_s23 + $0xf0] sm:$0xff] %v2312_v14 }
 0x2e7   : > { %v2088_v32 = vpop.f32.mrf.mxu2  ;;  %v2314_v13 = vpop.f32.mrf.mxu0 }
 0x2e8   : > { %v2415_v7 = vadd.f32 %v2414_v33, %v2384_v48  ;;  %v2089_v40 = vadd.f32 %v2088_v32, %v1976_v55 }
 0x2e9   : > { %v2201_v6 = vpop.f32.mrf.mxu3 }
 0x2ea   : > { %v2202_v43 = vadd.f32 %v2201_v6, %v2089_v40 }
 0x2ec   : > { %v2315_v50 = vadd.f32 %v2314_v13, %v2202_v43 }
 0x2ee   : > { %v2347_v53 = vadd.f32 %v2346_v30, %v2315_v50  ;;  %v2385_v60 = vmul.f32 %v2315_v50, %v2315_v50  ;;  %2457 = vst [vmem:[%s4246_s23 + $0xf8] sm:$0xff] %v2315_v50 }
 0x2f0   : > { %v2348_v4 = vrot.slane %v2347_v53, 4  ;;  %v2416_v5 = vadd.f32 %v2415_v7, %v2385_v60 }
 0x2f2   : > { %v2349_v46 = vadd.f32 %v2348_v4, %v2347_v53  ;;  %v2417_v35 = vrot.slane %v2416_v5, 4 }
 0x2f4   : > { %v2350_v52 = vrot.slane %v2349_v46, 2  ;;  %v2418_v29 = vadd.f32 %v2417_v35, %v2416_v5 }
 0x2f6   : > { %v2351_v62 = vadd.f32 %v2350_v52, %v2349_v46  ;;  %v2419_v44 = vrot.slane %v2418_v29, 2 }
 0x2f8   : > { %v2352_v23 = vrot.slane %v2351_v62, 1  ;;  %v2420_v34 = vadd.f32 %v2419_v44, %v2418_v29 }
 0x2fa   : > { %v2421_v25 = vrot.slane %v2420_v34, 1  ;;  %v2353_v16 = vadd.f32 %v2352_v23, %v2351_v62 }
 0x2fc   : > { %v2422_v37 = vadd.f32 %v2421_v25, %v2420_v34 }
 0x2fe   : > { %v2424_v49 = vsel %vm2423_vm4, %v2353_v16, %v2422_v37 }
 0x2ff   : > { %2425 = vst [vmem:[%s268_s27] sm:$0x3] %v2424_v49 }
 0x300 PF: > { %s16_s20 = sadd.s32 1, %s2746_s20   ;;  %s4633_s18 = smov %s2742_s19 }
 0x301   : > { %p13_p5 = scmp.ge.s32.totalorder %s16_s20, 4   ;;  %s4634_s19 = smov %s4636_s21 }
 0x303   :  { %15 = sbr.rel (!%p13_p5) target bundleno = 2 (0x2), region = 79 }

</bundles_post_ra>
